<compile_context>
chip_gen: v7x
topology: tpu7x:2x2x1
jax: 0.10.0
libtpu: 0.0.40
codegen_flags: <defaults>
</compile_context>

<pallas_src>
import functools

import numpy as np

import jax
import jax.numpy as jnp
from jax.experimental import pallas as pl
from jax.experimental.pallas import tpu as pltpu


# ----------------------------------------------------------------------------
# Fused Pallas kernel: conv1+pool1+conv2+pool2+fc1+fc2 for one batch tile.
# Activation row index is always spatial_row * tb + b (batch minor).
# ----------------------------------------------------------------------------
def _cnn_fused_kernel(x1_ref, w1c_ref, b1_ref, w2m_ref, b2_ref,
                      wf1_ref, bf1_ref, wf2_ref, bf2_ref, out_ref, *, tb):
    f32 = jnp.float32
    bf16 = jnp.bfloat16

    # ---- conv1: single K-merged matmul (24*tb, 140) @ (140, 768) ------------
    # Output lanes are packed as (col%2)*384 + (col//2)*32 + channel and the
    # output rows arrive even-conv-rows-first, so the 2x2 pool below is two
    # contiguous-slice maxima on the VPU (no MXU / gather work).
    x1 = x1_ref[...].reshape(24 * tb, 140).astype(bf16)
    h1 = jnp.dot(x1, w1c_ref[...], preferred_element_type=f32)      # (24*tb, 768)

    rp = jnp.maximum(h1[:12 * tb, :], h1[12 * tb:, :])              # row pool
    cp = jnp.maximum(rp[:, :384], rp[:, 384:])                      # col pool
    a1 = jnp.maximum(cp + b1_ref[...], 0.0)                         # (12*tb, 384)

    # ---- conv2: 5 kh-shifted Toeplitz matmuls, M = 8*tb rows each ------------
    h2 = jnp.dot(a1[:8 * tb, :].astype(bf16), w2m_ref[0],
                 preferred_element_type=f32)
    for kh in range(1, 5):
        h2 = h2 + jnp.dot(a1[kh * tb:(kh + 8) * tb, :].astype(bf16),
                          w2m_ref[kh], preferred_element_type=f32)  # (8*tb, 512)

    # ---- 2x2 pool #2: rows via leading-dim split, cols via lane halves ------
    h2 = h2.reshape(4, 2 * tb, 512)
    rp2 = jnp.maximum(h2[:, :tb, :], h2[:, tb:, :])                 # (4, tb, 512)
    cp2 = jnp.maximum(rp2[:, :, :256], rp2[:, :, 256:])             # (4, tb, 256)
    a2 = jnp.maximum(cp2 + b2_ref[...], 0.0)

    # ---- fc1: one (tb, 1024) @ (1024, 256) matmul (NCHW flatten in weights) -
    f = jnp.concatenate([a2[0], a2[1], a2[2], a2[3]], axis=-1)      # (tb, 1024)
    f1 = jnp.dot(f.astype(bf16), wf1_ref[...], preferred_element_type=f32)
    f1 = jnp.maximum(f1 + bf1_ref[...], 0.0)                        # (tb, 256)

    # ---- fc2 (N=10 padded to 128 lanes) -> single lane-dense store ----------
    out_ref[...] = (jnp.dot(f1.astype(bf16), wf2_ref[...],
                            preferred_element_type=f32) + bf2_ref[...])


# ----------------------------------------------------------------------------
# Parameters (synthetic, CNNModel shapes) and one-time operand packing.
# ----------------------------------------------------------------------------
def init_params(key):
    """Synthetic parameters matching CNNModel.__init__ shapes.

    Conv weights are HWIO (kH, kW, Cin, Cout); fc weights (in, out).
    (Real PyTorch weights would need an OIHW->HWIO permute / transpose first.)
    """
    ks = jax.random.split(key, 8)

    def rnd(k, shape, fan_in):
        return jax.random.normal(k, shape, jnp.float32) / np.sqrt(fan_in)

    return {
        "w1": rnd(ks[0], (5, 5, 1, 32), 25.0),
        "b1": rnd(ks[1], (32,), 25.0) * 0.1,
        "w2": rnd(ks[2], (5, 5, 32, 64), 800.0),
        "b2": rnd(ks[3], (64,), 800.0) * 0.1,
        "wf1": rnd(ks[4], (1024, 256), 1024.0),
        "bf1": rnd(ks[5], (256,), 1024.0) * 0.1,
        "wf2": rnd(ks[6], (256, 10), 256.0),
        "bf2": rnd(ks[7], (10,), 256.0) * 0.1,
    }


def pack_params(params):
    """One-time repack of canonical weights into fused-kernel operands."""
    w1 = np.asarray(params["w1"], np.float32)      # (5,5,1,32)  HWIO
    b1 = np.asarray(params["b1"], np.float32)
    w2 = np.asarray(params["w2"], np.float32)      # (5,5,32,64) HWIO
    b2 = np.asarray(params["b2"], np.float32)
    wf1 = np.asarray(params["wf1"], np.float32)    # (1024, 256); rows = c*16+i*4+j
    bf1 = np.asarray(params["bf1"], np.float32)
    wf2 = np.asarray(params["wf2"], np.float32)    # (256, 10)
    bf2 = np.asarray(params["bf2"], np.float32)

    # conv1 Toeplitz weight over the merged K=140 (kh, w) window; output lanes
    # packed as (col%2)*384 + (col//2)*32 + cout so the column pool is a
    # lane-half max:  w1c[kh*28 + w, lane(j,c)] = w1[kh, w - j, 0, c].
    w1c = np.zeros((5, 28, 768), np.float32)
    for kh in range(5):
        for kw in range(5):
            for j in range(24):
                lo = (j % 2) * 384 + (j // 2) * 32
                w1c[kh, j + kw, lo:lo + 32] = w1[kh, kw, 0, :]
    w1c = w1c.reshape(140, 768)

    # conv2 Toeplitz weights (one per kh) on the pooled (12*32=384) input lane
    # layout; output lanes packed as (col%2)*256 + (col//2)*64 + cout.
    w2m = np.zeros((5, 12, 32, 512), np.float32)
    for kh in range(5):
        for kw in range(5):
            for j2 in range(8):
                lo = (j2 % 2) * 256 + (j2 // 2) * 64
                w2m[kh, j2 + kw, :, lo:lo + 64] = w2[kh, kw, :, :]
    w2m = w2m.reshape(5, 384, 512)

    # fc1 with torch's NCHW view(-1, 1024) folded into a row permutation of wf1:
    # the kernel's flattened-feature lane layout is i*256 + j*64 + c.
    wf1p = np.zeros((1024, 256), np.float32)
    c = np.arange(64)
    for i in range(4):
        for j in range(4):
            wf1p[i * 256 + j * 64 + c, :] = wf1[c * 16 + i * 4 + j, :]

    # fc2 padded from N=10 to 128 output lanes (sliced back in the wrapper).
    wf2p = np.zeros((256, 128), np.float32)
    wf2p[:, :10] = wf2
    bf2p = np.zeros((1, 128), np.float32)
    bf2p[0, :10] = bf2

    bf16 = jnp.bfloat16
    return {
        "w1c": jnp.asarray(w1c, bf16),
        "b1p": jnp.asarray(np.tile(b1, 12)[None, :], jnp.float32),   # (1, 384)
        "w2m": jnp.asarray(w2m, bf16),
        "b2p": jnp.asarray(np.tile(b2, 4)[None, :], jnp.float32),    # (1, 256)
        "wf1p": jnp.asarray(wf1p, bf16),
        "bf1": jnp.asarray(bf1[None, :], jnp.float32),               # (1, 256)
        "wf2p": jnp.asarray(wf2p, bf16),
        "bf2p": jnp.asarray(bf2p, jnp.float32),                      # (1, 128)
    }


# ----------------------------------------------------------------------------
# Forward pass wrapper
# ----------------------------------------------------------------------------
def _round_up(n, m):
    return ((n + m - 1) // m) * m


_TB = 32   # samples per grid step; must be a multiple of 8 (32-64 fills MXU)


@functools.partial(jax.jit, static_argnames=("tb",))
def cnn_forward(x_nchw, packed, tb=_TB):
    """Forward pass of CNNModel.  x_nchw: (B, 1, 28, 28) float32 -> (B, 10)."""
    if x_nchw.shape[1:] != (1, 28, 28):
        raise ValueError("CNNModel expects (B, 1, 28, 28) inputs")
    if tb % 8 != 0:
        raise ValueError("tb must be a multiple of 8")

    B = x_nchw.shape[0]
    tb_eff = min(tb, _round_up(B, 8))        # keep tile a multiple of 8
    b_pad = _round_up(B, tb_eff)

    x = x_nchw.reshape(B, 28, 28).astype(jnp.float32)
    if b_pad != B:
        x = jnp.concatenate(
            [x, jnp.zeros((b_pad - B, 28, 28), jnp.float32)], axis=0)

    # Wrapper-side layout plumbing (plain XLA, negligible vs. kernel compute):
    #   X1[q, b, kh*28 + w] = x[b, r(q)+kh, w], the conv1 K=140 window, with
    # conv output rows reordered even-first so the in-kernel 2x2 row pool is a
    # max of two contiguous row blocks.
    xw = jnp.concatenate([x[:, kh:kh + 24, :] for kh in range(5)], axis=-1)
    xw = jnp.concatenate([xw[:, 0:24:2, :], xw[:, 1:24:2, :]], axis=1)
    x1 = jnp.transpose(xw, (1, 0, 2))                        # (24, b_pad, 140)

    kernel = functools.partial(_cnn_fused_kernel, tb=tb_eff)
    const2 = lambda i: (0, 0)
    const3 = lambda i: (0, 0, 0)

    out = pl.pallas_call(
        kernel,
        out_shape=jax.ShapeDtypeStruct((b_pad, 128), jnp.float32),
        grid=(b_pad // tb_eff,),
        in_specs=[
            pl.BlockSpec((24, tb_eff, 140), lambda i: (0, i, 0)),  # conv1 windows
            pl.BlockSpec((140, 768), const2),                      # w1c  (bf16)
            pl.BlockSpec((1, 384), const2),                        # b1 (pooled)
            pl.BlockSpec((5, 384, 512), const3),                   # w2m  (bf16)
            pl.BlockSpec((1, 256), const2),                        # b2 (pooled)
            pl.BlockSpec((1024, 256), const2),                     # wf1p (bf16)
            pl.BlockSpec((1, 256), const2),                        # bf1
            pl.BlockSpec((256, 128), const2),                      # wf2p (bf16)
            pl.BlockSpec((1, 128), const2),                        # bf2p
        ],
        out_specs=pl.BlockSpec((tb_eff, 128), lambda i: (i, 0)),
        compiler_params=pltpu.CompilerParams(
            dimension_semantics=("parallel",),
            vmem_limit_bytes=32 * 1024 * 1024),   # ~11 MB live at tb=32
    )(x1, packed["w1c"], packed["b1p"], packed["w2m"], packed["b2p"],
      packed["wf1p"], packed["bf1"], packed["wf2p"], packed["bf2p"])

    return out[:B, :10]


# ----------------------------------------------------------------------------
# Pure-JAX reference (f32, highest precision) for validation
# ----------------------------------------------------------------------------
def cnn_reference(x_nchw, params):
    hi = jax.lax.Precision.HIGHEST
    x = jnp.transpose(x_nchw, (0, 2, 3, 1))                      # NHWC
    h = jax.lax.conv_general_dilated(
        x, params["w1"], (1, 1), "VALID",
        dimension_numbers=("NHWC", "HWIO", "NHWC"), precision=hi)
    h = jax.nn.relu(h + params["b1"])
    h = jax.lax.reduce_window(h, -jnp.inf, jax.lax.max,
                              (1, 2, 2, 1), (1, 2, 2, 1), "VALID")
    h = jax.lax.conv_general_dilated(
        h, params["w2"], (1, 1), "VALID",
        dimension_numbers=("NHWC", "HWIO", "NHWC"), precision=hi)
    h = jax.nn.relu(h + params["b2"])
    h = jax.lax.reduce_window(h, -jnp.inf, jax.lax.max,
                              (1, 2, 2, 1), (1, 2, 2, 1), "VALID")
    flat = jnp.transpose(h, (0, 3, 1, 2)).reshape(x.shape[0], 1024)
    f1 = jax.nn.relu(jnp.dot(flat, params["wf1"], precision=hi) + params["bf1"])
    return jnp.dot(f1, params["wf2"], precision=hi) + params["bf2"]


if __name__ == "__main__":
    key = jax.random.PRNGKey(0)
    k_params, k_x = jax.random.split(key)
    params = init_params(k_params)
    packed = pack_params(params)

    # MNIST-like input: fc1's in_features=1024 forces 28x28x1 inputs.
    x = jax.random.normal(k_x, (2, 1, 28, 28), jnp.float32)

    logits = cnn_forward(x, packed)
    jax.block_until_ready(logits)
    assert logits.shape == (2, 10), logits.shape
    assert bool(jnp.all(jnp.isfinite(logits)))

    ref = cnn_reference(x, params)
    err = float(jnp.max(jnp.abs(logits - ref)))
    assert err < 0.15, f"max |err| vs reference = {err}"

    # Multi-tile + padded batch path (grid > 1, batch not a tile multiple).
    x2 = jax.random.normal(jax.random.PRNGKey(1), (20, 1, 28, 28), jnp.float32)
    logits2 = cnn_forward(x2, packed, tb=8)
    jax.block_until_ready(logits2)
    ref2 = cnn_reference(x2, params)
    err2 = float(jnp.max(jnp.abs(logits2 - ref2)))
    assert logits2.shape == (20, 10), logits2.shape
    assert err2 < 0.15, f"max |err| vs reference (multi-tile) = {err2}"

    print("KERNEL_OK")
</pallas_src>

<mosaic_0001>
module attributes {stable_mosaic.version = 11 : i64} {
  func.func @_cnn_fused_kernel(%arg0: i32, %arg1: memref<24x8x140xf32, #tpu.memory_space<vmem>>, %arg2: memref<140x768xbf16, #tpu.memory_space<vmem>>, %arg3: memref<1x384xf32, #tpu.memory_space<vmem>>, %arg4: memref<5x384x512xbf16, #tpu.memory_space<vmem>>, %arg5: memref<1x256xf32, #tpu.memory_space<vmem>>, %arg6: memref<1024x256xbf16, #tpu.memory_space<vmem>>, %arg7: memref<1x256xf32, #tpu.memory_space<vmem>>, %arg8: memref<256x128xbf16, #tpu.memory_space<vmem>>, %arg9: memref<1x128xf32, #tpu.memory_space<vmem>>, %arg10: memref<8x128xf32, #tpu.memory_space<vmem>>) attributes {dimension_semantics = [#tpu.dimension_semantics<parallel>], iteration_bounds = array<i64: 1>, scalar_prefetch = 0 : i64, scratch_operands = 0 : i64, tpu.core_type = #tpu.core_type<tc>, window_params = [{transform_indices = @transform_0, window_bounds = array<i64: 24, 8, 140>}, {pipeline_mode = #tpu.pipeline_mode<synchronous>, transform_indices = @transform_1, window_bounds = array<i64: 140, 768>}, {pipeline_mode = #tpu.pipeline_mode<synchronous>, transform_indices = @transform_2, window_bounds = array<i64: 1, 384>}, {pipeline_mode = #tpu.pipeline_mode<synchronous>, transform_indices = @transform_3, window_bounds = array<i64: 5, 384, 512>}, {pipeline_mode = #tpu.pipeline_mode<synchronous>, transform_indices = @transform_4, window_bounds = array<i64: 1, 256>}, {pipeline_mode = #tpu.pipeline_mode<synchronous>, transform_indices = @transform_5, window_bounds = array<i64: 1024, 256>}, {pipeline_mode = #tpu.pipeline_mode<synchronous>, transform_indices = @transform_6, window_bounds = array<i64: 1, 256>}, {pipeline_mode = #tpu.pipeline_mode<synchronous>, transform_indices = @transform_7, window_bounds = array<i64: 256, 128>}, {pipeline_mode = #tpu.pipeline_mode<synchronous>, transform_indices = @transform_8, window_bounds = array<i64: 1, 128>}, {transform_indices = @transform_9, window_bounds = array<i64: 8, 128>}]} {
    %c0 = arith.constant 0 : index
    %c0_0 = arith.constant 0 : index
    %c0_1 = arith.constant 0 : index
    %0 = vector.load %arg1[%c0, %c0_0, %c0_1] : memref<24x8x140xf32, #tpu.memory_space<vmem>>, vector<24x8x140xf32>
    %1 = vector.shape_cast %0 : vector<24x8x140xf32> to vector<192x140xf32>
    %2 = arith.truncf %1 : vector<192x140xf32> to vector<192x140xbf16>
    %c0_2 = arith.constant 0 : index
    %c0_3 = arith.constant 0 : index
    %3 = vector.load %arg2[%c0_2, %c0_3] : memref<140x768xbf16, #tpu.memory_space<vmem>>, vector<140x768xbf16>
    %cst = arith.constant dense<0.000000e+00> : vector<192x768xf32>
    %4 = tpu.matmul %2, %3, %cst {dimension_numbers = #tpu.dot_dimension_numbers<[1], [0], [0], [1], [0, 0, 1, 1], [], []>} : vector<192x140xbf16>, vector<140x768xbf16>, vector<192x768xf32> -> vector<192x768xf32>
    %5 = vector.extract_strided_slice %4 {offsets = [0, 0], sizes = [96, 768], strides = [1, 1]} : vector<192x768xf32> to vector<96x768xf32>
    %6 = vector.extract_strided_slice %4 {offsets = [96, 0], sizes = [96, 768], strides = [1, 1]} : vector<192x768xf32> to vector<96x768xf32>
    %7 = arith.maximumf %5, %6 : vector<96x768xf32>
    %8 = vector.extract_strided_slice %7 {offsets = [0, 0], sizes = [96, 384], strides = [1, 1]} : vector<96x768xf32> to vector<96x384xf32>
    %9 = vector.extract_strided_slice %7 {offsets = [0, 384], sizes = [96, 384], strides = [1, 1]} : vector<96x768xf32> to vector<96x384xf32>
    %10 = arith.maximumf %8, %9 : vector<96x384xf32>
    %c0_4 = arith.constant 0 : index
    %c0_5 = arith.constant 0 : index
    %11 = vector.load %arg3[%c0_4, %c0_5] : memref<1x384xf32, #tpu.memory_space<vmem>>, vector<1x384xf32>
    %12 = vector.broadcast %11 : vector<1x384xf32> to vector<96x384xf32>
    %13 = arith.addf %10, %12 : vector<96x384xf32>
    %cst_6 = arith.constant 0.000000e+00 : f32
    %14 = vector.broadcast %cst_6 : f32 to vector<96x384xf32>
    %15 = arith.maximumf %13, %14 : vector<96x384xf32>
    %16 = vector.extract_strided_slice %15 {offsets = [0, 0], sizes = [64, 384], strides = [1, 1]} : vector<96x384xf32> to vector<64x384xf32>
    %17 = arith.truncf %16 : vector<64x384xf32> to vector<64x384xbf16>
    %c0_7 = arith.constant 0 : index
    %c0_8 = arith.constant 0 : index
    %c0_9 = arith.constant 0 : index
    %18 = vector.load %arg4[%c0_7, %c0_8, %c0_9] : memref<5x384x512xbf16, #tpu.memory_space<vmem>>, vector<1x384x512xbf16>
    %19 = vector.shape_cast %18 : vector<1x384x512xbf16> to vector<384x512xbf16>
    %cst_10 = arith.constant dense<0.000000e+00> : vector<64x512xf32>
    %20 = tpu.matmul %17, %19, %cst_10 {dimension_numbers = #tpu.dot_dimension_numbers<[1], [0], [0], [1], [0, 0, 1, 1], [], []>} : vector<64x384xbf16>, vector<384x512xbf16>, vector<64x512xf32> -> vector<64x512xf32>
    %21 = vector.extract_strided_slice %15 {offsets = [8, 0], sizes = [64, 384], strides = [1, 1]} : vector<96x384xf32> to vector<64x384xf32>
    %22 = arith.truncf %21 : vector<64x384xf32> to vector<64x384xbf16>
    %c1 = arith.constant 1 : index
    %c0_11 = arith.constant 0 : index
    %c0_12 = arith.constant 0 : index
    %23 = vector.load %arg4[%c1, %c0_11, %c0_12] : memref<5x384x512xbf16, #tpu.memory_space<vmem>>, vector<1x384x512xbf16>
    %24 = vector.shape_cast %23 : vector<1x384x512xbf16> to vector<384x512xbf16>
    %cst_13 = arith.constant dense<0.000000e+00> : vector<64x512xf32>
    %25 = tpu.matmul %22, %24, %cst_13 {dimension_numbers = #tpu.dot_dimension_numbers<[1], [0], [0], [1], [0, 0, 1, 1], [], []>} : vector<64x384xbf16>, vector<384x512xbf16>, vector<64x512xf32> -> vector<64x512xf32>
    %26 = arith.addf %20, %25 : vector<64x512xf32>
    %27 = vector.extract_strided_slice %15 {offsets = [16, 0], sizes = [64, 384], strides = [1, 1]} : vector<96x384xf32> to vector<64x384xf32>
    %28 = arith.truncf %27 : vector<64x384xf32> to vector<64x384xbf16>
    %c2 = arith.constant 2 : index
    %c0_14 = arith.constant 0 : index
    %c0_15 = arith.constant 0 : index
    %29 = vector.load %arg4[%c2, %c0_14, %c0_15] : memref<5x384x512xbf16, #tpu.memory_space<vmem>>, vector<1x384x512xbf16>
    %30 = vector.shape_cast %29 : vector<1x384x512xbf16> to vector<384x512xbf16>
    %cst_16 = arith.constant dense<0.000000e+00> : vector<64x512xf32>
    %31 = tpu.matmul %28, %30, %cst_16 {dimension_numbers = #tpu.dot_dimension_numbers<[1], [0], [0], [1], [0, 0, 1, 1], [], []>} : vector<64x384xbf16>, vector<384x512xbf16>, vector<64x512xf32> -> vector<64x512xf32>
    %32 = arith.addf %26, %31 : vector<64x512xf32>
    %33 = vector.extract_strided_slice %15 {offsets = [24, 0], sizes = [64, 384], strides = [1, 1]} : vector<96x384xf32> to vector<64x384xf32>
    %34 = arith.truncf %33 : vector<64x384xf32> to vector<64x384xbf16>
    %c3 = arith.constant 3 : index
    %c0_17 = arith.constant 0 : index
    %c0_18 = arith.constant 0 : index
    %35 = vector.load %arg4[%c3, %c0_17, %c0_18] : memref<5x384x512xbf16, #tpu.memory_space<vmem>>, vector<1x384x512xbf16>
    %36 = vector.shape_cast %35 : vector<1x384x512xbf16> to vector<384x512xbf16>
    %cst_19 = arith.constant dense<0.000000e+00> : vector<64x512xf32>
    %37 = tpu.matmul %34, %36, %cst_19 {dimension_numbers = #tpu.dot_dimension_numbers<[1], [0], [0], [1], [0, 0, 1, 1], [], []>} : vector<64x384xbf16>, vector<384x512xbf16>, vector<64x512xf32> -> vector<64x512xf32>
    %38 = arith.addf %32, %37 : vector<64x512xf32>
    %39 = vector.extract_strided_slice %15 {offsets = [32, 0], sizes = [64, 384], strides = [1, 1]} : vector<96x384xf32> to vector<64x384xf32>
    %40 = arith.truncf %39 : vector<64x384xf32> to vector<64x384xbf16>
    %c4 = arith.constant 4 : index
    %c0_20 = arith.constant 0 : index
    %c0_21 = arith.constant 0 : index
    %41 = vector.load %arg4[%c4, %c0_20, %c0_21] : memref<5x384x512xbf16, #tpu.memory_space<vmem>>, vector<1x384x512xbf16>
    %42 = vector.shape_cast %41 : vector<1x384x512xbf16> to vector<384x512xbf16>
    %cst_22 = arith.constant dense<0.000000e+00> : vector<64x512xf32>
    %43 = tpu.matmul %40, %42, %cst_22 {dimension_numbers = #tpu.dot_dimension_numbers<[1], [0], [0], [1], [0, 0, 1, 1], [], []>} : vector<64x384xbf16>, vector<384x512xbf16>, vector<64x512xf32> -> vector<64x512xf32>
    %44 = arith.addf %38, %43 : vector<64x512xf32>
    %45 = vector.shape_cast %44 : vector<64x512xf32> to vector<4x16x512xf32>
    %46 = vector.extract_strided_slice %45 {offsets = [0, 0, 0], sizes = [4, 8, 512], strides = [1, 1, 1]} : vector<4x16x512xf32> to vector<4x8x512xf32>
    %47 = vector.extract_strided_slice %45 {offsets = [0, 8, 0], sizes = [4, 8, 512], strides = [1, 1, 1]} : vector<4x16x512xf32> to vector<4x8x512xf32>
    %48 = arith.maximumf %46, %47 : vector<4x8x512xf32>
    %49 = vector.extract_strided_slice %48 {offsets = [0, 0, 0], sizes = [4, 8, 256], strides = [1, 1, 1]} : vector<4x8x512xf32> to vector<4x8x256xf32>
    %50 = vector.extract_strided_slice %48 {offsets = [0, 0, 256], sizes = [4, 8, 256], strides = [1, 1, 1]} : vector<4x8x512xf32> to vector<4x8x256xf32>
    %51 = arith.maximumf %49, %50 : vector<4x8x256xf32>
    %c0_23 = arith.constant 0 : index
    %c0_24 = arith.constant 0 : index
    %52 = vector.load %arg5[%c0_23, %c0_24] : memref<1x256xf32, #tpu.memory_space<vmem>>, vector<1x256xf32>
    %53 = vector.shape_cast %52 : vector<1x256xf32> to vector<1x1x256xf32>
    %54 = vector.broadcast %53 : vector<1x1x256xf32> to vector<4x8x256xf32>
    %55 = arith.addf %51, %54 : vector<4x8x256xf32>
    %cst_25 = arith.constant 0.000000e+00 : f32
    %56 = vector.broadcast %cst_25 : f32 to vector<4x8x256xf32>
    %57 = arith.maximumf %55, %56 : vector<4x8x256xf32>
    %58 = vector.extract_strided_slice %57 {offsets = [0, 0, 0], sizes = [1, 8, 256], strides = [1, 1, 1]} : vector<4x8x256xf32> to vector<1x8x256xf32>
    %59 = vector.shape_cast %58 : vector<1x8x256xf32> to vector<8x256xf32>
    %60 = vector.extract_strided_slice %57 {offsets = [1, 0, 0], sizes = [1, 8, 256], strides = [1, 1, 1]} : vector<4x8x256xf32> to vector<1x8x256xf32>
    %61 = vector.shape_cast %60 : vector<1x8x256xf32> to vector<8x256xf32>
    %62 = vector.extract_strided_slice %57 {offsets = [2, 0, 0], sizes = [1, 8, 256], strides = [1, 1, 1]} : vector<4x8x256xf32> to vector<1x8x256xf32>
    %63 = vector.shape_cast %62 : vector<1x8x256xf32> to vector<8x256xf32>
    %64 = vector.extract_strided_slice %57 {offsets = [3, 0, 0], sizes = [1, 8, 256], strides = [1, 1, 1]} : vector<4x8x256xf32> to vector<1x8x256xf32>
    %65 = vector.shape_cast %64 : vector<1x8x256xf32> to vector<8x256xf32>
    %66 = tpu.concatenate %59, %61, %63, %65 in 1 : vector<8x256xf32>, vector<8x256xf32>, vector<8x256xf32>, vector<8x256xf32> -> vector<8x1024xf32>
    %67 = arith.truncf %66 : vector<8x1024xf32> to vector<8x1024xbf16>
    %c0_26 = arith.constant 0 : index
    %c0_27 = arith.constant 0 : index
    %68 = vector.load %arg6[%c0_26, %c0_27] : memref<1024x256xbf16, #tpu.memory_space<vmem>>, vector<1024x256xbf16>
    %cst_28 = arith.constant dense<0.000000e+00> : vector<8x256xf32>
    %69 = tpu.matmul %67, %68, %cst_28 {dimension_numbers = #tpu.dot_dimension_numbers<[1], [0], [0], [1], [0, 0, 1, 1], [], []>} : vector<8x1024xbf16>, vector<1024x256xbf16>, vector<8x256xf32> -> vector<8x256xf32>
    %c0_29 = arith.constant 0 : index
    %c0_30 = arith.constant 0 : index
    %70 = vector.load %arg7[%c0_29, %c0_30] : memref<1x256xf32, #tpu.memory_space<vmem>>, vector<1x256xf32>
    %71 = vector.broadcast %70 : vector<1x256xf32> to vector<8x256xf32>
    %72 = arith.addf %69, %71 : vector<8x256xf32>
    %cst_31 = arith.constant 0.000000e+00 : f32
    %73 = vector.broadcast %cst_31 : f32 to vector<8x256xf32>
    %74 = arith.maximumf %72, %73 : vector<8x256xf32>
    %75 = arith.truncf %74 : vector<8x256xf32> to vector<8x256xbf16>
    %c0_32 = arith.constant 0 : index
    %c0_33 = arith.constant 0 : index
    %76 = vector.load %arg8[%c0_32, %c0_33] : memref<256x128xbf16, #tpu.memory_space<vmem>>, vector<256x128xbf16>
    %cst_34 = arith.constant dense<0.000000e+00> : vector<8x128xf32>
    %77 = tpu.matmul %75, %76, %cst_34 {dimension_numbers = #tpu.dot_dimension_numbers<[1], [0], [0], [1], [0, 0, 1, 1], [], []>} : vector<8x256xbf16>, vector<256x128xbf16>, vector<8x128xf32> -> vector<8x128xf32>
    %c0_35 = arith.constant 0 : index
    %c0_36 = arith.constant 0 : index
    %78 = vector.load %arg9[%c0_35, %c0_36] : memref<1x128xf32, #tpu.memory_space<vmem>>, vector<1x128xf32>
    %79 = vector.broadcast %78 : vector<1x128xf32> to vector<8x128xf32>
    %80 = arith.addf %77, %79 : vector<8x128xf32>
    %c0_37 = arith.constant 0 : index
    %c0_38 = arith.constant 0 : index
    %81 = vector.load %arg10[%c0_37, %c0_38] : memref<8x128xf32, #tpu.memory_space<vmem>>, vector<8x128xf32>
    tpu.vector_store %arg10[%c0_37, %c0_38], %80 {strides = array<i32>} : memref<8x128xf32, #tpu.memory_space<vmem>>, vector<8x128xf32>,
    return
  }
  func.func @transform_0(%arg0: i32) -> (i32, i32, i32) {
    %c0_i32 = arith.constant 0 : i32
    %c0_i32_0 = arith.constant 0 : i32
    %c0_i32_1 = arith.constant 0 : i32
    return %c0_i32, %arg0, %c0_i32_0 : i32, i32, i32
  }
  func.func @transform_1(%arg0: i32) -> (i32, i32) {
    %c0_i32 = arith.constant 0 : i32
    %c0_i32_0 = arith.constant 0 : i32
    %c0_i32_1 = arith.constant 0 : i32
    return %c0_i32, %c0_i32_0 : i32, i32
  }
  func.func @transform_2(%arg0: i32) -> (i32, i32) {
    %c0_i32 = arith.constant 0 : i32
    %c0_i32_0 = arith.constant 0 : i32
    %c0_i32_1 = arith.constant 0 : i32
    return %c0_i32, %c0_i32_0 : i32, i32
  }
  func.func @transform_3(%arg0: i32) -> (i32, i32, i32) {
    %c0_i32 = arith.constant 0 : i32
    %c0_i32_0 = arith.constant 0 : i32
    %c0_i32_1 = arith.constant 0 : i32
    %c0_i32_2 = arith.constant 0 : i32
    return %c0_i32, %c0_i32_0, %c0_i32_1 : i32, i32, i32
  }
  func.func @transform_4(%arg0: i32) -> (i32, i32) {
    %c0_i32 = arith.constant 0 : i32
    %c0_i32_0 = arith.constant 0 : i32
    %c0_i32_1 = arith.constant 0 : i32
    return %c0_i32, %c0_i32_0 : i32, i32
  }
  func.func @transform_5(%arg0: i32) -> (i32, i32) {
    %c0_i32 = arith.constant 0 : i32
    %c0_i32_0 = arith.constant 0 : i32
    %c0_i32_1 = arith.constant 0 : i32
    return %c0_i32, %c0_i32_0 : i32, i32
  }
  func.func @transform_6(%arg0: i32) -> (i32, i32) {
    %c0_i32 = arith.constant 0 : i32
    %c0_i32_0 = arith.constant 0 : i32
    %c0_i32_1 = arith.constant 0 : i32
    return %c0_i32, %c0_i32_0 : i32, i32
  }
  func.func @transform_7(%arg0: i32) -> (i32, i32) {
    %c0_i32 = arith.constant 0 : i32
    %c0_i32_0 = arith.constant 0 : i32
    %c0_i32_1 = arith.constant 0 : i32
    return %c0_i32, %c0_i32_0 : i32, i32
  }
  func.func @transform_8(%arg0: i32) -> (i32, i32) {
    %c0_i32 = arith.constant 0 : i32
    %c0_i32_0 = arith.constant 0 : i32
    %c0_i32_1 = arith.constant 0 : i32
    return %c0_i32, %c0_i32_0 : i32, i32
  }
  func.func @transform_9(%arg0: i32) -> (i32, i32) {
    %c0_i32 = arith.constant 0 : i32
    %c0_i32_0 = arith.constant 0 : i32
    return %arg0, %c0_i32 : i32, i32
  }
}

</mosaic_0001>

<bundles_post_ra>
// kernel: cnn_forward.1
= control target key start
LH: loop header
LB: loop body
LE: loop exit
PB: predicated region body
PF: predicated region fallthrough
CT: control target
= control target key end

     0   :  { %14 = vsyncpa [#allocation3], 0  ;;  %s11922_s0 = inlined_call_operand.vmem [shape: f32[24,8,140], index: 0, kind: input, shape index: {}]   ;;  %s11923_s1 = inlined_call_operand.hbm [shape: bf16[140,768], index: 1, kind: input, shape index: {}]   ;;  %s11924_s2 = inlined_call_operand.vmem [shape: f32[1,384], index: 2, kind: input, shape index: {}]   ;;  %s11925_s3 = inlined_call_operand.vmem [shape: bf16[5,384,512], index: 3, kind: input, shape index: {}]   ;;  %s11926_s4 = inlined_call_operand.vmem [shape: f32[1,256], index: 4, kind: input, shape index: {}]   ;;  %s11927_s5 = inlined_call_operand.hbm [shape: bf16[1024,256], index: 5, kind: input, shape index: {}]   ;;  %s11928_s6 = inlined_call_operand.vmem [shape: f32[1,256], index: 6, kind: input, shape index: {}]   ;;  %s11929_s7 = inlined_call_operand.vmem [shape: bf16[256,128], index: 7, kind: input, shape index: {}]   ;;  %s11930_s8 = inlined_call_operand.vmem [shape: f32[1,128], index: 8, kind: input, shape index: {}]   ;;  %s11931_s9 = inlined_call_operand.vmem [shape: f32[8,128], index: 9, kind: output, shape index: {}]  }
   0x1   :  { %15 = vsyncpa [#allocation5], 0  ;;  %s9316_s30 = smov [#allocation2]   ;;  %s9268_s13 = scalar_lea.hbm %s11923_s1, 6912 }
   0x2   :  { %s23_s10 = sshll.u32 %s9316_s30, 4  ;;  %p9269_p0 = scmp.ne.s32.totalorder %s11923_s1, %s9268_s13  ;;  %s24_s10 = int_to_ptr.vmem [resolvable:$true] %s23_s10 }
   0x3   :  { %p9272_p1 = scmp.lt.u32.totalorder %s9268_s13, %s11923_s1 }
   0x5   :  { %p9274_p2 = pnand %p9272_p1, %p9269_p0 }
   0x7   :  { %9277 = shalt.err (!%p9274_p2)
}
   0x8   :  { %s9278_s18 = scalar_lea.vmem %s24_s10, 6912  ;;  %p9283_p4 = scmp.lt.s32.totalorder %s24_s10, %s24_s10 }
   0x9   :  { %p9279_p3 = scmp.ne.s32.totalorder %s24_s10, %s9278_s18  ;;  %p9284_p5 = scmp.lt.s32.totalorder %s9278_s18, %s9278_s18 }
   0xb   :  { %p9285_p6 = por %p9284_p5, %p9283_p4 }
   0xd   :  { %p9286_p7 = pnand %p9285_p6, %p9279_p3 }
   0xf   :  { %9289 = shalt.err (!%p9286_p7)
}
  0x10   :  { %s9317_s19 = smov 384   ;;  %s9318_s20 = smov 24  }
  0x11   :  { %29 = dma.hbm_to_vmem [thread:$0]  %s11923_s1, 6912, %s24_s10, [#allocation3], %s9317_s19, %s9317_s19, %s9318_s20  }
  0x12   :  { %s9319_s23 = smov [#allocation4]   ;;  %s9290_s27 = scalar_lea.hbm %s11927_s5, 16384 }
  0x13   :  { %s41_s24 = sshll.u32 %s9319_s23, 4  ;;  %p9291_p8 = scmp.ne.s32.totalorder %s11927_s5, %s9290_s27  ;;  %s42_s24 = int_to_ptr.vmem [resolvable:$true] %s41_s24 }
  0x14   :  { %p9294_p9 = scmp.lt.u32.totalorder %s9290_s27, %s11927_s5 }
  0x16   :  { %p9296_p10 = pnand %p9294_p9, %p9291_p8 }
  0x18   :  { %9299 = shalt.err (!%p9296_p10)
}
  0x19   :  { %s9300_s12 = scalar_lea.vmem %s42_s24, 16384  ;;  %p9305_p12 = scmp.lt.s32.totalorder %s42_s24, %s42_s24 }
  0x1a   :  { %p9301_p11 = scmp.ne.s32.totalorder %s42_s24, %s9300_s12  ;;  %p9306_p13 = scmp.lt.s32.totalorder %s9300_s12, %s9300_s12 }
  0x1c   :  { %p9307_p0 = por %p9306_p13, %p9305_p12 }
  0x1e   :  { %p9308_p1 = pnand %p9307_p0, %p9301_p11 }
  0x20   :  { %9311 = shalt.err (!%p9308_p1)
}
  0x21   :  { %s9320_s1 = smov 128   ;;  %s9321_s10 = smov 8  }
  0x22   :  { %47 = dma.hbm_to_vmem [thread:$0]  %s11927_s5, 16384, %s42_s24, [#allocation5], %s9320_s1, %s9320_s1, %s9321_s10  }
  0x23   :  { %9312 = dma.done.wait [#allocation3], 6912  }
  0x24   :  { %9313 = vsyncadd [#allocation3], 4294960384 }
  0x25   :  { %9314 = dma.done.wait [#allocation5], 16384  }
  0x26   :  { %9315 = vsyncadd [#allocation5], 4294950912  ;;  %v8259_v0 = vld [vmem:[#allocation2 + $0x4] ss:$24 sps:$4 sm:$0xff]   ;;  %v8263_v2 = vld [vmem:[#allocation2] ss:$24 sps:$4 sm:$0xff]  }
  0x27   :  { %v8261_v1 = vld [vmem:[#allocation2 + $0xc] ss:$24 sps:$4 sm:$0xff]   ;;  %507 = vmatprep.subr.bf16.mxu0 %v8259_v0  ;;  %v8264_v3 = vld [vmem:[#allocation2 + $0x8] ss:$24 sps:$4 sm:$0xff]   ;;  %v8267_v5 = vld [vmem:[#allocation2 + $0x3c] ss:$24 sps:$4 sm:$0xff]  }
  0x28   :  { %660 = vmatprep.subr.bf16.mxu1 %v8261_v1  ;;  %v8265_v4 = vld [vmem:[#allocation2 + $0x34] ss:$24 sps:$4 sm:$0xff]   ;;  %508 = vmatpush1.bf16.msra.mxu0 %v8263_v2  ;;  %v8269_v6 = vld [vmem:[#allocation2 + $0x30] ss:$24 sps:$4 sm:$0xff]   ;;  %v8271_v8 = vld [vmem:[#allocation2 + $0x64] ss:$24 sps:$4 sm:$0xff]  }
  0x29   :  { %661 = vmatpush1.bf16.msra.mxu1 %v8264_v3  ;;  %509 = vmatprep.subr.bf16.mxu0 %v8265_v4  ;;  %v8270_v7 = vld [vmem:[#allocation2 + $0x38] ss:$24 sps:$4 sm:$0xff]   ;;  %v8273_v9 = vld [vmem:[#allocation2 + $0x6c] ss:$24 sps:$4 sm:$0xff]   ;;  %v8276_v11 = vld [vmem:[#allocation2 + $0x68] ss:$24 sps:$4 sm:$0xff]  }
  0x2a   :  { %662 = vmatprep.subr.bf16.mxu1 %v8267_v5  ;;  %v8275_v10 = vld [vmem:[#allocation2 + $0x60] ss:$24 sps:$4 sm:$0xff]   ;;  %v8277_v12 = vld [vmem:[#allocation2 + $0x94] ss:$24 sps:$4 sm:$0xff]   ;;  %v8281_v14 = vld [vmem:[#allocation2 + $0x90] ss:$24 sps:$4 sm:$0xff]  }
  0x2b   :  { %v8279_v13 = vld [vmem:[#allocation2 + $0x9c] ss:$24 sps:$4 sm:$0xff]   ;;  %v8282_v15 = vld [vmem:[#allocation2 + $0x98] ss:$24 sps:$4 sm:$0xff]   ;;  %v8285_v17 = vld [vmem:[#allocation2 + $0xcc] ss:$24 sps:$4 sm:$0xff]  }
  0x2c   :  { %510 = vmatpush1.bf16.msra.mxu0 %v8269_v6  ;;  %v8283_v16 = vld [vmem:[#allocation2 + $0xc4] ss:$24 sps:$4 sm:$0xff]   ;;  %v8287_v18 = vld [vmem:[#allocation2 + $0xc0] ss:$24 sps:$4 sm:$0xff]   ;;  %v8289_v20 = vld [vmem:[#allocation2 + $0xf4] ss:$24 sps:$4 sm:$0xff]  }
  0x2d   :  { %663 = vmatpush1.bf16.msra.mxu1 %v8270_v7  ;;  %511 = vmatprep.subr.bf16.mxu0 %v8271_v8  ;;  %v8288_v19 = vld [vmem:[#allocation2 + $0xc8] ss:$24 sps:$4 sm:$0xff]   ;;  %v8291_v21 = vld [vmem:[#allocation2 + $0xfc] ss:$24 sps:$4 sm:$0xff]   ;;  %v8294_v23 = vld [vmem:[#allocation2 + $0xf8] ss:$24 sps:$4 sm:$0xff]  }
  0x2e   :  { %664 = vmatprep.subr.bf16.mxu1 %v8273_v9  ;;  %v8293_v22 = vld [vmem:[#allocation2 + $0xf0] ss:$24 sps:$4 sm:$0xff]   ;;  %v8295_v24 = vld [vmem:[#allocation2 + $0x124] ss:$24 sps:$4 sm:$0xff]   ;;  %v8299_v26 = vld [vmem:[#allocation2 + $0x120] ss:$24 sps:$4 sm:$0xff]  }
  0x2f   :  { %v8297_v25 = vld [vmem:[#allocation2 + $0x12c] ss:$24 sps:$4 sm:$0xff]   ;;  %v8300_v27 = vld [vmem:[#allocation2 + $0x128] ss:$24 sps:$4 sm:$0xff]   ;;  %v64_v29 = vld [vmem:[%s11922_s0 + $0x18] sm:$0xff]  ;;  %vm451_vm0 = vcmask 97280  }
  0x30   :  { %512 = vmatpush1.bf16.msra.mxu0 %v8275_v10  ;;  %v62_v28 = vld [vmem:[%s11922_s0 + $0x8] sm:$0xff]  ;;  %v8303_v31 = vld [vmem:[#allocation2 + $0x15c] ss:$24 sps:$4 sm:$0xff]   ;;  %v8306_v34 = vld [vmem:[#allocation2 + $0x158] ss:$24 sps:$4 sm:$0xff]   ;;  %vm488_vm1 = vcmask 1045504  }
  0x31   :  { %665 = vmatpush1.bf16.msra.mxu1 %v8276_v11  ;;  %513 = vmatprep.subr.bf16.mxu0 %v8277_v12  ;;  %v8301_v30 = vld [vmem:[#allocation2 + $0x154] ss:$24 sps:$4 sm:$0xff]   ;;  %v9403_v32 = vpack.c.bf16 %v64_v29, %v62_v28  ;;  %v8305_v33 = vld [vmem:[#allocation2 + $0x150] ss:$24 sps:$4 sm:$0xff]   ;;  %v61_v39 = vld [vmem:[%s11922_s0] sm:$0xff] }
  0x32   :  { %666 = vmatprep.subr.bf16.mxu1 %v8279_v13  ;;  %v8307_v35 = vld [vmem:[#allocation2 + $0x184] ss:$24 sps:$4 sm:$0x3f]   ;;  %v8311_v37 = vld [vmem:[#allocation2 + $0x180] ss:$24 sps:$4 sm:$0x3f]  }
  0x33   :  { %6881 = vmatprep.mubr.msk.bf16.mxu0 %vm451_vm0, %v9403_v32  ;;  %6894 = vmatprep.mubr.msk.bf16.mxu1 %vm451_vm0, %v9403_v32  ;;  %v8309_v36 = vld [vmem:[#allocation2 + $0x18c] ss:$24 sps:$4 sm:$0x3f]   ;;  %v8312_v38 = vld [vmem:[#allocation2 + $0x188] ss:$24 sps:$4 sm:$0x3f]  }
  0x34   :  { %514 = vmatpush1.bf16.msra.mxu0 %v8281_v14  ;;  %v63_v40 = vld [vmem:[%s11922_s0 + $0x10] sm:$0xff]  ;;  %v490_v41 = vsel %vm488_vm1, %v8311_v37, 0  ;;  %v496_v42 = vsel %vm488_vm1, %v8312_v38, 0  ;;  %v66_v44 = vld [vmem:[%s11922_s0 + $0x28] sm:$0xff]  ;;  %v68_v45 = vld [vmem:[%s11922_s0 + $0x38] sm:$0xff] }
  0x35   :  { %667 = vmatpush1.bf16.msra.mxu1 %v8282_v15  ;;  %515 = vmatprep.subr.bf16.mxu0 %v8283_v16  ;;  %v8315_v43 = vld [vmem:[#allocation2 + $0x14] ss:$24 sps:$4 sm:$0xff]   ;;  %v9425_v46 = vpack.c.bf16 %v63_v40, %v61_v39  ;;  %v8313_v47 = vld [vmem:[#allocation2 + $0x10] ss:$24 sps:$4 sm:$0xff]   ;;  %v9427_v48 = vpack.c.bf16 %v68_v45, %v66_v44  ;;  %v8318_v49 = vld [vmem:[#allocation2 + $0x44] ss:$24 sps:$4 sm:$0xff]  }
  0x36   :  { %668 = vmatprep.subr.bf16.mxu1 %v8285_v17  ;;  %v65_v50 = vld [vmem:[%s11922_s0 + $0x20] sm:$0xff]  ;;  %v67_v51 = vld [vmem:[%s11922_s0 + $0x30] sm:$0xff]  ;;  %v70_v53 = vld [vmem:[%s11922_s0 + $0x48] sm:$0xff] }
  0x37   :  { %v8316_v52 = vld [vmem:[#allocation2 + $0x40] ss:$24 sps:$4 sm:$0xff]   ;;  %v8321_v55 = vld [vmem:[#allocation2 + $0x74] ss:$24 sps:$4 sm:$0xff]   ;;  %v9447_v56 = vpack.c.bf16 %v67_v51, %v65_v50  ;;  %v8319_v58 = vld [vmem:[#allocation2 + $0x70] ss:$24 sps:$4 sm:$0xff]  }
  0x38   :  { %516 = vmatpush1.bf16.msra.mxu0 %v8287_v18  ;;  %v72_v54 = vld [vmem:[%s11922_s0 + $0x58] sm:$0xff]  ;;  %v69_v60 = vld [vmem:[%s11922_s0 + $0x40] sm:$0xff]  ;;  %v71_v61 = vld [vmem:[%s11922_s0 + $0x50] sm:$0xff] }
  0x39   :  { %669 = vmatpush1.bf16.msra.mxu1 %v8288_v19  ;;  %517 = vmatprep.subr.bf16.mxu0 %v8289_v20  ;;  %v9449_v57 = vpack.c.bf16 %v72_v54, %v70_v53  ;;  %v8324_v59 = vld [vmem:[#allocation2 + $0xa4] ss:$24 sps:$4 sm:$0xff]   ;;  %v74_v62 = vld [vmem:[%s11922_s0 + $0x68] sm:$0xff]  ;;  %v8322_v0 = vld [vmem:[#allocation2 + $0xa0] ss:$24 sps:$4 sm:$0xff]   ;;  %v9469_v2 = vpack.c.bf16 %v71_v61, %v69_v60 }
  0x3a   :  { %670 = vmatprep.subr.bf16.mxu1 %v8291_v21  ;;  %v76_v63 = vld [vmem:[%s11922_s0 + $0x78] sm:$0xff]  ;;  %v8327_v1 = vld [vmem:[#allocation2 + $0xd4] ss:$24 sps:$4 sm:$0xff]   ;;  %v8325_v3 = vld [vmem:[#allocation2 + $0xd0] ss:$24 sps:$4 sm:$0xff]  }
  0x3b   :  { %v9471_v4 = vpack.c.bf16 %v76_v63, %v74_v62  ;;  %v8330_v5 = vld [vmem:[#allocation2 + $0x104] ss:$24 sps:$4 sm:$0xff]   ;;  %v75_v7 = vld [vmem:[%s11922_s0 + $0x70] sm:$0xff]  ;;  %v78_v8 = vld [vmem:[%s11922_s0 + $0x88] sm:$0xff] }
  0x3c   :  { %518 = vmatpush1.bf16.msra.mxu0 %v8293_v22  ;;  %v73_v6 = vld [vmem:[%s11922_s0 + $0x60] sm:$0xff]  ;;  %v80_v9 = vld [vmem:[%s11922_s0 + $0x98] sm:$0xff]  ;;  %v8333_v11 = vld [vmem:[#allocation2 + $0x134] ss:$24 sps:$4 sm:$0xff]  }
  0x3d   :  { %671 = vmatpush1.bf16.msra.mxu1 %v8294_v23  ;;  %519 = vmatprep.subr.bf16.mxu0 %v8295_v24  ;;  %v8328_v10 = vld [vmem:[#allocation2 + $0x100] ss:$24 sps:$4 sm:$0xff]   ;;  %v9491_v12 = vpack.c.bf16 %v75_v7, %v73_v6  ;;  %v8331_v13 = vld [vmem:[#allocation2 + $0x130] ss:$24 sps:$4 sm:$0xff]   ;;  %v9493_v14 = vpack.c.bf16 %v80_v9, %v78_v8  ;;  %v8336_v15 = vld [vmem:[#allocation2 + $0x164] ss:$24 sps:$4 sm:$0xff]  }
  0x3e   :  { %672 = vmatprep.subr.bf16.mxu1 %v8297_v25  ;;  %v77_v16 = vld [vmem:[%s11922_s0 + $0x80] sm:$0xff]  ;;  %v79_v17 = vld [vmem:[%s11922_s0 + $0x90] sm:$0xff]  ;;  %v82_v18 = vld [vmem:[%s11922_s0 + $0xa8] sm:$0xff] }
  0x3f   :  { %v84_v19 = vld [vmem:[%s11922_s0 + $0xb8] sm:$0xff]  ;;  %v8337_v21 = vld [vmem:[#allocation2 + $0x194] ss:$24 sps:$4 sm:$0x3f]   ;;  %v9513_v23 = vpack.c.bf16 %v79_v17, %v77_v16  ;;  %v81_v25 = vld [vmem:[%s11922_s0 + $0xa0] sm:$0xff] }
  0x40   :  { %520 = vmatpush1.bf16.msra.mxu0 %v8299_v26  ;;  %v8334_v20 = vld [vmem:[#allocation2 + $0x160] ss:$24 sps:$4 sm:$0xff]   ;;  %v8339_v22 = vld [vmem:[#allocation2 + $0x190] ss:$24 sps:$4 sm:$0x3f]   ;;  %v9515_v24 = vpack.c.bf16 %v84_v19, %v82_v18 }
  0x41   :  { %673 = vmatpush1.bf16.msra.mxu1 %v8300_v27  ;;  %521 = vmatprep.subr.bf16.mxu0 %v8301_v30  ;;  %v83_v26 = vld [vmem:[%s11922_s0 + $0xb0] sm:$0xff]  ;;  %v502_v27 = vsel %vm488_vm1, %v8339_v22, 0  ;;  %v86_v28 = vld [vmem:[%s11922_s0 + $0xc8] sm:$0xff]  ;;  %v88_v29 = vld [vmem:[%s11922_s0 + $0xd8] sm:$0xff] }
  0x42   :  { %674 = vmatprep.subr.bf16.mxu1 %v8303_v31  ;;  %v9537_v30 = vpack.c.bf16 %v83_v26, %v81_v25  ;;  %v9539_v31 = vpack.c.bf16 %v88_v29, %v86_v28  ;;  %v89_v39 = vld [vmem:[%s11922_s0 + $0xe0] sm:$0xff]  ;;  %v91_v40 = vld [vmem:[%s11922_s0 + $0xf0] sm:$0xff]  ;;  %v100_v50 = vld [vmem:[%s11922_s0 + $0x138] sm:$0xff] }
  0x43   :  { %v93_v45 = vld [vmem:[%s11922_s0 + $0x100] sm:$0xff]  ;;  %v99_v54 = vld [vmem:[%s11922_s0 + $0x130] sm:$0xff]  ;;  %v106_v63 = vld [vmem:[%s11922_s0 + $0x168] sm:$0xff] }
  0x44   :  { %522 = vmatpush1.bf16.msra.mxu0 %v8305_v33  ;;  %v85_v33 = vld [vmem:[%s11922_s0 + $0xc0] sm:$0xff]  ;;  %v103_v62 = vld [vmem:[%s11922_s0 + $0x150] sm:$0xff]  ;;  %v8351_v8 = vld [vmem:[%s11925_s3 + $0x36c] ss:$16 sps:$4 sm:$0xff]  }
  0x45   :  { %675 = vmatpush1.bf16.msra.mxu1 %v8306_v34  ;;  %6880 = vmatprep.subr.msk.bf16.mxu0 %vm488_vm1, %v8307_v35  ;;  %v87_v34 = vld [vmem:[%s11922_s0 + $0xd0] sm:$0xff]  ;;  %v90_v35 = vld [vmem:[%s11922_s0 + $0xe8] sm:$0xff]  ;;  %v97_v53 = vld [vmem:[%s11922_s0 + $0x120] sm:$0xff] }
  0x46   :  { %6893 = vmatprep.subr.msk.bf16.mxu1 %vm488_vm1, %v8309_v36  ;;  %v92_v36 = vld [vmem:[%s11922_s0 + $0xf8] sm:$0xff]  ;;  %v9559_v37 = vpack.c.bf16 %v87_v34, %v85_v33  ;;  %v101_v61 = vld [vmem:[%s11922_s0 + $0x140] sm:$0xff]  ;;  %v107_v6 = vld [vmem:[%s11922_s0 + $0x170] sm:$0xff] }
  0x47   :  { %v9561_v38 = vpack.c.bf16 %v92_v36, %v90_v35  ;;  %v8360_v9 = vld [vmem:[%s11925_s3 + $0x304] ss:$16 sps:$4 sm:$0xff]   ;;  %v8364_v17 = vld [vmem:[%s11925_s3 + $0x3c8] ss:$16 sps:$4 sm:$0xff]   ;;  %v8366_v18 = vld [vmem:[%s11925_s3 + $0x3cc] ss:$16 sps:$4 sm:$0xff]  }
  0x48   :  { %524 = vmatpush1.bf16.msra.mxu0 %v490_v41  ;;  %v94_v41 = vld [vmem:[%s11922_s0 + $0x108] sm:$0xff]  ;;  %v8363_v16 = vld [vmem:[%s11925_s3 + $0x324] ss:$16 sps:$4 sm:$0xff]   ;;  %v8373_v22 = vld [vmem:[%s11925_s3 + $0x360] ss:$16 sps:$4 sm:$0xff]  }
  0x49   :  { %677 = vmatpush1.bf16.msra.mxu1 %v496_v42  ;;  %813 = vmatprep.subr.bf16.mxu0 %v8315_v43  ;;  %v96_v42 = vld [vmem:[%s11922_s0 + $0x118] sm:$0xff]  ;;  %v123_v43 = vpack.c.bf16 %v91_v40, %v89_v39  ;;  %v8369_v19 = vld [vmem:[%s11925_s3 + $0x344] ss:$16 sps:$4 sm:$0xff]   ;;  %v8376_v26 = vld [vmem:[%s11925_s3 + $0x380] ss:$16 sps:$4 sm:$0xff]  }
  0x4a   :  { %v126_v44 = vpack.c.bf16 %v96_v42, %v94_v41  ;;  %1860 = vmatprep.subr.bf16.mxu1 %v8360_v9  ;;  %v8378_v25 = vld [vmem:[%s11925_s3 + $0x384] ss:$16 sps:$4 sm:$0xff]   ;;  %v8381_v28 = vld [vmem:[%s11925_s3 + $0x40c] ss:$16 sps:$4 sm:$0xff]   ;;  %v8382_v29 = vld [vmem:[%s11925_s3 + $0x3a0] ss:$16 sps:$4 sm:$0xff]  }
  0x4b   :  { %540 = vmatmul.mubr.bf16.vlgmr.msra.gmra.mrb[0].mxu0 %v9425_v46  ;;  %v8385_v33 = vld [vmem:[%s11925_s3 + $0x428] ss:$16 sps:$4 sm:$0xff]   ;;  %v8387_v34 = vld [vmem:[%s11925_s3 + $0x42c] ss:$16 sps:$4 sm:$0xff]   ;;  %v8388_v35 = vld [vmem:[%s11925_s3 + $0x3c0] ss:$16 sps:$4 sm:$0xff]  }
  0x4c   :  { %693 = vmatmul.mubr.bf16.vlgmr.msra.gmra.mrb[0].mxu1 %v9425_v46  ;;  %814 = vmatpush1.bf16.msra.mxu0 %v8313_v47  ;;  %v95_v47 = vld [vmem:[%s11922_s0 + $0x110] sm:$0xff]  ;;  %v8394_v40 = vld [vmem:[%s11925_s3 + $0x448] ss:$16 sps:$4 sm:$0xff]   ;;  %v8396_v41 = vld [vmem:[%s11925_s3 + $0x44c] ss:$16 sps:$4 sm:$0xff]  }
  0x4d   :  { %6882 = vmatprep.mubr.msk.bf16.mxu0 %vm451_vm0, %v9427_v48  ;;  %6895 = vmatprep.mubr.msk.bf16.mxu1 %vm451_vm0, %v9427_v48  ;;  %v125_v51 = vpack.c.bf16 %v95_v47, %v93_v45  ;;  %v8391_v36 = vld [vmem:[%s11925_s3 + $0x3e0] ss:$16 sps:$4 sm:$0xff]  }
  0x4e   :  { %815 = vmatprep.subr.bf16.mxu0 %v8318_v49  ;;  %v98_v49 = vld [vmem:[%s11922_s0 + $0x128] sm:$0xff] }
  0x50   :  { %816 = vmatpush1.bf16.msra.mxu0 %v8316_v52  ;;  %v128_v52 = vpack.c.bf16 %v100_v50, %v98_v49  ;;  %v8397_v49 = vld [vmem:[%s11925_s3 + $0x400] ss:$16 sps:$4 sm:$0xff]  }
  0x51   :  { %817 = vmatprep.subr.bf16.mxu0 %v8321_v55  ;;  %v102_v55 = vld [vmem:[%s11922_s0 + $0x148] sm:$0xff] }
  0x53   :  { %550 = vmatmul.mubr.bf16.gmra.mrb[4].mxu0 %v9447_v56 }
  0x54   :  { %703 = vmatmul.mubr.bf16.gmra.mrb[4].mxu1 %v9447_v56  ;;  %6883 = vmatprep.mubr.msk.bf16.mxu0 %vm451_vm0, %v9449_v57 }
  0x55   :  { %6896 = vmatprep.mubr.msk.bf16.mxu1 %vm451_vm0, %v9449_v57  ;;  %818 = vmatpush1.bf16.msra.mxu0 %v8319_v58  ;;  %v104_v58 = vld [vmem:[%s11922_s0 + $0x158] sm:$0xff] }
  0x56   :  { %819 = vmatprep.subr.bf16.mxu0 %v8324_v59  ;;  %v127_v59 = vpack.c.bf16 %v99_v54, %v97_v53  ;;  %v130_v60 = vpack.c.bf16 %v104_v58, %v102_v55  ;;  %v8402_v53 = vld [vmem:[%s11925_s3 + $0x46c] ss:$16 sps:$4 sm:$0xff]   ;;  %v8403_v54 = vld [vmem:[%s11925_s3 + $0x420] ss:$16 sps:$4 sm:$0xff]   ;;  %v8405_v55 = vld [vmem:[%s11925_s3 + $0x424] ss:$16 sps:$4 sm:$0xff]  }
  0x59   :  { %820 = vmatpush1.bf16.msra.mxu0 %v8322_v0  ;;  %v108_v0 = vld [vmem:[%s11922_s0 + $0x178] sm:$0xff] }
  0x5a   :  { %821 = vmatprep.subr.bf16.mxu0 %v8327_v1  ;;  %v129_v1 = vpack.c.bf16 %v103_v62, %v101_v61  ;;  %v8408_v62 = vld [vmem:[%s11925_s3 + $0x444] ss:$16 sps:$4 sm:$0xff]  }
  0x5b   :  { %560 = vmatmul.mubr.bf16.gmra.mrb[8].mxu0 %v9469_v2 }
  0x5c   :  { %713 = vmatmul.mubr.bf16.gmra.mrb[8].mxu1 %v9469_v2  ;;  %6884 = vmatprep.mubr.msk.bf16.mxu0 %vm451_vm0, %v9471_v4 }
  0x5d   :  { %6897 = vmatprep.mubr.msk.bf16.mxu1 %vm451_vm0, %v9471_v4  ;;  %822 = vmatpush1.bf16.msra.mxu0 %v8325_v3  ;;  %v132_v3 = vpack.c.bf16 %v108_v0, %v106_v63 }
  0x5e   :  { %823 = vmatprep.subr.bf16.mxu0 %v8330_v5  ;;  %v105_v5 = vld [vmem:[%s11922_s0 + $0x160] sm:$0xff] }
  0x5f   :  { %v131_v7 = vpack.c.bf16 %v107_v6, %v105_v5  ;;  %v8409_v6 = vld [vmem:[%s11925_s3 + $0x488] ss:$16 sps:$4 sm:$0xff]  }
  0x61   :  { %824 = vmatpush1.bf16.msra.mxu0 %v8328_v10  ;;  %v8352_v10 = vld [vmem:[%s11925_s3 + $0x388] ss:$16 sps:$4 sm:$0xff]  }
  0x62   :  { %825 = vmatprep.subr.bf16.mxu0 %v8333_v11  ;;  %v8354_v11 = vld [vmem:[%s11925_s3 + $0x38c] ss:$16 sps:$4 sm:$0xff]  }
  0x63   :  { %570 = vmatmul.mubr.bf16.gmra.mrb[12].mxu0 %v9491_v12 }
  0x64   :  { %723 = vmatmul.mubr.bf16.gmra.mrb[12].mxu1 %v9491_v12  ;;  %6885 = vmatprep.mubr.msk.bf16.mxu0 %vm451_vm0, %v9493_v14 }
  0x65   :  { %6898 = vmatprep.mubr.msk.bf16.mxu1 %vm451_vm0, %v9493_v14  ;;  %826 = vmatpush1.bf16.msra.mxu0 %v8331_v13  ;;  %v8358_v13 = vld [vmem:[%s11925_s3 + $0x300] ss:$16 sps:$4 sm:$0xff]  }
  0x66   :  { %827 = vmatprep.subr.bf16.mxu0 %v8336_v15  ;;  %v8355_v15 = vld [vmem:[%s11925_s3 + $0x3a8] ss:$16 sps:$4 sm:$0xff]   ;;  %1861 = vmatpush1.bf16.msra.mxu1 %v8358_v13  ;;  %v8417_v13 = vld [vmem:[%s11925_s3 + $0x4ac] ss:$16 sps:$4 sm:$0xff]  }
  0x67   :  { %1862 = vmatprep.subr.bf16.mxu1 %v8363_v16  ;;  %v8421_v16 = vld [vmem:[%s11925_s3 + $0x4a0] ss:$16 sps:$4 sm:$0xff]  }
  0x69   :  { %828 = vmatpush1.bf16.msra.mxu0 %v8334_v20  ;;  %v8367_v20 = vld [vmem:[%s11925_s3 + $0x340] ss:$16 sps:$4 sm:$0xff]  }
  0x6a   :  { %6906 = vmatprep.subr.msk.bf16.mxu0 %vm488_vm1, %v8337_v21  ;;  %v8372_v21 = vld [vmem:[%s11925_s3 + $0x3ec] ss:$16 sps:$4 sm:$0xff]  }
  0x6b   :  { %580 = vmatmul.mubr.bf16.gmra.mrb[16].mxu0 %v9513_v23 }
  0x6c   :  { %733 = vmatmul.mubr.bf16.gmra.mrb[16].mxu1 %v9513_v23  ;;  %6886 = vmatprep.mubr.msk.bf16.mxu0 %vm451_vm0, %v9515_v24 }
  0x6d   :  { %6899 = vmatprep.mubr.msk.bf16.mxu1 %vm451_vm0, %v9515_v24  ;;  %830 = vmatpush1.bf16.msra.mxu0 %v502_v27  ;;  %v8379_v27 = vld [vmem:[%s11925_s3 + $0x408] ss:$16 sps:$4 sm:$0xff]  }
  0x73   :  { %590 = vmatmul.mubr.bf16.gmra.mrb[20].mxu0 %v9537_v30 }
  0x74   :  { %743 = vmatmul.mubr.bf16.gmra.mrb[20].mxu1 %v9537_v30  ;;  %6887 = vmatprep.mubr.msk.bf16.mxu0 %vm451_vm0, %v9539_v31 }
  0x75   :  { %6900 = vmatprep.mubr.msk.bf16.mxu1 %vm451_vm0, %v9539_v31 }
  0x7b   :  { %600 = vmatmul.mubr.bf16.gmra.mrb[24].mxu0 %v9559_v37 }
  0x7c   :  { %753 = vmatmul.mubr.bf16.gmra.mrb[24].mxu1 %v9559_v37  ;;  %6888 = vmatprep.mubr.msk.bf16.mxu0 %vm451_vm0, %v9561_v38 }
  0x7d   :  { %6901 = vmatprep.mubr.msk.bf16.mxu1 %vm451_vm0, %v9561_v38 }
  0x83   :  { %610 = vmatmul.mubr.bf16.gmra.mrb[28].mxu0 %v123_v43 }
  0x84   :  { %763 = vmatmul.mubr.bf16.gmra.mrb[28].mxu1 %v123_v43  ;;  %6889 = vmatprep.mubr.msk.bf16.mxu0 %vm451_vm0, %v126_v44 }
  0x85   :  { %6902 = vmatprep.mubr.msk.bf16.mxu1 %vm451_vm0, %v126_v44 }
  0x8b   :  { %620 = vmatmul.mubr.bf16.gmra.mrb[32].mxu0 %v125_v51 }
  0x8c   :  { %773 = vmatmul.mubr.bf16.gmra.mrb[32].mxu1 %v125_v51  ;;  %6890 = vmatprep.mubr.msk.bf16.mxu0 %vm451_vm0, %v128_v52 }
  0x8d   :  { %6903 = vmatprep.mubr.msk.bf16.mxu1 %vm451_vm0, %v128_v52 }
  0x93   :  { %630 = vmatmul.mubr.bf16.gmra.mrb[36].mxu0 %v127_v59 }
  0x94   :  { %783 = vmatmul.mubr.bf16.gmra.mrb[36].mxu1 %v127_v59  ;;  %6891 = vmatprep.mubr.msk.bf16.mxu0 %vm451_vm0, %v130_v60 }
  0x95   :  { %6904 = vmatprep.mubr.msk.bf16.mxu1 %vm451_vm0, %v130_v60 }
  0x9b   :  { %640 = vmatmul.mubr.bf16.gmra.mrb[40].mxu0 %v129_v1 }
  0x9c   :  { %793 = vmatmul.mubr.bf16.gmra.mrb[40].mxu1 %v129_v1  ;;  %6892 = vmatprep.mubr.msk.bf16.mxu0 %vm451_vm0, %v132_v3 }
  0x9d   :  { %6905 = vmatprep.mubr.msk.bf16.mxu1 %vm451_vm0, %v132_v3 }
  0xa3   :  { %650 = vmatmul.mubr.bf16.gmra.mrb[44].mxu0 %v131_v7 }
  0xa4   :  { %803 = vmatmul.mubr.bf16.gmra.mrb[44].mxu1 %v131_v7  ;;  %6907 = vmatprep.mubr.msk.bf16.mxu0 %vm451_vm0, %v9403_v32  ;;  %v8340_v32 = vld [vmem:[%s11925_s3 + $0x308] ss:$16 sps:$4 sm:$0xff]  }
  0xab   :  { %846 = vmatmul.mubr.bf16.vlgmr.msra.gmra.mrb[48].mxu0 %v9425_v46  ;;  %v8342_v46 = vld [vmem:[%s11925_s3 + $0x30c] ss:$16 sps:$4 sm:$0xff]  }
  0xac   :  { %6908 = vmatprep.mubr.msk.bf16.mxu0 %vm451_vm0, %v9427_v48  ;;  %2006 = vmatprep.subr.bf16.mxu0 %v8342_v46  ;;  %v8343_v48 = vld [vmem:[%s11925_s3 + $0x328] ss:$16 sps:$4 sm:$0xff]   ;;  %v8414_v46 = vld [vmem:[%s11925_s3 + $0x464] ss:$16 sps:$4 sm:$0xff]  }
  0xad   :  { %2007 = vmatpush1.bf16.msra.mxu0 %v8340_v32  ;;  %v8412_v32 = vld [vmem:[%s11925_s3 + $0x460] ss:$16 sps:$4 sm:$0xff]  }
  0xb3   :  { %856 = vmatmul.mubr.bf16.gmra.mrb[52].mxu0 %v9447_v56  ;;  %v8345_v56 = vld [vmem:[%s11925_s3 + $0x32c] ss:$16 sps:$4 sm:$0xff]  }
  0xb4   :  { %6909 = vmatprep.mubr.msk.bf16.mxu0 %vm451_vm0, %v9449_v57  ;;  %2008 = vmatprep.subr.bf16.mxu0 %v8345_v56  ;;  %v8346_v57 = vld [vmem:[%s11925_s3 + $0x348] ss:$16 sps:$4 sm:$0xff]  }
  0xb5   :  { %2009 = vmatpush1.bf16.msra.mxu0 %v8343_v48 }
  0xbb   :  { %866 = vmatmul.mubr.bf16.gmra.mrb[56].mxu0 %v9469_v2  ;;  %v8348_v2 = vld [vmem:[%s11925_s3 + $0x34c] ss:$16 sps:$4 sm:$0xff]  }
  0xbc   :  { %6910 = vmatprep.mubr.msk.bf16.mxu0 %vm451_vm0, %v9471_v4  ;;  %2010 = vmatprep.subr.bf16.mxu0 %v8348_v2  ;;  %v8349_v4 = vld [vmem:[%s11925_s3 + $0x368] ss:$16 sps:$4 sm:$0xff]  }
  0xbd   :  { %2011 = vmatpush1.bf16.msra.mxu0 %v8346_v57 }
  0xbe   :  { %2012 = vmatprep.subr.bf16.mxu0 %v8351_v8 }
  0xc1   :  { %2013 = vmatpush1.bf16.msra.mxu0 %v8349_v4  ;;  %v8420_v4 = vld [vmem:[%s11925_s3 + $0x484] ss:$16 sps:$4 sm:$0xff]  }
  0xc2   :  { %2014 = vmatprep.subr.bf16.mxu0 %v8354_v11 }
  0xc3   :  { %876 = vmatmul.mubr.bf16.gmra.mrb[60].mxu0 %v9491_v12  ;;  %v8357_v12 = vld [vmem:[%s11925_s3 + $0x3ac] ss:$16 sps:$4 sm:$0xff]  }
  0xc4   :  { %6911 = vmatprep.mubr.msk.bf16.mxu0 %vm451_vm0, %v9493_v14  ;;  %v8361_v14 = vld [vmem:[%s11925_s3 + $0x320] ss:$16 sps:$4 sm:$0xff]  }
  0xc5   :  { %2015 = vmatpush1.bf16.msra.mxu0 %v8352_v10  ;;  %1863 = vmatpush1.bf16.msra.mxu1 %v8361_v14  ;;  %v8418_v10 = vld [vmem:[%s11925_s3 + $0x480] ss:$16 sps:$4 sm:$0xff]   ;;  %v8423_v14 = vld [vmem:[%s11925_s3 + $0x4a4] ss:$16 sps:$4 sm:$0xff]  }
  0xc6   :  { %2016 = vmatprep.subr.bf16.mxu0 %v8357_v12  ;;  %1864 = vmatprep.subr.bf16.mxu1 %v8369_v19 }
  0xc9   :  { %2017 = vmatpush1.bf16.msra.mxu0 %v8355_v15  ;;  %1865 = vmatpush1.bf16.msra.mxu1 %v8367_v20  ;;  %v8415_v15 = vld [vmem:[%s11925_s3 + $0x4a8] ss:$16 sps:$4 sm:$0xff]  }
  0xca   :  { %2018 = vmatprep.subr.bf16.mxu0 %v8366_v18 }
  0xcb   :  { %886 = vmatmul.mubr.bf16.gmra.mrb[64].mxu0 %v9513_v23  ;;  %v8370_v23 = vld [vmem:[%s11925_s3 + $0x3e8] ss:$16 sps:$4 sm:$0xff]  }
  0xcc   :  { %6912 = vmatprep.mubr.msk.bf16.mxu0 %vm451_vm0, %v9515_v24  ;;  %v8375_v24 = vld [vmem:[%s11925_s3 + $0x364] ss:$16 sps:$4 sm:$0xff]  }
  0xcd   :  { %2019 = vmatpush1.bf16.msra.mxu0 %v8364_v17  ;;  %1866 = vmatprep.subr.bf16.mxu1 %v8375_v24 }
  0xce   :  { %2020 = vmatprep.subr.bf16.mxu0 %v8372_v21  ;;  %1867 = vmatpush1.bf16.msra.mxu1 %v8373_v22  ;;  %v8426_v21 = vld [vmem:[%s11925_s3 + $0x4cc] ss:$16 sps:$4 sm:$0xff]   ;;  %v8429_v22 = vld [vmem:[%s11925_s3 + $0x4c4] ss:$16 sps:$4 sm:$0xff]  }
  0xcf   :  { %1868 = vmatprep.subr.bf16.mxu1 %v8378_v25  ;;  %v8424_v25 = vld [vmem:[%s11925_s3 + $0x4c8] ss:$16 sps:$4 sm:$0xff]  }
  0xd1   :  { %2021 = vmatpush1.bf16.msra.mxu0 %v8370_v23 }
  0xd2   :  { %1869 = vmatpush1.bf16.msra.mxu1 %v8376_v26  ;;  %2022 = vmatprep.subr.bf16.mxu0 %v8381_v28  ;;  %v8427_v26 = vld [vmem:[%s11925_s3 + $0x4c0] ss:$16 sps:$4 sm:$0xff]  }
  0xd3   :  { %896 = vmatmul.mubr.bf16.gmra.mrb[68].mxu0 %v9537_v30  ;;  %v8384_v30 = vld [vmem:[%s11925_s3 + $0x3a4] ss:$16 sps:$4 sm:$0xff]  }
  0xd4   :  { %6913 = vmatprep.mubr.msk.bf16.mxu0 %vm451_vm0, %v9539_v31  ;;  %1870 = vmatprep.subr.bf16.mxu1 %v8384_v30  ;;  %v8390_v31 = vld [vmem:[%s11925_s3 + $0x3c4] ss:$16 sps:$4 sm:$0xff]  }
  0xd5   :  { %2023 = vmatpush1.bf16.msra.mxu0 %v8379_v27  ;;  %v8435_v30 = vld [vmem:[%s11925_s3 + $0x4e4] ss:$16 sps:$4 sm:$0xff]  }
  0xd6   :  { %1871 = vmatpush1.bf16.msra.mxu1 %v8382_v29  ;;  %2024 = vmatprep.subr.bf16.mxu0 %v8387_v34  ;;  %v8432_v29 = vld [vmem:[%s11925_s3 + $0x4ec] ss:$16 sps:$4 sm:$0xff]  }
  0xd7   :  { %1872 = vmatprep.subr.bf16.mxu1 %v8390_v31  ;;  %v8430_v31 = vld [vmem:[%s11925_s3 + $0x4e8] ss:$16 sps:$4 sm:$0xff]  }
  0xd9   :  { %2025 = vmatpush1.bf16.msra.mxu0 %v8385_v33  ;;  %v8433_v33 = vld [vmem:[%s11925_s3 + $0x4e0] ss:$16 sps:$4 sm:$0xff]  }
  0xda   :  { %1873 = vmatpush1.bf16.msra.mxu1 %v8388_v35  ;;  %2026 = vmatprep.subr.bf16.mxu0 %v8396_v41  ;;  %v8441_v41 = vld [vmem:[%s11925_s3 + $0x50c] ss:$16 sps:$4 sm:$0xff]  }
  0xdb   :  { %906 = vmatmul.mubr.bf16.gmra.mrb[72].mxu0 %v9559_v37  ;;  %v8393_v37 = vld [vmem:[%s11925_s3 + $0x3e4] ss:$16 sps:$4 sm:$0xff]  }
  0xdc   :  { %6914 = vmatprep.mubr.msk.bf16.mxu0 %vm451_vm0, %v9561_v38  ;;  %1874 = vmatprep.subr.bf16.mxu1 %v8393_v37 }
  0xdd   :  { %2027 = vmatpush1.bf16.msra.mxu0 %v8394_v40  ;;  %v8438_v40 = vld [vmem:[%s11925_s3 + $0x504] ss:$16 sps:$4 sm:$0xff]  }
  0xde   :  { %1875 = vmatpush1.bf16.msra.mxu1 %v8391_v36  ;;  %2028 = vmatprep.subr.bf16.mxu0 %v8402_v53 }
  0xe3   :  { %916 = vmatmul.mubr.bf16.gmra.mrb[76].mxu0 %v123_v43 }
  0xe4   :  { %6915 = vmatprep.mubr.msk.bf16.mxu0 %vm451_vm0, %v126_v44  ;;  %v8399_v44 = vld [vmem:[%s11925_s3 + $0x404] ss:$16 sps:$4 sm:$0xff]  }
  0xe5   :  { %1876 = vmatprep.subr.bf16.mxu1 %v8399_v44 }
  0xe6   :  { %1877 = vmatpush1.bf16.msra.mxu1 %v8397_v49 }
  0xe7   :  { %1878 = vmatprep.subr.bf16.mxu1 %v8405_v55 }
  0xea   :  { %1879 = vmatpush1.bf16.msra.mxu1 %v8403_v54  ;;  %v1076_v54 = vlaneseq }
  0xeb   :  { %926 = vmatmul.mubr.bf16.gmra.mrb[80].mxu0 %v125_v51  ;;  %1880 = vmatprep.subr.bf16.mxu1 %v8408_v62 }
  0xec   :  { %6916 = vmatprep.mubr.msk.bf16.mxu0 %vm451_vm0, %v128_v52  ;;  %v8400_v52 = vld [vmem:[%s11925_s3 + $0x468] ss:$16 sps:$4 sm:$0xff]  }
  0xed   :  { %2029 = vmatpush1.bf16.msra.mxu0 %v8400_v52 }
  0xf3   :  { %936 = vmatmul.mubr.bf16.gmra.mrb[84].mxu0 %v127_v59 }
  0xf4   :  { %6917 = vmatprep.mubr.msk.bf16.mxu0 %vm451_vm0, %v130_v60 }
  0xfb   :  { %946 = vmatmul.mubr.bf16.gmra.mrb[88].mxu0 %v129_v1  ;;  %v8406_v1 = vld [vmem:[%s11925_s3 + $0x440] ss:$16 sps:$4 sm:$0xff]  }
  0xfc   :  { %6918 = vmatprep.mubr.msk.bf16.mxu0 %vm451_vm0, %v132_v3  ;;  %1881 = vmatpush1.bf16.msra.mxu1 %v8406_v1 }
  0xfd   :  { %1882 = vmatprep.subr.bf16.mxu1 %v8414_v46  ;;  %v9948_v46 = vshrl.u32 %v1076_v54, 7 }
 0x100   :  { %1883 = vmatpush1.bf16.msra.mxu1 %v8412_v32 }
 0x101   :  { %1884 = vmatprep.subr.bf16.mxu1 %v8420_v4 }
 0x103   :  { %956 = vmatmul.mubr.bf16.gmra.mrb[92].mxu0 %v131_v7  ;;  %v8411_v7 = vld [vmem:[%s11925_s3 + $0x48c] ss:$16 sps:$4 sm:$0xff]  }
 0x104   :  { %2030 = vmatprep.subr.bf16.mxu0 %v8411_v7  ;;  %1885 = vmatpush1.bf16.msra.mxu1 %v8418_v10 }
 0x105   :  { %2031 = vmatpush1.bf16.msra.mxu0 %v8409_v6  ;;  %1886 = vmatprep.subr.bf16.mxu1 %v8423_v14  ;;  %v9960_v14 = vld [vmem:[%s11924_s2] sm:$0x7] }
 0x106   :  { %2032 = vmatprep.subr.bf16.mxu0 %v8417_v13  ;;  %v9955_v13 = vsub.s32 0, %v9948_v46 }
 0x108   :  { %1887 = vmatpush1.bf16.msra.mxu1 %v8421_v16  ;;  %11976 = vst [vmem:[#allocation17_spill] sm:$0xff] %v9955_v13 }
 0x109   :  { %2033 = vmatpush1.bf16.msra.mxu0 %v8415_v15  ;;  %1888 = vmatprep.subr.bf16.mxu1 %v8429_v22 }
 0x10a   :  { %2034 = vmatprep.subr.bf16.mxu0 %v8426_v21 }
 0x10c   :  { %1889 = vmatpush1.bf16.msra.mxu1 %v8427_v26 }
 0x10d   :  { %2035 = vmatpush1.bf16.msra.mxu0 %v8424_v25  ;;  %1890 = vmatprep.subr.bf16.mxu1 %v8435_v30 }
 0x10e   :  { %2036 = vmatprep.subr.bf16.mxu0 %v8432_v29 }
 0x110   :  { %1891 = vmatpush1.bf16.msra.mxu1 %v8433_v33 }
 0x111   :  { %2037 = vmatpush1.bf16.msra.mxu0 %v8430_v31  ;;  %1933 = vmatprep.subr.bf16.mxu1 %v8438_v40  ;;  %v9974_v31 = vrot.slane %v9960_v14, %v9955_v13 }
 0x112   :  { %2079 = vmatprep.subr.bf16.mxu0 %v8441_v41 }
 0x11e   :  { %v9766_v38 = vpop.f32.mrb[0].mxu0 }
 0x11f   :  { %v9768_v39 = vpop.f32.mrb[0].mxu1  ;;  %v9776_v42 = vpop.f32.mrb[1].mxu0 }
 0x120   :  { %11967 = vst [vmem:[#allocation8_spill] sm:$0xff] %v9768_v39  ;;  %v9778_v43 = vpop.f32.mrb[1].mxu1  ;;  %v9783_v45 = vpop.f32.mrb[2].mxu0 }
 0x121   :  { %v9785_v47 = vpop.f32.mrb[2].mxu1  ;;  %v9790_v50 = vpop.f32.mrb[3].mxu0 }
 0x122   :  { %v9792_v51 = vpop.f32.mrb[3].mxu1 }
 0x126   :  { %v9806_v58 = vpop.f32.mrb[4].mxu0 }
 0x127   :  { %v9808_v59 = vpop.f32.mrb[4].mxu1  ;;  %v9810_v60 = vpop.f32.mrb[5].mxu0 }
 0x128   :  { %11968 = vst [vmem:[#allocation9_spill] sm:$0xff] %v9808_v59  ;;  %v9812_v61 = vpop.f32.mrb[5].mxu1  ;;  %v9817_v63 = vpop.f32.mrb[6].mxu0 }
 0x129   :  { %v9819_v0 = vpop.f32.mrb[6].mxu1  ;;  %v9824_v3 = vpop.f32.mrb[7].mxu0 }
 0x12a   :  { %v9826_v5 = vpop.f32.mrb[7].mxu1 }
 0x12e   :  { %v9840_v48 = vpop.f32.mrb[8].mxu0 }
 0x12f   :  { %v9842_v56 = vpop.f32.mrb[8].mxu1  ;;  %v9844_v57 = vpop.f32.mrb[9].mxu0 }
 0x130   :  { %v9846_v2 = vpop.f32.mrb[9].mxu1  ;;  %v9851_v8 = vpop.f32.mrb[10].mxu0 }
 0x131   :  { %v9853_v9 = vpop.f32.mrb[10].mxu1  ;;  %v9858_v11 = vpop.f32.mrb[11].mxu0 }
 0x132   :  { %v9860_v12 = vpop.f32.mrb[11].mxu1 }
 0x136   :  { %v9874_v17 = vpop.f32.mrb[12].mxu0 }
 0x137   :  { %v9876_v18 = vpop.f32.mrb[12].mxu1  ;;  %v9878_v19 = vpop.f32.mrb[13].mxu0 }
 0x138   :  { %v9880_v20 = vpop.f32.mrb[13].mxu1  ;;  %v9888_v23 = vpop.f32.mrb[14].mxu0 }
 0x139   :  { %v9890_v24 = vpop.f32.mrb[14].mxu1  ;;  %v9898_v27 = vpop.f32.mrb[15].mxu0 }
 0x13a   :  { %v9900_v28 = vpop.f32.mrb[15].mxu1 }
 0x13e   :  { %v9914_v34 = vpop.f32.mrb[16].mxu0 }
 0x13f   :  { %v9916_v35 = vpop.f32.mrb[16].mxu1  ;;  %v9918_v36 = vpop.f32.mrb[17].mxu0 }
 0x140   :  { %11969 = vst [vmem:[#allocation10_spill] sm:$0xff] %v9916_v35  ;;  %v9920_v37 = vpop.f32.mrb[17].mxu1  ;;  %v9928_v44 = vpop.f32.mrb[18].mxu0 }
 0x141   :  { %v9930_v49 = vpop.f32.mrb[18].mxu1  ;;  %v9932_v52 = vpop.f32.mrb[19].mxu0 }
 0x142   :  { %11970 = vst [vmem:[#allocation11_spill] sm:$0xff] %v9930_v49  ;;  %11971 = vst [vmem:[#allocation12_spill] sm:$0xff] %v9932_v52  ;;  %v9934_v53 = vpop.f32.mrb[19].mxu1 }
 0x146   :  { %v9936_v55 = vpop.f32.mrb[20].mxu0 }
 0x147   :  { %v9938_v62 = vpop.f32.mrb[20].mxu1  ;;  %v9940_v1 = vpop.f32.mrb[21].mxu0 }
 0x148   :  { %11972 = vst [vmem:[#allocation13_spill] sm:$0xff] %v9938_v62  ;;  %11973 = vst [vmem:[#allocation14_spill] sm:$0xff] %v9940_v1  ;;  %v9942_v6 = vpop.f32.mrb[21].mxu1  ;;  %v9944_v7 = vpop.f32.mrb[22].mxu0  ;;  %v10153_v62 = vsub.s32 1, %v9948_v46 }
 0x149   :  { %v9946_v32 = vpop.f32.mrb[22].mxu1  ;;  %v9950_v4 = vpop.f32.mrb[23].mxu0 }
 0x14a   :  { %11974 = vst [vmem:[#allocation15_spill] sm:$0xff] %v9946_v32  ;;  %11975 = vst [vmem:[#allocation16_spill] sm:$0xff] %v9950_v4  ;;  %v9952_v10 = vpop.f32.mrb[23].mxu1  ;;  %v10158_v49 = vrot.slane %v9960_v14, %v10153_v62 }
 0x14b   :  { %12005 = vst [vmem:[#allocation46_spill] sm:$0xff] %v10153_v62 }
 0x14e   :  { %v601_v15 = vpop.f32.mrb[24].mxu0 }
 0x14f   :  { %v9962_v16 = vpop.f32.mrb[24].mxu1  ;;  %v966_v21 = vmax.f32 %v9766_v38, %v601_v15  ;;  %v9967_v25 = vpop.f32.mrb[25].mxu0 }
 0x150   :  { %11977 = vst [vmem:[#allocation18_spill] sm:$0xff] %v9962_v16  ;;  %11978 = vst [vmem:[#allocation19_spill] sm:$0xff] %v9967_v25  ;;  %v756_v26 = vpop.f32.mrb[25].mxu1  ;;  %v605_v33 = vpop.f32.mrb[26].mxu0 }
 0x151   :  { %v969_v30 = vmax.f32 %v9778_v43, %v756_v26  ;;  %v9976_v40 = vpop.f32.mrb[26].mxu1  ;;  %v972_v38 = vmax.f32 %v9783_v45, %v605_v33  ;;  %v9981_v54 = vpop.f32.mrb[27].mxu0 }
 0x152   :  { %v760_v15 = vpop.f32.mrb[27].mxu1 }
 0x153   :  { %v1038_v22 = vmax.f32 %v966_v21, %v969_v30  ;;  %v975_v43 = vmax.f32 %v9792_v51, %v760_v15 }
 0x155   :  { %v1091_v26 = vadd.f32 %v9974_v31, %v1038_v22  ;;  %v1041_v13 = vmax.f32 %v972_v38, %v975_v43 }
 0x156   :  { %v611_v39 = vpop.f32.mrb[28].mxu0 }
 0x157   :  { %v1094_v16 = vadd.f32 %v9974_v31, %v1041_v13  ;;  %v9988_v25 = vpop.f32.mrb[28].mxu1  ;;  %v978_v45 = vmax.f32 %v9806_v58, %v611_v39  ;;  %v9993_v41 = vpop.f32.mrb[29].mxu0  ;;  %v1127_v30 = vmax.f32 %v1091_v26, 0.0 }
 0x158   :  { %11979 = vst [vmem:[#allocation20_spill] sm:$0xff] %v9988_v25  ;;  %v766_v21 = vpop.f32.mrb[29].mxu1  ;;  %v615_v38 = vpop.f32.mrb[30].mxu0 }
 0x159   :  { %v1130_v29 = vmax.f32 %v1094_v16, 0.0  ;;  %v981_v22 = vmax.f32 %v9812_v61, %v766_v21  ;;  %v9998_v13 = vpop.f32.mrb[30].mxu1  ;;  %v984_v15 = vmax.f32 %v9817_v63, %v615_v38  ;;  %v10003_v58 = vpop.f32.mrb[31].mxu0 }
 0x15a   :  { %v770_v43 = vpop.f32.mrb[31].mxu1 }
 0x15b   :  { %v10005_v33 = vpack.c.bf16 %v1130_v29, %v1127_v30  ;;  %v1044_v26 = vmax.f32 %v978_v45, %v981_v22  ;;  %v987_v51 = vmax.f32 %v9826_v5, %v770_v43 }
 0x15d   :  { %11980 = vst [vmem:[#allocation21_spill] sm:$0xff] %v10005_v33  ;;  %v1097_v61 = vadd.f32 %v9974_v31, %v1044_v26  ;;  %v1047_v21 = vmax.f32 %v984_v15, %v987_v51 }
 0x15e   :  { %v621_v38 = vpop.f32.mrb[32].mxu0 }
 0x15f   :  { %v1133_v25 = vmax.f32 %v1097_v61, 0.0  ;;  %v1100_v63 = vadd.f32 %v9974_v31, %v1047_v21  ;;  %v10012_v59 = vpop.f32.mrb[32].mxu1  ;;  %v990_v39 = vmax.f32 %v9840_v48, %v621_v38  ;;  %v10017_v45 = vpop.f32.mrb[33].mxu0 }
 0x160   :  { %v776_v22 = vpop.f32.mrb[33].mxu1  ;;  %v625_v43 = vpop.f32.mrb[34].mxu0 }
 0x161   :  { %v10019_v16 = vpack.c.bf16 %v1133_v25, %v1130_v29  ;;  %v1136_v5 = vmax.f32 %v1100_v63, 0.0  ;;  %v993_v15 = vmax.f32 %v9846_v2, %v776_v22  ;;  %v10024_v26 = vpop.f32.mrb[34].mxu1  ;;  %v996_v61 = vmax.f32 %v9851_v8, %v625_v43  ;;  %v10029_v21 = vpop.f32.mrb[35].mxu0 }
 0x162   :  { %v780_v38 = vpop.f32.mrb[35].mxu1 }
 0x163   :  { %11981 = vst [vmem:[#allocation22_spill] sm:$0xff] %v10019_v16  ;;  %v10031_v30 = vpack.c.bf16 %v1136_v5, %v1133_v25  ;;  %v1050_v29 = vmax.f32 %v990_v39, %v993_v15  ;;  %v999_v51 = vmax.f32 %v9860_v12, %v780_v38 }
 0x165   :  { %11982 = vst [vmem:[#allocation23_spill] sm:$0xff] %v10031_v30  ;;  %v1103_v2 = vadd.f32 %v9974_v31, %v1050_v29  ;;  %v1053_v22 = vmax.f32 %v996_v61, %v999_v51 }
 0x166   :  { %v631_v43 = vpop.f32.mrb[36].mxu0 }
 0x167   :  { %v1139_v33 = vmax.f32 %v1103_v2, 0.0  ;;  %v1106_v8 = vadd.f32 %v9974_v31, %v1053_v22  ;;  %v10038_v16 = vpop.f32.mrb[36].mxu1  ;;  %v1002_v48 = vmax.f32 %v9874_v17, %v631_v43  ;;  %v10043_v39 = vpop.f32.mrb[37].mxu0 }
 0x168   :  { %v786_v15 = vpop.f32.mrb[37].mxu1  ;;  %v635_v38 = vpop.f32.mrb[38].mxu0 }
 0x169   :  { %v10045_v63 = vpack.c.bf16 %v1139_v33, %v1136_v5  ;;  %v1142_v12 = vmax.f32 %v1106_v8, 0.0  ;;  %v1005_v61 = vmax.f32 %v9880_v20, %v786_v15  ;;  %v10050_v29 = vpop.f32.mrb[38].mxu1  ;;  %v1008_v2 = vmax.f32 %v9888_v23, %v635_v38  ;;  %v10055_v22 = vpop.f32.mrb[39].mxu0 }
 0x16a   :  { %v790_v43 = vpop.f32.mrb[39].mxu1 }
 0x16b   :  { %11983 = vst [vmem:[#allocation24_spill] sm:$0xff] %v10045_v63  ;;  %v10057_v25 = vpack.c.bf16 %v1142_v12, %v1139_v33  ;;  %v1056_v5 = vmax.f32 %v1002_v48, %v1005_v61  ;;  %v1011_v51 = vmax.f32 %v9900_v28, %v790_v43 }
 0x16d   :  { %11984 = vst [vmem:[#allocation25_spill] sm:$0xff] %v10057_v25  ;;  %v1109_v20 = vadd.f32 %v9974_v31, %v1056_v5  ;;  %v1059_v15 = vmax.f32 %v1008_v2, %v1011_v51 }
 0x16e   :  { %v641_v38 = vpop.f32.mrb[40].mxu0 }
 0x16f   :  { %v1145_v30 = vmax.f32 %v1109_v20, 0.0  ;;  %v1112_v23 = vadd.f32 %v9974_v31, %v1059_v15  ;;  %v10064_v63 = vpop.f32.mrb[40].mxu1  ;;  %v1014_v17 = vmax.f32 %v9914_v34, %v641_v38  ;;  %v10069_v48 = vpop.f32.mrb[41].mxu0 }
 0x170   :  { %11985 = vst [vmem:[#allocation26_spill] sm:$0xff] %v10064_v63  ;;  %11986 = vst [vmem:[#allocation27_spill] sm:$0xff] %v10069_v48  ;;  %v796_v61 = vpop.f32.mrb[41].mxu1  ;;  %v645_v43 = vpop.f32.mrb[42].mxu0 }
 0x171   :  { %v10071_v8 = vpack.c.bf16 %v1145_v30, %v1142_v12  ;;  %v1148_v28 = vmax.f32 %v1112_v23, 0.0  ;;  %v1017_v2 = vmax.f32 %v9920_v37, %v796_v61  ;;  %v10076_v5 = vpop.f32.mrb[42].mxu1  ;;  %v1020_v20 = vmax.f32 %v9928_v44, %v645_v43  ;;  %v10081_v15 = vpop.f32.mrb[43].mxu0 }
 0x172   :  { %11988 = vst [vmem:[#allocation29_spill] sm:$0xff] %v10076_v5  ;;  %11989 = vst [vmem:[#allocation30_spill] sm:$0xff] %v10081_v15  ;;  %v800_v38 = vpop.f32.mrb[43].mxu1 }
 0x173   :  { %11987 = vst [vmem:[#allocation28_spill] sm:$0xff] %v10071_v8  ;;  %v10083_v33 = vpack.c.bf16 %v1148_v28, %v1145_v30  ;;  %v1062_v12 = vmax.f32 %v1014_v17, %v1017_v2  ;;  %v1023_v51 = vmax.f32 %v9934_v53, %v800_v38 }
 0x175   :  { %11990 = vst [vmem:[#allocation31_spill] sm:$0xff] %v10083_v33  ;;  %v1115_v37 = vadd.f32 %v9974_v31, %v1062_v12  ;;  %v1065_v61 = vmax.f32 %v1020_v20, %v1023_v51 }
 0x176   :  { %v651_v43 = vpop.f32.mrb[44].mxu0 }
 0x177   :  { %v1151_v25 = vmax.f32 %v1115_v37, 0.0  ;;  %v1118_v44 = vadd.f32 %v9974_v31, %v1065_v61  ;;  %v10090_v8 = vpop.f32.mrb[44].mxu1  ;;  %v1026_v34 = vmax.f32 %v9936_v55, %v651_v43  ;;  %v10095_v17 = vpop.f32.mrb[45].mxu0 }
 0x178   :  { %11991 = vst [vmem:[#allocation32_spill] sm:$0xff] %v10090_v8  ;;  %11992 = vst [vmem:[#allocation33_spill] sm:$0xff] %v10095_v17  ;;  %v806_v2 = vpop.f32.mrb[45].mxu1  ;;  %v655_v38 = vpop.f32.mrb[46].mxu0  ;;  %v1086_v17 = vsub.s32 2, %v9948_v46  ;;  %v12009_v46 = vld [vmem:[#allocation18_spill] sm:$0xff] }
 0x179   :  { %v10097_v23 = vpack.c.bf16 %v1151_v25, %v1148_v28  ;;  %v1154_v53 = vmax.f32 %v1118_v44, 0.0  ;;  %v1029_v20 = vmax.f32 %v9942_v6, %v806_v2  ;;  %v10102_v12 = vpop.f32.mrb[46].mxu1  ;;  %v1032_v37 = vmax.f32 %v9944_v7, %v655_v38  ;;  %v10107_v61 = vpop.f32.mrb[47].mxu0 }
 0x17a   :  { %11994 = vst [vmem:[#allocation35_spill] sm:$0xff] %v10102_v12  ;;  %11995 = vst [vmem:[#allocation36_spill] sm:$0xff] %v10107_v61  ;;  %v810_v43 = vpop.f32.mrb[47].mxu1 }
 0x17b   :  { %11993 = vst [vmem:[#allocation34_spill] sm:$0xff] %v10097_v23  ;;  %v10109_v30 = vpack.c.bf16 %v1154_v53, %v1151_v25  ;;  %v1068_v28 = vmax.f32 %v1026_v34, %v1029_v20  ;;  %v1035_v51 = vmax.f32 %v9952_v10, %v810_v43 }
 0x17d   :  { %11996 = vst [vmem:[#allocation37_spill] sm:$0xff] %v10109_v30  ;;  %v1121_v6 = vadd.f32 %v9974_v31, %v1068_v28  ;;  %v1071_v2 = vmax.f32 %v1032_v37, %v1035_v51 }
 0x17e   :  { %v847_v38 = vpop.f32.mrb[48].mxu0 }
 0x17f   :  { %v1157_v33 = vmax.f32 %v1121_v6, 0.0  ;;  %v1124_v7 = vadd.f32 %v9974_v31, %v1071_v2  ;;  %v849_v23 = vpop.f32.mrb[49].mxu0 }
 0x180   :  { %v851_v12 = vpop.f32.mrb[50].mxu0 }
 0x181   :  { %v1160_v55 = vmax.f32 %v1124_v7, 0.0  ;;  %v10116_v32 = vpack.c.bf16 %v1157_v33, %v1154_v53  ;;  %v853_v25 = vpop.f32.mrb[51].mxu0 }
 0x183   :  { %11997 = vst [vmem:[#allocation38_spill] sm:$0xff] %v10116_v32  ;;  %v10118_v30 = vpack.c.bf16 %v1160_v55, %v1157_v33 }
 0x185   :  { %11998 = vst [vmem:[#allocation39_spill] sm:$0xff] %v10118_v30 }
 0x186   :  { %v857_v34 = vpop.f32.mrb[52].mxu0 }
 0x187   :  { %v859_v20 = vpop.f32.mrb[53].mxu0 }
 0x188   :  { %v861_v44 = vpop.f32.mrb[54].mxu0 }
 0x189   :  { %v863_v61 = vpop.f32.mrb[55].mxu0 }
 0x18e   :  { %v10120_v10 = vpop.f32.mrb[56].mxu0 }
 0x18f   :  { %v10122_v43 = vpop.f32.mrb[57].mxu0 }
 0x190   :  { %v10124_v51 = vpop.f32.mrb[58].mxu0 }
 0x191   :  { %v10126_v31 = vpop.f32.mrb[59].mxu0 }
 0x196   :  { %v10128_v37 = vpop.f32.mrb[60].mxu0 }
 0x197   :  { %v10130_v28 = vpop.f32.mrb[61].mxu0 }
 0x198   :  { %v10132_v53 = vpop.f32.mrb[62].mxu0 }
 0x199   :  { %v10134_v33 = vpop.f32.mrb[63].mxu0 }
 0x19e   :  { %v10136_v55 = vpop.f32.mrb[64].mxu0 }
 0x19f   :  { %v10138_v6 = vpop.f32.mrb[65].mxu0 }
 0x1a0   :  { %v10140_v2 = vpop.f32.mrb[66].mxu0 }
 0x1a1   :  { %11999 = vst [vmem:[#allocation40_spill] sm:$0xff] %v10140_v2  ;;  %v10142_v7 = vpop.f32.mrb[67].mxu0  ;;  %v12008_v2 = vld [vmem:[#allocation8_spill] sm:$0xff] }
 0x1a2   :  { %12000 = vst [vmem:[#allocation41_spill] sm:$0xff] %v10142_v7  ;;  %v12010_v48 = vmax.f32 %v12008_v2, %v12009_v46 }
 0x1a6   :  { %v10144_v30 = vpop.f32.mrb[68].mxu0 }
 0x1a7   :  { %12001 = vst [vmem:[#allocation42_spill] sm:$0xff] %v10144_v30  ;;  %v10146_v32 = vpop.f32.mrb[69].mxu0  ;;  %v10161_v30 = vrot.slane %v9960_v14, %v1086_v17  ;;  %v12012_v17 = vmax.f32 %v9785_v47, %v9976_v40 }
 0x1a8   :  { %12002 = vst [vmem:[#allocation43_spill] sm:$0xff] %v10146_v32  ;;  %v10148_v4 = vpop.f32.mrb[70].mxu0 }
 0x1a9   :  { %12003 = vst [vmem:[#allocation44_spill] sm:$0xff] %v10148_v4  ;;  %v10150_v8 = vpop.f32.mrb[71].mxu0  ;;  %v12006_v4 = vld [vmem:[#allocation19_spill] sm:$0xff] }
 0x1aa   :  { %12004 = vst [vmem:[#allocation45_spill] sm:$0xff] %v10150_v8  ;;  %v12007_v8 = vmax.f32 %v9776_v42, %v12006_v4 }
 0x1ae   :  { %v907_v1 = vpop.f32.mrb[72].mxu0 }
 0x1af   :  { %v970_v5 = vmax.f32 %v847_v38, %v907_v1  ;;  %v909_v15 = vpop.f32.mrb[73].mxu0 }
 0x1b0   :  { %v971_v52 = vmax.f32 %v849_v23, %v909_v15  ;;  %v911_v32 = vpop.f32.mrb[74].mxu0  ;;  %v12011_v15 = vmax.f32 %v9790_v50, %v9981_v54  ;;  %v12013_v54 = vmax.f32 %v9810_v60, %v9993_v41  ;;  %v12018_v41 = vmax.f32 %v9819_v0, %v9998_v13  ;;  %v8439_v0 = vld [vmem:[%s11925_s3 + $0x508] ss:$16 sps:$4 sm:$0xff]  }
 0x1b1   :  { %v1039_v7 = vmax.f32 %v12007_v8, %v970_v5  ;;  %v976_v63 = vmax.f32 %v851_v12, %v911_v32  ;;  %v913_v35 = vpop.f32.mrb[75].mxu0 }
 0x1b2   :  { %v1040_v1 = vmax.f32 %v12010_v48, %v971_v52  ;;  %v977_v38 = vmax.f32 %v853_v25, %v913_v35 }
 0x1b3   :  { %v1092_v62 = vadd.f32 %v10158_v49, %v1039_v7  ;;  %v1042_v23 = vmax.f32 %v12011_v15, %v976_v63 }
 0x1b4   :  { %v1093_v14 = vadd.f32 %v10161_v30, %v1040_v1  ;;  %v1043_v42 = vmax.f32 %v12012_v17, %v977_v38  ;;  %v12014_v1 = vld [vmem:[#allocation9_spill] sm:$0xff]  ;;  %v12015_v38 = vld [vmem:[#allocation20_spill] sm:$0xff] }
 0x1b5   :  { %v1095_v32 = vadd.f32 %v10158_v49, %v1042_v23  ;;  %v1128_v5 = vmax.f32 %v1092_v62, 0.0  ;;  %v12016_v62 = vmax.f32 %v12014_v1, %v12015_v38 }
 0x1b6   :  { %v1096_v4 = vadd.f32 %v10161_v30, %v1043_v42  ;;  %v917_v8 = vpop.f32.mrb[76].mxu0  ;;  %v1129_v12 = vmax.f32 %v1093_v14, 0.0 }
 0x1b7   :  { %v1131_v52 = vmax.f32 %v1095_v32, 0.0  ;;  %v982_v35 = vmax.f32 %v857_v34, %v917_v8  ;;  %v919_v48 = vpop.f32.mrb[77].mxu0 }
 0x1b8   :  { %v1132_v25 = vmax.f32 %v1096_v4, 0.0  ;;  %v983_v2 = vmax.f32 %v859_v20, %v919_v48  ;;  %v921_v50 = vpop.f32.mrb[78].mxu0  ;;  %v12017_v20 = vmax.f32 %v9824_v3, %v10003_v58  ;;  %v8436_v3 = vld [vmem:[%s11925_s3 + $0x500] ss:$16 sps:$4 sm:$0xff]  }
 0x1b9   :  { %v1045_v63 = vmax.f32 %v12013_v54, %v982_v35  ;;  %v988_v7 = vmax.f32 %v861_v44, %v921_v50  ;;  %v923_v47 = vpop.f32.mrb[79].mxu0  ;;  %v10182_v40 = vpack.c.bf16 %v1131_v52, %v1128_v5  ;;  %v12019_v54 = vmax.f32 %v9844_v57, %v10017_v45 }
 0x1ba   :  { %v10184_v46 = vpack.c.bf16 %v1132_v25, %v1129_v12  ;;  %v1046_v15 = vmax.f32 %v12016_v62, %v983_v2  ;;  %v989_v34 = vmax.f32 %v863_v61, %v923_v47  ;;  %v12020_v47 = vmax.f32 %v9842_v56, %v10012_v59  ;;  %v12021_v62 = vld [vmem:[#allocation22_spill] sm:$0xff]  ;;  %v8445_v59 = vld [vmem:[%s11925_s3 + $0x528] ss:$16 sps:$4 sm:$0xff]  }
 0x1bb   :  { %v1098_v23 = vadd.f32 %v10158_v49, %v1045_v63  ;;  %v1048_v14 = vmax.f32 %v12017_v20, %v988_v7  ;;  %v12022_v45 = vmax.f32 %v9858_v11, %v10029_v21  ;;  %v8450_v11 = vld [vmem:[%s11925_s3 + $0x544] ss:$16 sps:$4 sm:$0xff]   ;;  %v8453_v21 = vld [vmem:[%s11925_s3 + $0x54c] ss:$16 sps:$4 sm:$0xff]  }
 0x1bc   :  { %v1099_v60 = vadd.f32 %v10161_v30, %v1046_v15  ;;  %v1049_v44 = vmax.f32 %v12018_v41, %v989_v34  ;;  %v8442_v15 = vld [vmem:[%s11925_s3 + $0x520] ss:$16 sps:$4 sm:$0xff]  }
 0x1bd   :  { %v1134_v17 = vmax.f32 %v1098_v23, 0.0  ;;  %v1101_v42 = vadd.f32 %v10158_v49, %v1048_v14 }
 0x1be   :  { %v1135_v32 = vmax.f32 %v1099_v60, 0.0  ;;  %v1102_v4 = vadd.f32 %v10161_v30, %v1049_v44  ;;  %v927_v8 = vpop.f32.mrb[80].mxu0 }
 0x1bf   :  { %v1137_v61 = vmax.f32 %v1101_v42, 0.0  ;;  %v994_v5 = vmax.f32 %v10120_v10, %v927_v8  ;;  %v929_v35 = vpop.f32.mrb[81].mxu0  ;;  %v1272_v48 = vpack.c.bf16 %v1134_v17, %v1131_v52  ;;  %v8444_v10 = vld [vmem:[%s11925_s3 + $0x524] ss:$16 sps:$4 sm:$0xff]   ;;  %v8447_v52 = vld [vmem:[%s11925_s3 + $0x52c] ss:$16 sps:$4 sm:$0xff]  }
 0x1c0   :  { %v10206_v13 = vpack.c.bf16 %v1135_v32, %v1132_v25  ;;  %v1138_v58 = vmax.f32 %v1102_v4, 0.0  ;;  %v995_v12 = vmax.f32 %v10122_v43, %v929_v35  ;;  %v931_v2 = vpop.f32.mrb[82].mxu0  ;;  %v8448_v42 = vld [vmem:[%s11925_s3 + $0x540] ss:$16 sps:$4 sm:$0xff]   ;;  %v8459_v35 = vld [vmem:[%s11925_s3 + $0x56c] ss:$16 sps:$4 sm:$0xff]  }
 0x1c1   :  { %v10215_v50 = vpack.c.bf16 %v1137_v61, %v1134_v17  ;;  %v1051_v63 = vmax.f32 %v12019_v54, %v994_v5  ;;  %v1000_v25 = vmax.f32 %v10124_v51, %v931_v2  ;;  %v933_v7 = vpop.f32.mrb[83].mxu0  ;;  %1892 = vmatprep.mubr.bf16.mxu1 %v1272_v48  ;;  %2038 = vmatprep.mubr.bf16.mxu0 %v1272_v48  ;;  %v12026_v54 = vld [vmem:[#allocation24_spill] sm:$0xff] }
 0x1c2   :  { %v10221_v43 = vpack.c.bf16 %v1138_v58, %v1135_v32  ;;  %v1052_v1 = vmax.f32 %v12020_v47, %v995_v12  ;;  %v1001_v38 = vmax.f32 %v10126_v31, %v933_v7  ;;  %1893 = vmatmul.mubr.bf16.vlgmr.msra.gmra.mrb[48].mxu1 %v12021_v62  ;;  %2039 = vmatmul.mubr.bf16.vlgmr.msra.gmra.mrb[96].mxu0 %v12021_v62  ;;  %v8451_v32 = vld [vmem:[%s11925_s3 + $0x548] ss:$16 sps:$4 sm:$0xff]  }
 0x1c3   :  { %v1104_v57 = vadd.f32 %v10158_v49, %v1051_v63  ;;  %v1054_v51 = vmax.f32 %v12022_v45, %v1000_v25  ;;  %1934 = vmatpush1.bf16.msra.mxu1 %v8436_v3  ;;  %2080 = vmatpush1.bf16.msra.mxu0 %v8439_v0  ;;  %v12023_v31 = vmax.f32 %v9853_v9, %v10024_v26  ;;  %v8454_v63 = vld [vmem:[%s11925_s3 + $0x560] ss:$16 sps:$4 sm:$0xff]  }
 0x1c4   :  { %v1105_v56 = vadd.f32 %v10161_v30, %v1052_v1  ;;  %1935 = vmatprep.subr.bf16.mxu1 %v8444_v10  ;;  %2081 = vmatprep.subr.bf16.mxu0 %v8447_v52  ;;  %v12024_v3 = vmax.f32 %v9878_v19, %v10043_v39  ;;  %v12025_v2 = vmax.f32 %v9876_v18, %v10038_v16  ;;  %v8457_v18 = vld [vmem:[%s11925_s3 + $0x568] ss:$16 sps:$4 sm:$0xff]  }
 0x1c5   :  { %v1055_v34 = vmax.f32 %v12023_v31, %v1001_v38  ;;  %v1140_v23 = vmax.f32 %v1104_v57, 0.0  ;;  %v1107_v20 = vadd.f32 %v10158_v49, %v1054_v51  ;;  %v12027_v39 = vmax.f32 %v9898_v27, %v10055_v22  ;;  %v8462_v27 = vld [vmem:[%s11925_s3 + $0x584] ss:$16 sps:$4 sm:$0xff]   ;;  %v8465_v22 = vld [vmem:[%s11925_s3 + $0x58c] ss:$16 sps:$4 sm:$0xff]  }
 0x1c6   :  { %v1141_v14 = vmax.f32 %v1105_v56, 0.0  ;;  %v937_v41 = vpop.f32.mrb[84].mxu0  ;;  %v8460_v51 = vld [vmem:[%s11925_s3 + $0x580] ss:$16 sps:$4 sm:$0xff]  }
 0x1c7   :  { %v1108_v60 = vadd.f32 %v10161_v30, %v1055_v34  ;;  %v10251_v44 = vpack.c.bf16 %v1140_v23, %v1137_v61  ;;  %v1143_v9 = vmax.f32 %v1107_v20, 0.0  ;;  %v1006_v26 = vmax.f32 %v10128_v37, %v937_v41  ;;  %1936 = vmatpush1.bf16.msra.mxu1 %v8442_v15  ;;  %2082 = vmatpush1.bf16.msra.mxu0 %v8445_v59  ;;  %v939_v17 = vpop.f32.mrb[85].mxu0  ;;  %v8456_v37 = vld [vmem:[%s11925_s3 + $0x564] ss:$16 sps:$4 sm:$0xff]   ;;  %v8463_v15 = vld [vmem:[%s11925_s3 + $0x588] ss:$16 sps:$4 sm:$0xff]  }
 0x1c8   :  { %v10260_v4 = vpack.c.bf16 %v1141_v14, %v1138_v58  ;;  %v1007_v61 = vmax.f32 %v10130_v28, %v939_v17  ;;  %v941_v5 = vpop.f32.mrb[86].mxu0  ;;  %1937 = vmatprep.subr.bf16.mxu1 %v8450_v11  ;;  %2083 = vmatprep.subr.bf16.mxu0 %v8453_v21  ;;  %v8471_v11 = vld [vmem:[%s11925_s3 + $0x5ac] ss:$16 sps:$4 sm:$0xff]   ;;  %v12033_v17 = vld [vmem:[#allocation26_spill] sm:$0xff] }
 0x1c9   :  { %v1144_v8 = vmax.f32 %v1108_v60, 0.0  ;;  %v10269_v48 = vpack.c.bf16 %v1143_v9, %v1140_v23  ;;  %v1057_v0 = vmax.f32 %v12024_v3, %v1006_v26  ;;  %v1012_v58 = vmax.f32 %v10132_v53, %v941_v5  ;;  %v943_v28 = vpop.f32.mrb[87].mxu0  ;;  %1902 = vmatprep.mubr.bf16.mxu1 %v10251_v44  ;;  %2048 = vmatprep.mubr.bf16.mxu0 %v10251_v44  ;;  %v12029_v23 = vld [vmem:[#allocation27_spill] sm:$0xff]  ;;  %v12031_v60 = vld [vmem:[#allocation40_spill] sm:$0xff]  ;;  %v12032_v26 = vld [vmem:[#allocation10_spill] sm:$0xff] }
 0x1ca   :  { %v1058_v10 = vmax.f32 %v12025_v2, %v1007_v61  ;;  %v1013_v52 = vmax.f32 %v10134_v33, %v943_v28  ;;  %1903 = vmatmul.mubr.bf16.gmra.mrb[52].mxu1 %v12026_v54  ;;  %2049 = vmatmul.mubr.bf16.gmra.mrb[100].mxu0 %v12026_v54  ;;  %v12028_v33 = vmax.f32 %v9890_v24, %v10050_v29  ;;  %v12036_v5 = vld [vmem:[#allocation28_spill] sm:$0xff]  ;;  %v8469_v28 = vld [vmem:[%s11925_s3 + $0x5a8] ss:$16 sps:$4 sm:$0xff]  }
 0x1cb   :  { %v10277_v12 = vpack.c.bf16 %v1144_v8, %v1141_v14  ;;  %v1110_v19 = vadd.f32 %v10158_v49, %v1057_v0  ;;  %v1060_v53 = vmax.f32 %v12027_v39, %v1012_v58  ;;  %1938 = vmatpush1.bf16.msra.mxu1 %v8448_v42  ;;  %2084 = vmatpush1.bf16.msra.mxu0 %v8451_v32  ;;  %v8466_v58 = vld [vmem:[%s11925_s3 + $0x5a0] ss:$16 sps:$4 sm:$0xff]  }
 0x1cc   :  { %v1111_v16 = vadd.f32 %v10161_v30, %v1058_v10  ;;  %v1061_v25 = vmax.f32 %v12028_v33, %v1013_v52  ;;  %1939 = vmatprep.subr.bf16.mxu1 %v8456_v37  ;;  %2085 = vmatprep.subr.bf16.mxu0 %v8459_v35  ;;  %v12030_v20 = vmax.f32 %v9918_v36, %v12029_v23  ;;  %v12037_v37 = vld [vmem:[#allocation12_spill] sm:$0xff]  ;;  %v12038_v35 = vld [vmem:[#allocation30_spill] sm:$0xff]  ;;  %v12040_v10 = vld [vmem:[#allocation11_spill] sm:$0xff] }
 0x1cd   :  { %v1146_v7 = vmax.f32 %v1110_v19, 0.0  ;;  %v1113_v47 = vadd.f32 %v10158_v49, %v1060_v53  ;;  %v12034_v42 = vmax.f32 %v12032_v26, %v12033_v17  ;;  %v12039_v3 = vmax.f32 %v12037_v37, %v12038_v35  ;;  %v12041_v52 = vld [vmem:[#allocation29_spill] sm:$0xff]  ;;  %v8474_v53 = vld [vmem:[%s11925_s3 + $0x5c4] ss:$16 sps:$4 sm:$0xff]  }
 0x1ce   :  { %v1147_v1 = vmax.f32 %v1111_v16, 0.0  ;;  %v1114_v38 = vadd.f32 %v10161_v30, %v1061_v25  ;;  %v947_v62 = vpop.f32.mrb[88].mxu0  ;;  %v12042_v19 = vmax.f32 %v12040_v10, %v12041_v52  ;;  %v12045_v23 = vld [vmem:[#allocation14_spill] sm:$0xff]  ;;  %v12049_v17 = vld [vmem:[#allocation13_spill] sm:$0xff] }
 0x1cf   :  { %v10307_v57 = vpack.c.bf16 %v1146_v7, %v1143_v9  ;;  %v1149_v24 = vmax.f32 %v1113_v47, 0.0  ;;  %v1018_v29 = vmax.f32 %v10136_v55, %v947_v62  ;;  %1940 = vmatpush1.bf16.msra.mxu1 %v8454_v63  ;;  %2086 = vmatpush1.bf16.msra.mxu0 %v8457_v18  ;;  %v949_v45 = vpop.f32.mrb[89].mxu0  ;;  %v8468_v55 = vld [vmem:[%s11925_s3 + $0x5a4] ss:$16 sps:$4 sm:$0xff]   ;;  %v8477_v63 = vld [vmem:[%s11925_s3 + $0x5cc] ss:$16 sps:$4 sm:$0xff]  }
 0x1d0   :  { %v10316_v59 = vpack.c.bf16 %v1147_v1, %v1144_v8  ;;  %v1150_v56 = vmax.f32 %v1114_v38, 0.0  ;;  %v1019_v31 = vmax.f32 %v10138_v6, %v949_v45  ;;  %v951_v34 = vpop.f32.mrb[90].mxu0  ;;  %1941 = vmatprep.subr.bf16.mxu1 %v8462_v27  ;;  %2087 = vmatprep.subr.bf16.mxu0 %v8465_v22  ;;  %v12035_v8 = vld [vmem:[#allocation41_spill] sm:$0xff]  ;;  %v12043_v47 = vld [vmem:[#allocation42_spill] sm:$0xff] }
 0x1d1   :  { %v10325_v21 = vpack.c.bf16 %v1149_v24, %v1146_v7  ;;  %v1063_v14 = vmax.f32 %v12030_v20, %v1018_v29  ;;  %v1024_v41 = vmax.f32 %v12031_v60, %v951_v34  ;;  %v953_v6 = vpop.f32.mrb[91].mxu0  ;;  %1912 = vmatprep.mubr.bf16.mxu1 %v10307_v57  ;;  %2058 = vmatprep.mubr.bf16.mxu0 %v10307_v57  ;;  %v8472_v62 = vld [vmem:[%s11925_s3 + $0x5c0] ss:$16 sps:$4 sm:$0xff]   ;;  %v8475_v29 = vld [vmem:[%s11925_s3 + $0x5c8] ss:$16 sps:$4 sm:$0xff]  }
 0x1d2   :  { %v10333_v9 = vpack.c.bf16 %v1150_v56, %v1147_v1  ;;  %v1064_v32 = vmax.f32 %v12034_v42, %v1019_v31  ;;  %v1025_v61 = vmax.f32 %v12035_v8, %v953_v6  ;;  %1913 = vmatmul.mubr.bf16.gmra.mrb[56].mxu1 %v12036_v5  ;;  %2059 = vmatmul.mubr.bf16.gmra.mrb[104].mxu0 %v12036_v5  ;;  %v8480_v34 = vld [vmem:[%s11925_s3 + $0x5e4] ss:$16 sps:$4 sm:$0xff]   ;;  %v12046_v20 = vld [vmem:[#allocation33_spill] sm:$0xff] }
 0x1d3   :  { %v1116_v36 = vadd.f32 %v10158_v49, %v1063_v14  ;;  %v1066_v0 = vmax.f32 %v12039_v3, %v1024_v41  ;;  %1942 = vmatpush1.bf16.msra.mxu1 %v8460_v51  ;;  %2088 = vmatpush1.bf16.msra.mxu0 %v8463_v15  ;;  %v12044_v15 = vld [vmem:[#allocation43_spill] sm:$0xff]  ;;  %v12048_v60 = vld [vmem:[#allocation44_spill] sm:$0xff]  ;;  %v12053_v37 = vld [vmem:[#allocation34_spill] sm:$0xff] }
 0x1d4   :  { %v1117_v2 = vadd.f32 %v10161_v30, %v1064_v32  ;;  %v1067_v39 = vmax.f32 %v12042_v19, %v1025_v61  ;;  %1943 = vmatprep.subr.bf16.mxu1 %v8468_v55  ;;  %2089 = vmatprep.subr.bf16.mxu0 %v8471_v11  ;;  %v8483_v55 = vld [vmem:[%s11925_s3 + $0x5ec] ss:$16 sps:$4 sm:$0xff]   ;;  %v12050_v42 = vld [vmem:[#allocation32_spill] sm:$0xff]  ;;  %v8481_v10 = vld [vmem:[%s11925_s3 + $0x5e8] ss:$16 sps:$4 sm:$0xff]  }
 0x1d5   :  { %v1152_v18 = vmax.f32 %v1116_v36, 0.0  ;;  %v1119_v16 = vadd.f32 %v10158_v49, %v1066_v0  ;;  %v12051_v32 = vmax.f32 %v12049_v17, %v12050_v42  ;;  %v12052_v61 = vld [vmem:[#allocation45_spill] sm:$0xff]  ;;  %v12054_v3 = vld [vmem:[#allocation16_spill] sm:$0xff]  ;;  %v12057_v19 = vld [vmem:[#allocation15_spill] sm:$0xff] }
 0x1d6   :  { %v1153_v33 = vmax.f32 %v1117_v2, 0.0  ;;  %v1120_v25 = vadd.f32 %v10161_v30, %v1067_v39  ;;  %v957_v27 = vpop.f32.mrb[92].mxu0  ;;  %v12055_v0 = vld [vmem:[#allocation36_spill] sm:$0xff]  ;;  %v12058_v39 = vld [vmem:[#allocation35_spill] sm:$0xff] }
 0x1d7   :  { %v10363_v22 = vpack.c.bf16 %v1152_v18, %v1149_v24  ;;  %v1155_v7 = vmax.f32 %v1119_v16, 0.0  ;;  %v1030_v1 = vmax.f32 %v12043_v47, %v957_v27  ;;  %1944 = vmatpush1.bf16.msra.mxu1 %v8466_v58  ;;  %2090 = vmatpush1.bf16.msra.mxu0 %v8469_v28  ;;  %v959_v38 = vpop.f32.mrb[93].mxu0  ;;  %v12056_v58 = vmax.f32 %v12054_v3, %v12055_v0  ;;  %v8478_v2 = vld [vmem:[%s11925_s3 + $0x5e0] ss:$16 sps:$4 sm:$0xff]   ;;  %v8489_v16 = vld [vmem:[%s11925_s3 + $0x204] ss:$16 sps:$4 sm:$0xff]  }
 0x1d8   :  { %v10372_v45 = vpack.c.bf16 %v1153_v33, %v1150_v56  ;;  %v1156_v51 = vmax.f32 %v1120_v25, 0.0  ;;  %v1031_v24 = vmax.f32 %v12044_v15, %v959_v38  ;;  %v961_v31 = vpop.f32.mrb[94].mxu0  ;;  %1945 = vmatprep.subr.bf16.mxu1 %v8474_v53  ;;  %2091 = vmatprep.subr.bf16.mxu0 %v8477_v63  ;;  %v12047_v56 = vmax.f32 %v12045_v23, %v12046_v20  ;;  %v8493_v23 = vld [vmem:[%s11925_s3 + $0x220] ss:$16 sps:$4 sm:$0xff]   ;;  %v8510_v17 = vld [vmem:[%s11925_s3 + $0x84] ss:$16 sps:$4 sm:$0xff]  }
 0x1d9   :  { %v10381_v11 = vpack.c.bf16 %v1155_v7, %v1152_v18  ;;  %v1036_v41 = vmax.f32 %v12048_v60, %v961_v31  ;;  %v963_v6 = vpop.f32.mrb[95].mxu0  ;;  %1922 = vmatprep.mubr.bf16.mxu1 %v10363_v22  ;;  %2068 = vmatprep.mubr.bf16.mxu0 %v10363_v22  ;;  %v12059_v53 = vmax.f32 %v12057_v19, %v12058_v39  ;;  %v8486_v18 = vld [vmem:[%s11925_s3 + $0x4] ss:$16 sps:$4 sm:$0xff]   ;;  %v9322_v27 = vmov 0   ;;  %v8496_v20 = vld [vmem:[%s11925_s3 + $0x40] ss:$16 sps:$4 sm:$0xff]  }
 0x1da   :  { %v1069_v14 = vmax.f32 %v12047_v56, %v1030_v1  ;;  %v10389_v26 = vpack.c.bf16 %v1156_v51, %v1153_v33  ;;  %v1070_v8 = vmax.f32 %v12051_v32, %v1031_v24  ;;  %v1037_v36 = vmax.f32 %v12052_v61, %v963_v6  ;;  %1923 = vmatmul.mubr.bf16.gmra.mrb[60].mxu1 %v12053_v37  ;;  %v8495_v24 = vld [vmem:[%s11925_s3 + $0x224] ss:$16 sps:$4 sm:$0xff]   ;;  %v8499_v56 = vld [vmem:[%s11925_s3 + $0x240] ss:$16 sps:$4 sm:$0xff]  }
 0x1db   :  { %2069 = vmatmul.mubr.bf16.gmra.mrb[108].mxu0 %v12053_v37  ;;  %v1072_v28 = vmax.f32 %v12056_v58, %v1036_v41  ;;  %1946 = vmatpush1.bf16.msra.mxu1 %v8472_v62  ;;  %v8484_v62 = vld [vmem:[%s11925_s3] ss:$16 sps:$4 sm:$0xff]   ;;  %v8507_v60 = vld [vmem:[%s11925_s3 + $0x264] ss:$16 sps:$4 sm:$0xff]  }
 0x1dc   :  { %v1122_v35 = vadd.f32 %v10158_v49, %v1069_v14  ;;  %2092 = vmatpush1.bf16.msra.mxu0 %v8475_v29  ;;  %v1123_v52 = vadd.f32 %v10161_v30, %v1070_v8  ;;  %v1073_v63 = vmax.f32 %v12059_v53, %v1037_v36  ;;  %1947 = vmatprep.subr.bf16.mxu1 %v8480_v34  ;;  %v8487_v29 = vld [vmem:[%s11925_s3 + $0x200] ss:$16 sps:$4 sm:$0xff]   ;;  %v8504_v14 = vld [vmem:[%s11925_s3 + $0x64] ss:$16 sps:$4 sm:$0xff]  }
 0x1dd   :  { %2093 = vmatprep.subr.bf16.mxu0 %v8483_v55  ;;  %v1125_v25 = vadd.f32 %v10158_v49, %v1072_v28  ;;  %1965 = vmatprep.mubr.bf16.mxu1 %v9322_v27  ;;  %v8490_v55 = vld [vmem:[%s11925_s3 + $0x20] ss:$16 sps:$4 sm:$0xff]   ;;  %v8513_v42 = vld [vmem:[%s11925_s3 + $0x284] ss:$16 sps:$4 sm:$0xff]  }
 0x1de   :  { %v1158_v33 = vmax.f32 %v1122_v35, 0.0  ;;  %2111 = vmatprep.mubr.bf16.mxu0 %v9322_v27  ;;  %v1159_v47 = vmax.f32 %v1123_v52, 0.0  ;;  %v1126_v1 = vadd.f32 %v10161_v30, %v1073_v63  ;;  %v8492_v30 = vld [vmem:[%s11925_s3 + $0x24] ss:$16 sps:$4 sm:$0xff]   ;;  %v8502_v41 = vld [vmem:[%s11925_s3 + $0x60] ss:$16 sps:$4 sm:$0xff]  }
 0x1df   :  { %v1161_v38 = vmax.f32 %v1125_v25, 0.0  ;;  %1948 = vmatpush1.bf16.msra.mxu1 %v8478_v2  ;;  %v8505_v6 = vld [vmem:[%s11925_s3 + $0x260] ss:$16 sps:$4 sm:$0xff]   ;;  %v8516_v61 = vld [vmem:[%s11925_s3 + $0xa4] ss:$16 sps:$4 sm:$0xff]  }
 0x1e0   :  { %2094 = vmatpush1.bf16.msra.mxu0 %v8481_v10  ;;  %v10427_v49 = vpack.c.bf16 %v1158_v33, %v1155_v7  ;;  %v1162_v15 = vmax.f32 %v1126_v1, 0.0  ;;  %2705 = vmatprep.subr.bf16.mxu1 %v8489_v16  ;;  %v10435_v31 = vpack.c.bf16 %v1159_v47, %v1156_v51  ;;  %v8498_v51 = vld [vmem:[%s11925_s3 + $0x44] ss:$16 sps:$4 sm:$0xff]   ;;  %v8508_v32 = vld [vmem:[%s11925_s3 + $0x80] ss:$16 sps:$4 sm:$0xff]  }
 0x1e1   :  { %2632 = vmatprep.subr.bf16.mxu0 %v8486_v18  ;;  %v10437_v34 = vpack.c.bf16 %v1161_v38, %v1158_v33  ;;  %v8511_v8 = vld [vmem:[%s11925_s3 + $0x280] ss:$16 sps:$4 sm:$0xff]   ;;  %v8519_v36 = vld [vmem:[%s11925_s3 + $0x2a4] ss:$16 sps:$4 sm:$0xff]  }
 0x1e2   :  { %1966 = vmatmul.mubr.bf16.vlgmr.msra.gmra.mrb[48].mxu1 %v10206_v13  ;;  %v10441_v7 = vpack.c.bf16 %v1162_v15, %v1159_v47  ;;  %v8514_v35 = vld [vmem:[%s11925_s3 + $0xa0] ss:$16 sps:$4 sm:$0xff]   ;;  %v8522_v0 = vld [vmem:[%s11925_s3 + $0xc4] ss:$16 sps:$4 sm:$0xff]  }
 0x1e3   :  { %2112 = vmatmul.mubr.bf16.vlgmr.msra.gmra.mrb[96].mxu0 %v10206_v13  ;;  %2706 = vmatpush1.bf16.msra.mxu1 %v8487_v29  ;;  %v8501_v13 = vld [vmem:[%s11925_s3 + $0x244] ss:$16 sps:$4 sm:$0xff]   ;;  %v8517_v3 = vld [vmem:[%s11925_s3 + $0x2a0] ss:$16 sps:$4 sm:$0xff]  }
 0x1e4   :  { %2633 = vmatpush1.bf16.msra.mxu0 %v8484_v62  ;;  %2707 = vmatprep.subr.bf16.mxu1 %v8495_v24  ;;  %v8525_v58 = vld [vmem:[%s11925_s3 + $0x2c4] ss:$16 sps:$4 sm:$0xff]   ;;  %v8520_v28 = vld [vmem:[%s11925_s3 + $0xc0] ss:$16 sps:$4 sm:$0xff]  }
 0x1e5   :  { %2634 = vmatprep.subr.bf16.mxu0 %v8492_v30  ;;  %1975 = vmatprep.mubr.bf16.mxu1 %v9322_v27  ;;  %v8523_v2 = vld [vmem:[%s11925_s3 + $0x2c0] ss:$16 sps:$4 sm:$0xff]   ;;  %v8528_v10 = vld [vmem:[%s11925_s3 + $0xe4] ss:$16 sps:$4 sm:$0xff]  }
 0x1e6   :  { %2121 = vmatprep.mubr.bf16.mxu0 %v9322_v27  ;;  %v8531_v52 = vld [vmem:[%s11925_s3 + $0x2e4] ss:$16 sps:$4 sm:$0xff]   ;;  %v8526_v19 = vld [vmem:[%s11925_s3 + $0xe0] ss:$16 sps:$4 sm:$0xff]  }
 0x1e7   :  { %2708 = vmatpush1.bf16.msra.mxu1 %v8493_v23  ;;  %v8529_v39 = vld [vmem:[%s11925_s3 + $0x2e0] ss:$16 sps:$4 sm:$0xff]   ;;  %v8534_v53 = vld [vmem:[%s11925_s3 + $0x104] ss:$16 sps:$4 sm:$0xff]  }
 0x1e8   :  { %2635 = vmatpush1.bf16.msra.mxu0 %v8490_v55  ;;  %2709 = vmatprep.subr.bf16.mxu1 %v8501_v13  ;;  %v8537_v63 = vld [vmem:[%s11925_s3 + $0x604] ss:$16 sps:$4 sm:$0xff]   ;;  %v8532_v18 = vld [vmem:[%s11925_s3 + $0x100] ss:$16 sps:$4 sm:$0xff]  }
 0x1e9   :  { %2636 = vmatprep.subr.bf16.mxu0 %v8498_v51  ;;  %v8535_v16 = vld [vmem:[%s11925_s3 + $0x600] ss:$16 sps:$4 sm:$0xff]   ;;  %v8540_v33 = vld [vmem:[%s11925_s3 + $0x124] ss:$16 sps:$4 sm:$0xff]  }
 0x1ea   :  { %1976 = vmatmul.mubr.bf16.gmra.mrb[52].mxu1 %v10260_v4  ;;  %v8543_v25 = vld [vmem:[%s11925_s3 + $0x624] ss:$16 sps:$4 sm:$0xff]   ;;  %v8538_v47 = vld [vmem:[%s11925_s3 + $0x120] ss:$16 sps:$4 sm:$0xff]  }
 0x1eb   :  { %2122 = vmatmul.mubr.bf16.gmra.mrb[100].mxu0 %v10260_v4  ;;  %2710 = vmatpush1.bf16.msra.mxu1 %v8499_v56  ;;  %v8541_v1 = vld [vmem:[%s11925_s3 + $0x620] ss:$16 sps:$4 sm:$0xff]   ;;  %v8546_v38 = vld [vmem:[%s11925_s3 + $0x144] ss:$16 sps:$4 sm:$0xff]  }
 0x1ec   :  { %2637 = vmatpush1.bf16.msra.mxu0 %v8496_v20  ;;  %2711 = vmatprep.subr.bf16.mxu1 %v8507_v60  ;;  %v8549_v62 = vld [vmem:[%s11925_s3 + $0x644] ss:$16 sps:$4 sm:$0xff]   ;;  %v8544_v29 = vld [vmem:[%s11925_s3 + $0x140] ss:$16 sps:$4 sm:$0xff]  }
 0x1ed   :  { %2638 = vmatprep.subr.bf16.mxu0 %v8504_v14  ;;  %1985 = vmatprep.mubr.bf16.mxu1 %v9322_v27  ;;  %v8547_v15 = vld [vmem:[%s11925_s3 + $0x640] ss:$16 sps:$4 sm:$0xff]   ;;  %v8552_v30 = vld [vmem:[%s11925_s3 + $0x164] ss:$16 sps:$4 sm:$0xff]  }
 0x1ee   :  { %2131 = vmatprep.mubr.bf16.mxu0 %v9322_v27  ;;  %v8555_v24 = vld [vmem:[%s11925_s3 + $0x664] ss:$16 sps:$4 sm:$0xff]   ;;  %v8550_v55 = vld [vmem:[%s11925_s3 + $0x160] ss:$16 sps:$4 sm:$0xff]  }
 0x1ef   :  { %2712 = vmatpush1.bf16.msra.mxu1 %v8505_v6  ;;  %v8553_v23 = vld [vmem:[%s11925_s3 + $0x660] ss:$16 sps:$4 sm:$0xff]   ;;  %v8558_v51 = vld [vmem:[%s11925_s3 + $0x184] ss:$16 sps:$4 sm:$0xff]  }
 0x1f0   :  { %2639 = vmatpush1.bf16.msra.mxu0 %v8502_v41  ;;  %2713 = vmatprep.subr.bf16.mxu1 %v8513_v42  ;;  %v8561_v13 = vld [vmem:[%s11925_s3 + $0x684] ss:$16 sps:$4 sm:$0xff]   ;;  %v8556_v20 = vld [vmem:[%s11925_s3 + $0x180] ss:$16 sps:$4 sm:$0xff]  }
 0x1f1   :  { %2640 = vmatprep.subr.bf16.mxu0 %v8510_v17  ;;  %v8559_v56 = vld [vmem:[%s11925_s3 + $0x680] ss:$16 sps:$4 sm:$0xff]   ;;  %v8564_v14 = vld [vmem:[%s11925_s3 + $0x1a4] ss:$16 sps:$4 sm:$0xff]  }
 0x1f2   :  { %1986 = vmatmul.mubr.bf16.gmra.mrb[56].mxu1 %v10316_v59  ;;  %v8567_v60 = vld [vmem:[%s11925_s3 + $0x6a4] ss:$16 sps:$4 sm:$0xff]   ;;  %v8562_v41 = vld [vmem:[%s11925_s3 + $0x1a0] ss:$16 sps:$4 sm:$0xff]  }
 0x1f3   :  { %2132 = vmatmul.mubr.bf16.gmra.mrb[104].mxu0 %v10316_v59  ;;  %2714 = vmatpush1.bf16.msra.mxu1 %v8511_v8  ;;  %v8565_v6 = vld [vmem:[%s11925_s3 + $0x6a0] ss:$16 sps:$4 sm:$0xff]   ;;  %v8570_v17 = vld [vmem:[%s11925_s3 + $0x1c4] ss:$16 sps:$4 sm:$0xff]  }
 0x1f4   :  { %2641 = vmatpush1.bf16.msra.mxu0 %v8508_v32  ;;  %2715 = vmatprep.subr.bf16.mxu1 %v8519_v36  ;;  %v8573_v42 = vld [vmem:[%s11925_s3 + $0x6c4] ss:$16 sps:$4 sm:$0xff]   ;;  %v8568_v32 = vld [vmem:[%s11925_s3 + $0x1c0] ss:$16 sps:$4 sm:$0xff]  }
 0x1f5   :  { %2642 = vmatprep.subr.bf16.mxu0 %v8516_v61  ;;  %1995 = vmatprep.mubr.bf16.mxu1 %v9322_v27  ;;  %v8571_v8 = vld [vmem:[%s11925_s3 + $0x6c0] ss:$16 sps:$4 sm:$0xff]   ;;  %v8576_v61 = vld [vmem:[%s11925_s3 + $0x1e4] ss:$16 sps:$4 sm:$0xff]  }
 0x1f6   :  { %2141 = vmatprep.mubr.bf16.mxu0 %v9322_v27  ;;  %v8579_v36 = vld [vmem:[%s11925_s3 + $0x6e4] ss:$16 sps:$4 sm:$0xff]  }
 0x1f7   :  { %2716 = vmatpush1.bf16.msra.mxu1 %v8517_v3  ;;  %v8577_v3 = vld [vmem:[%s11925_s3 + $0x6e0] ss:$16 sps:$4 sm:$0xff]  }
 0x1f8   :  { %2643 = vmatpush1.bf16.msra.mxu0 %v8514_v35  ;;  %2717 = vmatprep.subr.bf16.mxu1 %v8525_v58  ;;  %v8574_v35 = vld [vmem:[%s11925_s3 + $0x1e0] ss:$16 sps:$4 sm:$0xff]   ;;  %v8585_v58 = vld [vmem:[%s11925_s3 + $0x704] ss:$16 sps:$4 sm:$0xff]  }
 0x1f9   :  { %2644 = vmatprep.subr.bf16.mxu0 %v8522_v0  ;;  %v8582_v0 = vld [vmem:[%s11925_s3 + $0xc] ss:$16 sps:$4 sm:$0xff]  }
 0x1fa   :  { %1996 = vmatmul.mubr.bf16.gmra.mrb[60].mxu1 %v10372_v45 }
 0x1fb   :  { %2142 = vmatmul.mubr.bf16.gmra.mrb[108].mxu0 %v10372_v45  ;;  %2718 = vmatpush1.bf16.msra.mxu1 %v8523_v2  ;;  %v8583_v2 = vld [vmem:[%s11925_s3 + $0x700] ss:$16 sps:$4 sm:$0xff]  }
 0x1fc   :  { %2645 = vmatpush1.bf16.msra.mxu0 %v8520_v28  ;;  %2664 = vmatprep.mubr.bf16.mxu0 %v10182_v40  ;;  %v8580_v28 = vld [vmem:[%s11925_s3 + $0x8] ss:$16 sps:$4 sm:$0xff]  }
 0x1fd   :  { %2646 = vmatprep.subr.bf16.mxu0 %v8528_v10  ;;  %2719 = vmatprep.subr.bf16.mxu1 %v8531_v52  ;;  %v8588_v10 = vld [vmem:[%s11925_s3 + $0x2c] ss:$16 sps:$4 sm:$0xff]   ;;  %v8591_v52 = vld [vmem:[%s11925_s3 + $0x724] ss:$16 sps:$4 sm:$0xff]  }
 0x1fe   :  { %2737 = vmatprep.mubr.bf16.mxu1 %v9322_v27 }
 0x1ff   :  { %2720 = vmatpush1.bf16.msra.mxu1 %v8529_v39  ;;  %v8586_v39 = vld [vmem:[%s11925_s3 + $0x28] ss:$16 sps:$4 sm:$0xff]  }
 0x200   :  { %2647 = vmatpush1.bf16.msra.mxu0 %v8526_v19  ;;  %3504 = vmatprep.subr.bf16.mxu1 %v8537_v63  ;;  %v12060_v19 = vld [vmem:[#allocation21_spill] sm:$0xff] }
 0x201   :  { %2648 = vmatprep.subr.bf16.mxu0 %v8534_v53  ;;  %v8589_v53 = vld [vmem:[%s11925_s3 + $0x720] ss:$16 sps:$4 sm:$0xff]   ;;  %v8594_v63 = vld [vmem:[%s11925_s3 + $0x4c] ss:$16 sps:$4 sm:$0xff]  }
 0x202   :  { %2738 = vmatmul.mubr.bf16.vlgmr.msra.gmra.mrb[64].mxu1 %v10184_v46 }
 0x203   :  { %3505 = vmatpush1.bf16.msra.mxu1 %v8535_v16  ;;  %2747 = vmatprep.mubr.bf16.mxu1 %v9322_v27  ;;  %v8592_v16 = vld [vmem:[%s11925_s3 + $0x48] ss:$16 sps:$4 sm:$0xff]  }
 0x204   :  { %2649 = vmatpush1.bf16.msra.mxu0 %v8532_v18  ;;  %3506 = vmatprep.subr.bf16.mxu1 %v8543_v25  ;;  %v8597_v18 = vld [vmem:[%s11925_s3 + $0x744] ss:$16 sps:$4 sm:$0xff]   ;;  %v8600_v25 = vld [vmem:[%s11925_s3 + $0x6c] ss:$16 sps:$4 sm:$0xff]  }
 0x205   :  { %2650 = vmatprep.subr.bf16.mxu0 %v8540_v33  ;;  %v8595_v33 = vld [vmem:[%s11925_s3 + $0x740] ss:$16 sps:$4 sm:$0xff]  }
 0x207   :  { %3507 = vmatpush1.bf16.msra.mxu1 %v8541_v1  ;;  %v12061_v1 = vld [vmem:[#allocation23_spill] sm:$0xff] }
 0x208   :  { %2651 = vmatpush1.bf16.msra.mxu0 %v8538_v47  ;;  %3508 = vmatprep.subr.bf16.mxu1 %v8549_v62  ;;  %v8603_v47 = vld [vmem:[%s11925_s3 + $0x764] ss:$16 sps:$4 sm:$0xff]   ;;  %v8601_v62 = vld [vmem:[%s11925_s3 + $0x760] ss:$16 sps:$4 sm:$0xff]  }
 0x209   :  { %2652 = vmatprep.subr.bf16.mxu0 %v8546_v38  ;;  %v8598_v38 = vld [vmem:[%s11925_s3 + $0x68] ss:$16 sps:$4 sm:$0xff]  }
 0x20a   :  { %2748 = vmatmul.mubr.bf16.gmra.mrb[68].mxu1 %v10221_v43 }
 0x20b   :  { %3509 = vmatpush1.bf16.msra.mxu1 %v8547_v15  ;;  %2757 = vmatprep.mubr.bf16.mxu1 %v9322_v27  ;;  %v8609_v15 = vld [vmem:[%s11925_s3 + $0x784] ss:$16 sps:$4 sm:$0xff]  }
 0x20c   :  { %2653 = vmatpush1.bf16.msra.mxu0 %v8544_v29  ;;  %3510 = vmatprep.subr.bf16.mxu1 %v8555_v24  ;;  %v8606_v29 = vld [vmem:[%s11925_s3 + $0x8c] ss:$16 sps:$4 sm:$0xff]   ;;  %v8607_v24 = vld [vmem:[%s11925_s3 + $0x780] ss:$16 sps:$4 sm:$0xff]  }
 0x20d   :  { %2654 = vmatprep.subr.bf16.mxu0 %v8552_v30  ;;  %v8604_v30 = vld [vmem:[%s11925_s3 + $0x88] ss:$16 sps:$4 sm:$0xff]  }
 0x20f   :  { %3511 = vmatpush1.bf16.msra.mxu1 %v8553_v23  ;;  %v8615_v23 = vld [vmem:[%s11925_s3 + $0x7a4] ss:$16 sps:$4 sm:$0xff]  }
 0x210   :  { %2655 = vmatpush1.bf16.msra.mxu0 %v8550_v55  ;;  %3512 = vmatprep.subr.bf16.mxu1 %v8561_v13  ;;  %v8612_v55 = vld [vmem:[%s11925_s3 + $0xac] ss:$16 sps:$4 sm:$0xff]   ;;  %v8610_v13 = vld [vmem:[%s11925_s3 + $0xa8] ss:$16 sps:$4 sm:$0xff]  }
 0x211   :  { %2656 = vmatprep.subr.bf16.mxu0 %v8558_v51  ;;  %v12062_v51 = vld [vmem:[#allocation25_spill] sm:$0xff] }
 0x212   :  { %2758 = vmatmul.mubr.bf16.gmra.mrb[72].mxu1 %v10277_v12 }
 0x213   :  { %3513 = vmatpush1.bf16.msra.mxu1 %v8559_v56  ;;  %2767 = vmatprep.mubr.bf16.mxu1 %v9322_v27  ;;  %v8618_v56 = vld [vmem:[%s11925_s3 + $0xcc] ss:$16 sps:$4 sm:$0xff]  }
 0x214   :  { %2657 = vmatpush1.bf16.msra.mxu0 %v8556_v20  ;;  %3514 = vmatprep.subr.bf16.mxu1 %v8567_v60  ;;  %v8613_v20 = vld [vmem:[%s11925_s3 + $0x7a0] ss:$16 sps:$4 sm:$0xff]   ;;  %v8616_v60 = vld [vmem:[%s11925_s3 + $0xc8] ss:$16 sps:$4 sm:$0xff]  }
 0x215   :  { %2658 = vmatprep.subr.bf16.mxu0 %v8564_v14  ;;  %v8621_v14 = vld [vmem:[%s11925_s3 + $0x7c4] ss:$16 sps:$4 sm:$0xff]  }
 0x217   :  { %3515 = vmatpush1.bf16.msra.mxu1 %v8565_v6  ;;  %v8624_v6 = vld [vmem:[%s11925_s3 + $0xec] ss:$16 sps:$4 sm:$0xff]  }
 0x218   :  { %2659 = vmatpush1.bf16.msra.mxu0 %v8562_v41  ;;  %3516 = vmatprep.subr.bf16.mxu1 %v8573_v42  ;;  %v8619_v41 = vld [vmem:[%s11925_s3 + $0x7c0] ss:$16 sps:$4 sm:$0xff]   ;;  %v12063_v42 = vld [vmem:[#allocation31_spill] sm:$0xff] }
 0x219   :  { %2660 = vmatprep.subr.bf16.mxu0 %v8570_v17  ;;  %v8627_v17 = vld [vmem:[%s11925_s3 + $0x7e4] ss:$16 sps:$4 sm:$0xff]  }
 0x21a   :  { %2768 = vmatmul.mubr.bf16.gmra.mrb[76].mxu1 %v10333_v9 }
 0x21b   :  { %3517 = vmatpush1.bf16.msra.mxu1 %v8571_v8  ;;  %3536 = vmatprep.mubr.bf16.mxu1 %v10215_v50  ;;  %v8625_v8 = vld [vmem:[%s11925_s3 + $0x7e0] ss:$16 sps:$4 sm:$0xff]  }
 0x21c   :  { %2661 = vmatpush1.bf16.msra.mxu0 %v8568_v32  ;;  %3518 = vmatprep.subr.bf16.mxu1 %v8579_v36  ;;  %v8622_v32 = vld [vmem:[%s11925_s3 + $0xe8] ss:$16 sps:$4 sm:$0xff]   ;;  %v8633_v36 = vld [vmem:[%s11925_s3 + $0x804] ss:$16 sps:$4 sm:$0xff]  }
 0x21d   :  { %2662 = vmatprep.subr.bf16.mxu0 %v8576_v61  ;;  %v8630_v61 = vld [vmem:[%s11925_s3 + $0x10c] ss:$16 sps:$4 sm:$0xff]  }
 0x21f   :  { %3519 = vmatpush1.bf16.msra.mxu1 %v8577_v3  ;;  %v8636_v3 = vld [vmem:[%s11925_s3 + $0x12c] ss:$16 sps:$4 sm:$0xff]  }
 0x220   :  { %2663 = vmatpush1.bf16.msra.mxu0 %v8574_v35  ;;  %3520 = vmatprep.subr.bf16.mxu1 %v8585_v58  ;;  %v8631_v35 = vld [vmem:[%s11925_s3 + $0x800] ss:$16 sps:$4 sm:$0xff]   ;;  %v8634_v58 = vld [vmem:[%s11925_s3 + $0x128] ss:$16 sps:$4 sm:$0xff]  }
 0x221   :  { %2778 = vmatprep.subr.bf16.mxu0 %v8582_v0  ;;  %v8639_v0 = vld [vmem:[%s11925_s3 + $0x824] ss:$16 sps:$4 sm:$0xff]  }
 0x223   :  { %2665 = vmatmul.mubr.bf16.vlgmr.msra.gmra.mrb[112].mxu0 %v12060_v19  ;;  %3521 = vmatpush1.bf16.msra.mxu1 %v8583_v2  ;;  %v8642_v2 = vld [vmem:[%s11925_s3 + $0x14c] ss:$16 sps:$4 sm:$0xff]  }
 0x224   :  { %2674 = vmatprep.mubr.bf16.mxu0 %v10215_v50  ;;  %2779 = vmatpush1.bf16.msra.mxu0 %v8580_v28  ;;  %v8637_v28 = vld [vmem:[%s11925_s3 + $0x820] ss:$16 sps:$4 sm:$0xff]  }
 0x225   :  { %2780 = vmatprep.subr.bf16.mxu0 %v8588_v10  ;;  %3522 = vmatprep.subr.bf16.mxu1 %v8591_v52  ;;  %v8645_v10 = vld [vmem:[%s11925_s3 + $0x844] ss:$16 sps:$4 sm:$0xff]   ;;  %v8640_v52 = vld [vmem:[%s11925_s3 + $0x148] ss:$16 sps:$4 sm:$0xff]  }
 0x227   :  { %3523 = vmatpush1.bf16.msra.mxu1 %v8589_v53  ;;  %v8648_v53 = vld [vmem:[%s11925_s3 + $0x16c] ss:$16 sps:$4 sm:$0xff]  }
 0x228   :  { %2781 = vmatpush1.bf16.msra.mxu0 %v8586_v39  ;;  %3524 = vmatprep.subr.bf16.mxu1 %v8597_v18  ;;  %v8643_v39 = vld [vmem:[%s11925_s3 + $0x840] ss:$16 sps:$4 sm:$0xff]   ;;  %v8646_v18 = vld [vmem:[%s11925_s3 + $0x168] ss:$16 sps:$4 sm:$0xff]  }
 0x229   :  { %2782 = vmatprep.subr.bf16.mxu0 %v8594_v63  ;;  %v8651_v63 = vld [vmem:[%s11925_s3 + $0x864] ss:$16 sps:$4 sm:$0xff]  }
 0x22b   :  { %2675 = vmatmul.mubr.bf16.gmra.mrb[116].mxu0 %v12061_v1  ;;  %3525 = vmatpush1.bf16.msra.mxu1 %v8595_v33  ;;  %v8654_v33 = vld [vmem:[%s11925_s3 + $0x18c] ss:$16 sps:$4 sm:$0xff]  }
 0x22c   :  { %2684 = vmatprep.mubr.bf16.mxu0 %v10269_v48  ;;  %2783 = vmatpush1.bf16.msra.mxu0 %v8592_v16  ;;  %v8649_v16 = vld [vmem:[%s11925_s3 + $0x860] ss:$16 sps:$4 sm:$0xff]  }
 0x22d   :  { %2784 = vmatprep.subr.bf16.mxu0 %v8600_v25  ;;  %3526 = vmatprep.subr.bf16.mxu1 %v8603_v47  ;;  %v8657_v25 = vld [vmem:[%s11925_s3 + $0x884] ss:$16 sps:$4 sm:$0xff]   ;;  %v8652_v47 = vld [vmem:[%s11925_s3 + $0x188] ss:$16 sps:$4 sm:$0xff]  }
 0x22f   :  { %3527 = vmatpush1.bf16.msra.mxu1 %v8601_v62  ;;  %v8660_v62 = vld [vmem:[%s11925_s3 + $0x1ac] ss:$16 sps:$4 sm:$0xff]  }
 0x230   :  { %2785 = vmatpush1.bf16.msra.mxu0 %v8598_v38  ;;  %3528 = vmatprep.subr.bf16.mxu1 %v8609_v15  ;;  %v8655_v38 = vld [vmem:[%s11925_s3 + $0x880] ss:$16 sps:$4 sm:$0xff]   ;;  %v8658_v15 = vld [vmem:[%s11925_s3 + $0x1a8] ss:$16 sps:$4 sm:$0xff]  }
 0x231   :  { %2786 = vmatprep.subr.bf16.mxu0 %v8606_v29  ;;  %v8663_v29 = vld [vmem:[%s11925_s3 + $0x8a4] ss:$16 sps:$4 sm:$0xff]  }
 0x233   :  { %2685 = vmatmul.mubr.bf16.gmra.mrb[120].mxu0 %v12062_v51  ;;  %3529 = vmatpush1.bf16.msra.mxu1 %v8607_v24  ;;  %v8666_v24 = vld [vmem:[%s11925_s3 + $0x1cc] ss:$16 sps:$4 sm:$0xff]  }
 0x234   :  { %2694 = vmatprep.mubr.bf16.mxu0 %v10325_v21  ;;  %2787 = vmatpush1.bf16.msra.mxu0 %v8604_v30  ;;  %v8661_v30 = vld [vmem:[%s11925_s3 + $0x8a0] ss:$16 sps:$4 sm:$0xff]  }
 0x235   :  { %2788 = vmatprep.subr.bf16.mxu0 %v8612_v55  ;;  %3530 = vmatprep.subr.bf16.mxu1 %v8615_v23  ;;  %v8669_v55 = vld [vmem:[%s11925_s3 + $0x8c4] ss:$16 sps:$4 sm:$0xff]   ;;  %v8664_v23 = vld [vmem:[%s11925_s3 + $0x1c8] ss:$16 sps:$4 sm:$0xff]  }
 0x237   :  { %3531 = vmatpush1.bf16.msra.mxu1 %v8613_v20  ;;  %v8672_v20 = vld [vmem:[%s11925_s3 + $0x1ec] ss:$16 sps:$4 sm:$0xff]  }
 0x238   :  { %2789 = vmatpush1.bf16.msra.mxu0 %v8610_v13  ;;  %3532 = vmatprep.subr.bf16.mxu1 %v8621_v14  ;;  %v8667_v13 = vld [vmem:[%s11925_s3 + $0x8c0] ss:$16 sps:$4 sm:$0xff]   ;;  %v12064_v14 = vld [vmem:[#allocation37_spill] sm:$0xff] }
 0x239   :  { %2790 = vmatprep.subr.bf16.mxu0 %v8618_v56  ;;  %v8675_v56 = vld [vmem:[%s11925_s3 + $0x8e4] ss:$16 sps:$4 sm:$0xff]  }
 0x23b   :  { %2695 = vmatmul.mubr.bf16.gmra.mrb[124].mxu0 %v12063_v42  ;;  %3533 = vmatpush1.bf16.msra.mxu1 %v8619_v41  ;;  %v8673_v41 = vld [vmem:[%s11925_s3 + $0x8e0] ss:$16 sps:$4 sm:$0xff]  }
 0x23c   :  { %2791 = vmatpush1.bf16.msra.mxu0 %v8616_v60  ;;  %2810 = vmatprep.mubr.bf16.mxu0 %v10182_v40  ;;  %v8628_v40 = vld [vmem:[%s11925_s3 + $0x108] ss:$16 sps:$4 sm:$0xff]  }
 0x23d   :  { %2792 = vmatprep.subr.bf16.mxu0 %v8624_v6  ;;  %3534 = vmatprep.subr.bf16.mxu1 %v8627_v17  ;;  %v8670_v60 = vld [vmem:[%s11925_s3 + $0x1e8] ss:$16 sps:$4 sm:$0xff]   ;;  %v8678_v6 = vld [vmem:[%s11925_s3 + $0x20c] ss:$16 sps:$4 sm:$0xff]   ;;  %v8681_v17 = vld [vmem:[%s11925_s3 + $0x904] ss:$16 sps:$4 sm:$0xff]  }
 0x23f   :  { %3535 = vmatpush1.bf16.msra.mxu1 %v8625_v8  ;;  %v8679_v8 = vld [vmem:[%s11925_s3 + $0x900] ss:$16 sps:$4 sm:$0xff]  }
 0x240   :  { %2793 = vmatpush1.bf16.msra.mxu0 %v8622_v32  ;;  %3577 = vmatprep.subr.bf16.mxu1 %v8633_v36  ;;  %v8676_v32 = vld [vmem:[%s11925_s3 + $0x208] ss:$16 sps:$4 sm:$0xff]   ;;  %v8687_v36 = vld [vmem:[%s11925_s3 + $0x924] ss:$16 sps:$4 sm:$0xff]  }
 0x241   :  { %2794 = vmatprep.subr.bf16.mxu0 %v8630_v61  ;;  %v8684_v61 = vld [vmem:[%s11925_s3 + $0x22c] ss:$16 sps:$4 sm:$0xff]  }
 0x242   :  { %3537 = vmatmul.mubr.bf16.vlgmr.msra.gmra.mrb[64].mxu1 %v12061_v1 }
 0x243   :  { %3546 = vmatprep.mubr.bf16.mxu1 %v10269_v48  ;;  %3578 = vmatpush1.bf16.msra.mxu1 %v8631_v35  ;;  %v8685_v35 = vld [vmem:[%s11925_s3 + $0x920] ss:$16 sps:$4 sm:$0xff]  }
 0x244   :  { %2795 = vmatpush1.bf16.msra.mxu0 %v8628_v40  ;;  %3579 = vmatprep.subr.bf16.mxu1 %v8639_v0  ;;  %v8682_v40 = vld [vmem:[%s11925_s3 + $0x228] ss:$16 sps:$4 sm:$0xff]  }
 0x245   :  { %2796 = vmatprep.subr.bf16.mxu0 %v8636_v3  ;;  %v8693_v3 = vld [vmem:[%s11925_s3 + $0x944] ss:$16 sps:$4 sm:$0xff]   ;;  %v8688_v0 = vld [vmem:[%s11925_s3 + $0x248] ss:$16 sps:$4 sm:$0xff]  }
 0x247   :  { %3580 = vmatpush1.bf16.msra.mxu1 %v8637_v28  ;;  %v8696_v28 = vld [vmem:[%s11925_s3 + $0x26c] ss:$16 sps:$4 sm:$0xff]  }
 0x248   :  { %2797 = vmatpush1.bf16.msra.mxu0 %v8634_v58  ;;  %3581 = vmatprep.subr.bf16.mxu1 %v8645_v10  ;;  %v8691_v58 = vld [vmem:[%s11925_s3 + $0x940] ss:$16 sps:$4 sm:$0xff]   ;;  %v8694_v10 = vld [vmem:[%s11925_s3 + $0x268] ss:$16 sps:$4 sm:$0xff]  }
 0x249   :  { %2798 = vmatprep.subr.bf16.mxu0 %v8642_v2  ;;  %v8699_v2 = vld [vmem:[%s11925_s3 + $0x964] ss:$16 sps:$4 sm:$0xff]  }
 0x24a   :  { %3547 = vmatmul.mubr.bf16.gmra.mrb[68].mxu1 %v12062_v51 }
 0x24b   :  { %3556 = vmatprep.mubr.bf16.mxu1 %v10325_v21  ;;  %3582 = vmatpush1.bf16.msra.mxu1 %v8643_v39  ;;  %v8702_v39 = vld [vmem:[%s11925_s3 + $0x28c] ss:$16 sps:$4 sm:$0xff]  }
 0x24c   :  { %2799 = vmatpush1.bf16.msra.mxu0 %v8640_v52  ;;  %3583 = vmatprep.subr.bf16.mxu1 %v8651_v63  ;;  %v8697_v52 = vld [vmem:[%s11925_s3 + $0x960] ss:$16 sps:$4 sm:$0xff]   ;;  %v8700_v63 = vld [vmem:[%s11925_s3 + $0x288] ss:$16 sps:$4 sm:$0xff]  }
 0x24d   :  { %2800 = vmatprep.subr.bf16.mxu0 %v8648_v53  ;;  %v8705_v53 = vld [vmem:[%s11925_s3 + $0x984] ss:$16 sps:$4 sm:$0xff]  }
 0x24f   :  { %3584 = vmatpush1.bf16.msra.mxu1 %v8649_v16  ;;  %v8708_v16 = vld [vmem:[%s11925_s3 + $0x2ac] ss:$16 sps:$4 sm:$0xff]  }
 0x250   :  { %2801 = vmatpush1.bf16.msra.mxu0 %v8646_v18  ;;  %3585 = vmatprep.subr.bf16.mxu1 %v8657_v25  ;;  %v8703_v18 = vld [vmem:[%s11925_s3 + $0x980] ss:$16 sps:$4 sm:$0xff]   ;;  %v8706_v25 = vld [vmem:[%s11925_s3 + $0x2a8] ss:$16 sps:$4 sm:$0xff]  }
 0x251   :  { %2802 = vmatprep.subr.bf16.mxu0 %v8654_v33  ;;  %v8711_v33 = vld [vmem:[%s11925_s3 + $0x9a4] ss:$16 sps:$4 sm:$0xff]  }
 0x252   :  { %3557 = vmatmul.mubr.bf16.gmra.mrb[72].mxu1 %v12063_v42 }
 0x253   :  { %3566 = vmatprep.mubr.bf16.mxu1 %v10381_v11  ;;  %3586 = vmatpush1.bf16.msra.mxu1 %v8655_v38  ;;  %v8714_v38 = vld [vmem:[%s11925_s3 + $0x2cc] ss:$16 sps:$4 sm:$0xff]  }
 0x254   :  { %2803 = vmatpush1.bf16.msra.mxu0 %v8652_v47  ;;  %3587 = vmatprep.subr.bf16.mxu1 %v8663_v29  ;;  %v8709_v47 = vld [vmem:[%s11925_s3 + $0x9a0] ss:$16 sps:$4 sm:$0xff]   ;;  %v8712_v29 = vld [vmem:[%s11925_s3 + $0x2c8] ss:$16 sps:$4 sm:$0xff]  }
 0x255   :  { %2804 = vmatprep.subr.bf16.mxu0 %v8660_v62  ;;  %v8717_v62 = vld [vmem:[%s11925_s3 + $0x9c4] ss:$16 sps:$4 sm:$0xff]  }
 0x257   :  { %3588 = vmatpush1.bf16.msra.mxu1 %v8661_v30  ;;  %v8720_v30 = vld [vmem:[%s11925_s3 + $0x2ec] ss:$16 sps:$4 sm:$0xff]  }
 0x258   :  { %2805 = vmatpush1.bf16.msra.mxu0 %v8658_v15  ;;  %3589 = vmatprep.subr.bf16.mxu1 %v8669_v55  ;;  %v8715_v15 = vld [vmem:[%s11925_s3 + $0x9c0] ss:$16 sps:$4 sm:$0xff]   ;;  %v8718_v55 = vld [vmem:[%s11925_s3 + $0x2e8] ss:$16 sps:$4 sm:$0xff]  }
 0x259   :  { %2806 = vmatprep.subr.bf16.mxu0 %v8666_v24  ;;  %v8723_v24 = vld [vmem:[%s11925_s3 + $0x9e4] ss:$16 sps:$4 sm:$0xff]  }
 0x25a   :  { %3567 = vmatmul.mubr.bf16.gmra.mrb[76].mxu1 %v12064_v14 }
 0x25b   :  { %3590 = vmatpush1.bf16.msra.mxu1 %v8667_v13  ;;  %3609 = vmatprep.mubr.bf16.mxu1 %v9322_v27  ;;  %v8726_v13 = vld [vmem:[%s11925_s3 + $0x60c] ss:$16 sps:$4 sm:$0xff]  }
 0x25c   :  { %2807 = vmatpush1.bf16.msra.mxu0 %v8664_v23  ;;  %3591 = vmatprep.subr.bf16.mxu1 %v8675_v56  ;;  %v8721_v23 = vld [vmem:[%s11925_s3 + $0x9e0] ss:$16 sps:$4 sm:$0xff]   ;;  %v8724_v56 = vld [vmem:[%s11925_s3 + $0x608] ss:$16 sps:$4 sm:$0xff]  }
 0x25d   :  { %2808 = vmatprep.subr.bf16.mxu0 %v8672_v20  ;;  %v8729_v20 = vld [vmem:[%s11925_s3 + $0xa04] ss:$16 sps:$4 sm:$0xff]  }
 0x25f   :  { %3592 = vmatpush1.bf16.msra.mxu1 %v8673_v41  ;;  %v8732_v41 = vld [vmem:[%s11925_s3 + $0x62c] ss:$16 sps:$4 sm:$0xff]  }
 0x260   :  { %2809 = vmatpush1.bf16.msra.mxu0 %v8670_v60  ;;  %4408 = vmatprep.subr.bf16.mxu1 %v8681_v17  ;;  %v8727_v60 = vld [vmem:[%s11925_s3 + $0xa00] ss:$16 sps:$4 sm:$0xff]   ;;  %v8730_v17 = vld [vmem:[%s11925_s3 + $0x628] ss:$16 sps:$4 sm:$0xff]  }
 0x261   :  { %2851 = vmatprep.subr.bf16.mxu0 %v8678_v6  ;;  %v8735_v6 = vld [vmem:[%s11925_s3 + $0xa24] ss:$16 sps:$4 sm:$0xff]  }
 0x262   :  { %3610 = vmatmul.mubr.bf16.vlgmr.msra.gmra.mrb[64].mxu1 %v10221_v43 }
 0x263   :  { %2811 = vmatmul.mubr.bf16.vlgmr.msra.gmra.mrb[96].mxu0 %v12060_v19  ;;  %4409 = vmatpush1.bf16.msra.mxu1 %v8679_v8  ;;  %v8690_v19 = vld [vmem:[%s11925_s3 + $0x24c] ss:$16 sps:$4 sm:$0xff]  }
 0x264   :  { %2820 = vmatprep.mubr.bf16.mxu0 %v10215_v50  ;;  %2852 = vmatpush1.bf16.msra.mxu0 %v8676_v32  ;;  %v8733_v32 = vld [vmem:[%s11925_s3 + $0xa20] ss:$16 sps:$4 sm:$0xff]   ;;  %v8738_v8 = vld [vmem:[%s11925_s3 + $0x64c] ss:$16 sps:$4 sm:$0xff]  }
 0x265   :  { %2853 = vmatprep.subr.bf16.mxu0 %v8684_v61  ;;  %4410 = vmatprep.subr.bf16.mxu1 %v8687_v36  ;;  %v8736_v61 = vld [vmem:[%s11925_s3 + $0x648] ss:$16 sps:$4 sm:$0xff]   ;;  %v8739_v36 = vld [vmem:[%s11925_s3 + $0xa40] ss:$16 sps:$4 sm:$0xff]  }
 0x266   :  { %3619 = vmatprep.mubr.bf16.mxu1 %v9322_v27 }
 0x267   :  { %4411 = vmatpush1.bf16.msra.mxu1 %v8685_v35  ;;  %v8747_v35 = vld [vmem:[%s11925_s3 + $0xa64] ss:$16 sps:$4 sm:$0xff]  }
 0x268   :  { %2854 = vmatpush1.bf16.msra.mxu0 %v8682_v40  ;;  %4412 = vmatprep.subr.bf16.mxu1 %v8693_v3  ;;  %v8744_v40 = vld [vmem:[%s11925_s3 + $0x66c] ss:$16 sps:$4 sm:$0xff]   ;;  %v8745_v3 = vld [vmem:[%s11925_s3 + $0xa60] ss:$16 sps:$4 sm:$0xff]  }
 0x269   :  { %2855 = vmatprep.subr.bf16.mxu0 %v8690_v19  ;;  %v8742_v19 = vld [vmem:[%s11925_s3 + $0x668] ss:$16 sps:$4 sm:$0xff]  }
 0x26a   :  { %3620 = vmatmul.mubr.bf16.gmra.mrb[68].mxu1 %v10277_v12 }
 0x26b   :  { %2821 = vmatmul.mubr.bf16.gmra.mrb[100].mxu0 %v12061_v1  ;;  %4413 = vmatpush1.bf16.msra.mxu1 %v8691_v58  ;;  %v8753_v58 = vld [vmem:[%s11925_s3 + $0xa84] ss:$16 sps:$4 sm:$0xff]  }
 0x26c   :  { %2830 = vmatprep.mubr.bf16.mxu0 %v10269_v48  ;;  %2856 = vmatpush1.bf16.msra.mxu0 %v8688_v0  ;;  %v8750_v0 = vld [vmem:[%s11925_s3 + $0x68c] ss:$16 sps:$4 sm:$0xff]  }
 0x26d   :  { %2857 = vmatprep.subr.bf16.mxu0 %v8696_v28  ;;  %4414 = vmatprep.subr.bf16.mxu1 %v8699_v2  ;;  %v8748_v28 = vld [vmem:[%s11925_s3 + $0x688] ss:$16 sps:$4 sm:$0xff]   ;;  %v8751_v2 = vld [vmem:[%s11925_s3 + $0xa80] ss:$16 sps:$4 sm:$0xff]  }
 0x26e   :  { %3629 = vmatprep.mubr.bf16.mxu1 %v9322_v27 }
 0x26f   :  { %4415 = vmatpush1.bf16.msra.mxu1 %v8697_v52  ;;  %v8759_v52 = vld [vmem:[%s11925_s3 + $0xaa4] ss:$16 sps:$4 sm:$0xff]  }
 0x270   :  { %2858 = vmatpush1.bf16.msra.mxu0 %v8694_v10  ;;  %4416 = vmatprep.subr.bf16.mxu1 %v8705_v53  ;;  %v8756_v10 = vld [vmem:[%s11925_s3 + $0x6ac] ss:$16 sps:$4 sm:$0xff]   ;;  %v8757_v53 = vld [vmem:[%s11925_s3 + $0xaa0] ss:$16 sps:$4 sm:$0xff]  }
 0x271   :  { %2859 = vmatprep.subr.bf16.mxu0 %v8702_v39  ;;  %v8754_v39 = vld [vmem:[%s11925_s3 + $0x6a8] ss:$16 sps:$4 sm:$0xff]  }
 0x272   :  { %3630 = vmatmul.mubr.bf16.gmra.mrb[72].mxu1 %v10333_v9 }
 0x273   :  { %2831 = vmatmul.mubr.bf16.gmra.mrb[104].mxu0 %v12062_v51  ;;  %4417 = vmatpush1.bf16.msra.mxu1 %v8703_v18  ;;  %v8765_v18 = vld [vmem:[%s11925_s3 + $0xac4] ss:$16 sps:$4 sm:$0xff]  }
 0x274   :  { %2840 = vmatprep.mubr.bf16.mxu0 %v10325_v21  ;;  %2860 = vmatpush1.bf16.msra.mxu0 %v8700_v63  ;;  %v8762_v63 = vld [vmem:[%s11925_s3 + $0x6cc] ss:$16 sps:$4 sm:$0xff]  }
 0x275   :  { %2861 = vmatprep.subr.bf16.mxu0 %v8708_v16  ;;  %4418 = vmatprep.subr.bf16.mxu1 %v8711_v33  ;;  %v8760_v16 = vld [vmem:[%s11925_s3 + $0x6c8] ss:$16 sps:$4 sm:$0xff]   ;;  %v8763_v33 = vld [vmem:[%s11925_s3 + $0xac0] ss:$16 sps:$4 sm:$0xff]  }
 0x276   :  { %3639 = vmatprep.mubr.bf16.mxu1 %v9322_v27 }
 0x277   :  { %4419 = vmatpush1.bf16.msra.mxu1 %v8709_v47  ;;  %v8771_v47 = vld [vmem:[%s11925_s3 + $0xae4] ss:$16 sps:$4 sm:$0xff]  }
 0x278   :  { %2862 = vmatpush1.bf16.msra.mxu0 %v8706_v25  ;;  %4420 = vmatprep.subr.bf16.mxu1 %v8717_v62  ;;  %v8768_v25 = vld [vmem:[%s11925_s3 + $0x6ec] ss:$16 sps:$4 sm:$0xff]   ;;  %v8769_v62 = vld [vmem:[%s11925_s3 + $0xae0] ss:$16 sps:$4 sm:$0xff]  }
 0x279   :  { %2863 = vmatprep.subr.bf16.mxu0 %v8714_v38  ;;  %v8766_v38 = vld [vmem:[%s11925_s3 + $0x6e8] ss:$16 sps:$4 sm:$0xff]  }
 0x27a   :  { %3640 = vmatmul.mubr.bf16.gmra.mrb[76].mxu1 %v10389_v26 }
 0x27b   :  { %2841 = vmatmul.mubr.bf16.gmra.mrb[108].mxu0 %v12063_v42  ;;  %4421 = vmatpush1.bf16.msra.mxu1 %v8715_v15  ;;  %v8777_v15 = vld [vmem:[%s11925_s3 + $0xb04] ss:$16 sps:$4 sm:$0xff]  }
 0x27c   :  { %2883 = vmatprep.mubr.bf16.mxu0 %v9322_v27  ;;  %2864 = vmatpush1.bf16.msra.mxu0 %v8712_v29  ;;  %v8774_v29 = vld [vmem:[%s11925_s3 + $0x70c] ss:$16 sps:$4 sm:$0xff]  }
 0x27d   :  { %4440 = vmatprep.mubr.bf16.mxu1 %v10251_v44  ;;  %2865 = vmatprep.subr.bf16.mxu0 %v8720_v30  ;;  %v8775_v30 = vld [vmem:[%s11925_s3 + $0xb00] ss:$16 sps:$4 sm:$0xff]  }
 0x27e   :  { %4422 = vmatprep.subr.bf16.mxu1 %v8723_v24  ;;  %v8780_v24 = vld [vmem:[%s11925_s3 + $0x72c] ss:$16 sps:$4 sm:$0xff]  }
 0x27f   :  { %4423 = vmatpush1.bf16.msra.mxu1 %v8721_v23  ;;  %v8778_v23 = vld [vmem:[%s11925_s3 + $0x728] ss:$16 sps:$4 sm:$0xff]  }
 0x280   :  { %2866 = vmatpush1.bf16.msra.mxu0 %v8718_v55  ;;  %4424 = vmatprep.subr.bf16.mxu1 %v8729_v20  ;;  %v8783_v55 = vld [vmem:[%s11925_s3 + $0xb24] ss:$16 sps:$4 sm:$0xff]   ;;  %v8786_v20 = vld [vmem:[%s11925_s3 + $0x74c] ss:$16 sps:$4 sm:$0xff]  }
 0x281   :  { %3650 = vmatprep.subr.bf16.mxu0 %v8726_v13  ;;  %v8781_v13 = vld [vmem:[%s11925_s3 + $0xb20] ss:$16 sps:$4 sm:$0xff]  }
 0x283   :  { %2884 = vmatmul.mubr.bf16.vlgmr.msra.gmra.mrb[96].mxu0 %v10184_v46  ;;  %4425 = vmatpush1.bf16.msra.mxu1 %v8727_v60  ;;  %v8741_v46 = vld [vmem:[%s11925_s3 + $0xa44] ss:$16 sps:$4 sm:$0xff]   ;;  %v8784_v60 = vld [vmem:[%s11925_s3 + $0x748] ss:$16 sps:$4 sm:$0xff]  }
 0x284   :  { %3651 = vmatpush1.bf16.msra.mxu0 %v8724_v56  ;;  %4426 = vmatprep.subr.bf16.mxu1 %v8735_v6  ;;  %v8789_v56 = vld [vmem:[%s11925_s3 + $0xb44] ss:$16 sps:$4 sm:$0xff]   ;;  %v8792_v6 = vld [vmem:[%s11925_s3 + $0x76c] ss:$16 sps:$4 sm:$0xff]  }
 0x285   :  { %3652 = vmatprep.subr.bf16.mxu0 %v8732_v41  ;;  %2893 = vmatprep.mubr.bf16.mxu0 %v9322_v27  ;;  %v8787_v41 = vld [vmem:[%s11925_s3 + $0xb40] ss:$16 sps:$4 sm:$0xff]  }
 0x287   :  { %4427 = vmatpush1.bf16.msra.mxu1 %v8733_v32  ;;  %v8790_v32 = vld [vmem:[%s11925_s3 + $0x768] ss:$16 sps:$4 sm:$0xff]  }
 0x288   :  { %3653 = vmatpush1.bf16.msra.mxu0 %v8730_v17  ;;  %4428 = vmatprep.subr.bf16.mxu1 %v8741_v46  ;;  %v8795_v17 = vld [vmem:[%s11925_s3 + $0xb64] ss:$16 sps:$4 sm:$0xff]   ;;  %v8798_v46 = vld [vmem:[%s11925_s3 + $0x78c] ss:$16 sps:$4 sm:$0xff]  }
 0x289   :  { %3654 = vmatprep.subr.bf16.mxu0 %v8738_v8  ;;  %v8793_v8 = vld [vmem:[%s11925_s3 + $0xb60] ss:$16 sps:$4 sm:$0xff]  }
 0x28b   :  { %2894 = vmatmul.mubr.bf16.gmra.mrb[100].mxu0 %v10221_v43  ;;  %4429 = vmatpush1.bf16.msra.mxu1 %v8739_v36  ;;  %v8796_v36 = vld [vmem:[%s11925_s3 + $0x788] ss:$16 sps:$4 sm:$0xff]  }
 0x28c   :  { %3655 = vmatpush1.bf16.msra.mxu0 %v8736_v61  ;;  %4430 = vmatprep.subr.bf16.mxu1 %v8747_v35  ;;  %v8801_v61 = vld [vmem:[%s11925_s3 + $0xb84] ss:$16 sps:$4 sm:$0xff]   ;;  %v8804_v35 = vld [vmem:[%s11925_s3 + $0x7ac] ss:$16 sps:$4 sm:$0xff]  }
 0x28d   :  { %3656 = vmatprep.subr.bf16.mxu0 %v8744_v40  ;;  %2903 = vmatprep.mubr.bf16.mxu0 %v9322_v27  ;;  %v8799_v40 = vld [vmem:[%s11925_s3 + $0xb80] ss:$16 sps:$4 sm:$0xff]  }
 0x28f   :  { %4431 = vmatpush1.bf16.msra.mxu1 %v8745_v3  ;;  %v8802_v3 = vld [vmem:[%s11925_s3 + $0x7a8] ss:$16 sps:$4 sm:$0xff]  }
 0x290   :  { %3657 = vmatpush1.bf16.msra.mxu0 %v8742_v19  ;;  %4432 = vmatprep.subr.bf16.mxu1 %v8753_v58  ;;  %v8807_v19 = vld [vmem:[%s11925_s3 + $0xba4] ss:$16 sps:$4 sm:$0xff]   ;;  %v8805_v58 = vld [vmem:[%s11925_s3 + $0xba0] ss:$16 sps:$4 sm:$0xff]  }
 0x291   :  { %3658 = vmatprep.subr.bf16.mxu0 %v8750_v0 }
 0x293   :  { %2904 = vmatmul.mubr.bf16.gmra.mrb[104].mxu0 %v10277_v12  ;;  %4433 = vmatpush1.bf16.msra.mxu1 %v8751_v2 }
 0x294   :  { %3659 = vmatpush1.bf16.msra.mxu0 %v8748_v28  ;;  %4434 = vmatprep.subr.bf16.mxu1 %v8759_v52  ;;  %v8810_v28 = vld [vmem:[%s11925_s3 + $0x7cc] ss:$16 sps:$4 sm:$0xff]  }
 0x295   :  { %3660 = vmatprep.subr.bf16.mxu0 %v8756_v10  ;;  %2913 = vmatprep.mubr.bf16.mxu0 %v9322_v27  ;;  %v8813_v10 = vld [vmem:[%s11925_s3 + $0xbc4] ss:$16 sps:$4 sm:$0xff]  }
 0x297   :  { %4435 = vmatpush1.bf16.msra.mxu1 %v8757_v53  ;;  %v8808_v53 = vld [vmem:[%s11925_s3 + $0x7c8] ss:$16 sps:$4 sm:$0xff]  }
 0x298   :  { %3661 = vmatpush1.bf16.msra.mxu0 %v8754_v39  ;;  %4436 = vmatprep.subr.bf16.mxu1 %v8765_v18  ;;  %v8816_v18 = vld [vmem:[%s11925_s3 + $0x7ec] ss:$16 sps:$4 sm:$0xff]  }
 0x299   :  { %3662 = vmatprep.subr.bf16.mxu0 %v8762_v63  ;;  %v8811_v63 = vld [vmem:[%s11925_s3 + $0xbc0] ss:$16 sps:$4 sm:$0xff]  }
 0x29b   :  { %2914 = vmatmul.mubr.bf16.gmra.mrb[108].mxu0 %v10333_v9  ;;  %4437 = vmatpush1.bf16.msra.mxu1 %v8763_v33  ;;  %v12065_v33 = vld [vmem:[#allocation38_spill] sm:$0xff] }
 0x29c   :  { %3663 = vmatpush1.bf16.msra.mxu0 %v8760_v16  ;;  %3682 = vmatprep.mubr.bf16.mxu0 %v10215_v50  ;;  %v8772_v50 = vld [vmem:[%s11925_s3 + $0x708] ss:$16 sps:$4 sm:$0xff]   ;;  %v8819_v16 = vld [vmem:[%s11925_s3 + $0xbe4] ss:$16 sps:$4 sm:$0xff]  }
 0x29d   :  { %3664 = vmatprep.subr.bf16.mxu0 %v8768_v25  ;;  %4438 = vmatprep.subr.bf16.mxu1 %v8771_v47  ;;  %v8814_v25 = vld [vmem:[%s11925_s3 + $0x7e8] ss:$16 sps:$4 sm:$0xff]  }
 0x29f   :  { %4439 = vmatpush1.bf16.msra.mxu1 %v8769_v62  ;;  %v8822_v62 = vld [vmem:[%s11925_s3 + $0x80c] ss:$16 sps:$4 sm:$0xff]  }
 0x2a0   :  { %3665 = vmatpush1.bf16.msra.mxu0 %v8766_v38  ;;  %4481 = vmatprep.subr.bf16.mxu1 %v8777_v15  ;;  %v8817_v38 = vld [vmem:[%s11925_s3 + $0xbe0] ss:$16 sps:$4 sm:$0xff]   ;;  %v8825_v15 = vld [vmem:[%s11925_s3 + $0xc04] ss:$16 sps:$4 sm:$0xff]  }
 0x2a1   :  { %3666 = vmatprep.subr.bf16.mxu0 %v8774_v29 }
 0x2a2   :  { %4441 = vmatmul.mubr.bf16.vlgmr.msra.gmra.mrb[64].mxu1 %v12026_v54 }
 0x2a3   :  { %4450 = vmatprep.mubr.bf16.mxu1 %v10307_v57  ;;  %4482 = vmatpush1.bf16.msra.mxu1 %v8775_v30 }
 0x2a4   :  { %3667 = vmatpush1.bf16.msra.mxu0 %v8772_v50  ;;  %4483 = vmatprep.subr.bf16.mxu1 %v8783_v55  ;;  %v8823_v55 = vld [vmem:[%s11925_s3 + $0xc00] ss:$16 sps:$4 sm:$0xff]  }
 0x2a5   :  { %3668 = vmatprep.subr.bf16.mxu0 %v8780_v24  ;;  %v8820_v24 = vld [vmem:[%s11925_s3 + $0x808] ss:$16 sps:$4 sm:$0xff]  }
 0x2a7   :  { %4484 = vmatpush1.bf16.msra.mxu1 %v8781_v13  ;;  %v8831_v13 = vld [vmem:[%s11925_s3 + $0xc24] ss:$16 sps:$4 sm:$0xff]  }
 0x2a8   :  { %3669 = vmatpush1.bf16.msra.mxu0 %v8778_v23  ;;  %4485 = vmatprep.subr.bf16.mxu1 %v8789_v56  ;;  %v8828_v23 = vld [vmem:[%s11925_s3 + $0x82c] ss:$16 sps:$4 sm:$0xff]   ;;  %v8826_v56 = vld [vmem:[%s11925_s3 + $0x828] ss:$16 sps:$4 sm:$0xff]  }
 0x2a9   :  { %3670 = vmatprep.subr.bf16.mxu0 %v8786_v20 }
 0x2aa   :  { %4451 = vmatmul.mubr.bf16.gmra.mrb[68].mxu1 %v12036_v5 }
 0x2ab   :  { %4460 = vmatprep.mubr.bf16.mxu1 %v10363_v22  ;;  %4486 = vmatpush1.bf16.msra.mxu1 %v8787_v41 }
 0x2ac   :  { %3671 = vmatpush1.bf16.msra.mxu0 %v8784_v60  ;;  %4487 = vmatprep.subr.bf16.mxu1 %v8795_v17  ;;  %v8829_v60 = vld [vmem:[%s11925_s3 + $0xc20] ss:$16 sps:$4 sm:$0xff]  }
 0x2ad   :  { %3672 = vmatprep.subr.bf16.mxu0 %v8792_v6  ;;  %v8837_v6 = vld [vmem:[%s11925_s3 + $0xc44] ss:$16 sps:$4 sm:$0xff]  }
 0x2af   :  { %4488 = vmatpush1.bf16.msra.mxu1 %v8793_v8  ;;  %v8832_v8 = vld [vmem:[%s11925_s3 + $0x848] ss:$16 sps:$4 sm:$0xff]  }
 0x2b0   :  { %3673 = vmatpush1.bf16.msra.mxu0 %v8790_v32  ;;  %4489 = vmatprep.subr.bf16.mxu1 %v8801_v61  ;;  %v8840_v61 = vld [vmem:[%s11925_s3 + $0x86c] ss:$16 sps:$4 sm:$0xff]  }
 0x2b1   :  { %3674 = vmatprep.subr.bf16.mxu0 %v8798_v46  ;;  %v8835_v46 = vld [vmem:[%s11925_s3 + $0xc40] ss:$16 sps:$4 sm:$0xff]  }
 0x2b2   :  { %4461 = vmatmul.mubr.bf16.gmra.mrb[72].mxu1 %v12053_v37 }
 0x2b3   :  { %4470 = vmatprep.mubr.bf16.mxu1 %v10427_v49  ;;  %4490 = vmatpush1.bf16.msra.mxu1 %v8799_v40 }
 0x2b4   :  { %3675 = vmatpush1.bf16.msra.mxu0 %v8796_v36  ;;  %4491 = vmatprep.subr.bf16.mxu1 %v8807_v19  ;;  %v8843_v36 = vld [vmem:[%s11925_s3 + $0xc64] ss:$16 sps:$4 sm:$0xff]   ;;  %v8841_v19 = vld [vmem:[%s11925_s3 + $0xc60] ss:$16 sps:$4 sm:$0xff]  }
 0x2b5   :  { %v11138_v0 = vpop.f32.mrb[48].mxu1  ;;  %3676 = vmatprep.subr.bf16.mxu0 %v8804_v35  ;;  %v8838_v35 = vld [vmem:[%s11925_s3 + $0x868] ss:$16 sps:$4 sm:$0xff]  }
 0x2b6   :  { %v11146_v2 = vpop.f32.mrb[49].mxu1 }
 0x2b7   :  { %v11151_v52 = vpop.f32.mrb[50].mxu1  ;;  %4492 = vmatpush1.bf16.msra.mxu1 %v8805_v58  ;;  %v8846_v58 = vld [vmem:[%s11925_s3 + $0x88c] ss:$16 sps:$4 sm:$0xff]  }
 0x2b8   :  { %3677 = vmatpush1.bf16.msra.mxu0 %v8802_v3  ;;  %v11153_v39 = vpop.f32.mrb[51].mxu1  ;;  %4493 = vmatprep.subr.bf16.mxu1 %v8813_v10 }
 0x2b9   :  { %3678 = vmatprep.subr.bf16.mxu0 %v8810_v28  ;;  %v8849_v28 = vld [vmem:[%s11925_s3 + $0xc84] ss:$16 sps:$4 sm:$0xff]  }
 0x2ba   :  { %4471 = vmatmul.mubr.bf16.gmra.mrb[76].mxu1 %v12065_v33 }
 0x2bb   :  { %4494 = vmatpush1.bf16.msra.mxu1 %v8811_v63  ;;  %4513 = vmatprep.mubr.bf16.mxu1 %v9322_v27  ;;  %v8844_v63 = vld [vmem:[%s11925_s3 + $0x888] ss:$16 sps:$4 sm:$0xff]  }
 0x2bc   :  { %3679 = vmatpush1.bf16.msra.mxu0 %v8808_v53  ;;  %4495 = vmatprep.subr.bf16.mxu1 %v8819_v16  ;;  %v8852_v16 = vld [vmem:[%s11925_s3 + $0x8ac] ss:$16 sps:$4 sm:$0xff]  }
 0x2bd   :  { %v11171_v47 = vpop.f32.mrb[52].mxu1  ;;  %3680 = vmatprep.subr.bf16.mxu0 %v8816_v18  ;;  %v8847_v18 = vld [vmem:[%s11925_s3 + $0xc80] ss:$16 sps:$4 sm:$0xff]  }
 0x2be   :  { %v11179_v29 = vpop.f32.mrb[53].mxu1 }
 0x2bf   :  { %v11185_v50 = vpop.f32.mrb[54].mxu1  ;;  %4496 = vmatpush1.bf16.msra.mxu1 %v8817_v38  ;;  %v8850_v38 = vld [vmem:[%s11925_s3 + $0x8a8] ss:$16 sps:$4 sm:$0xff]  }
 0x2c0   :  { %3681 = vmatpush1.bf16.msra.mxu0 %v8814_v25  ;;  %v11187_v30 = vpop.f32.mrb[55].mxu1  ;;  %5312 = vmatprep.subr.bf16.mxu1 %v8825_v15  ;;  %v8855_v25 = vld [vmem:[%s11925_s3 + $0xca4] ss:$16 sps:$4 sm:$0xff]   ;;  %v8858_v15 = vld [vmem:[%s11925_s3 + $0x8cc] ss:$16 sps:$4 sm:$0xff]  }
 0x2c1   :  { %3723 = vmatprep.subr.bf16.mxu0 %v8822_v62  ;;  %v8853_v62 = vld [vmem:[%s11925_s3 + $0xca0] ss:$16 sps:$4 sm:$0xff]  }
 0x2c2   :  { %4514 = vmatmul.mubr.bf16.vlgmr.msra.gmra.mrb[64].mxu1 %v10260_v4 }
 0x2c3   :  { %3683 = vmatmul.mubr.bf16.vlgmr.msra.gmra.mrb[96].mxu0 %v12061_v1  ;;  %5313 = vmatpush1.bf16.msra.mxu1 %v8823_v55  ;;  %v8834_v1 = vld [vmem:[%s11925_s3 + $0x84c] ss:$16 sps:$4 sm:$0xff]   ;;  %v8856_v55 = vld [vmem:[%s11925_s3 + $0x8c8] ss:$16 sps:$4 sm:$0xff]  }
 0x2c4   :  { %3692 = vmatprep.mubr.bf16.mxu0 %v10269_v48  ;;  %3724 = vmatpush1.bf16.msra.mxu0 %v8820_v24  ;;  %v8861_v24 = vld [vmem:[%s11925_s3 + $0xcc4] ss:$16 sps:$4 sm:$0xff]  }
 0x2c5   :  { %v11204_v20 = vpop.f32.mrb[56].mxu1  ;;  %3725 = vmatprep.subr.bf16.mxu0 %v8828_v23  ;;  %5314 = vmatprep.subr.bf16.mxu1 %v8831_v13  ;;  %v8859_v23 = vld [vmem:[%s11925_s3 + $0xcc0] ss:$16 sps:$4 sm:$0xff]   ;;  %v8864_v13 = vld [vmem:[%s11925_s3 + $0x8ec] ss:$16 sps:$4 sm:$0xff]  }
 0x2c6   :  { %v11212_v41 = vpop.f32.mrb[57].mxu1  ;;  %4523 = vmatprep.mubr.bf16.mxu1 %v9322_v27 }
 0x2c7   :  { %v11220_v17 = vpop.f32.mrb[58].mxu1  ;;  %5315 = vmatpush1.bf16.msra.mxu1 %v8829_v60  ;;  %v8862_v60 = vld [vmem:[%s11925_s3 + $0x8e8] ss:$16 sps:$4 sm:$0xff]  }
 0x2c8   :  { %v11223_v32 = vpop.f32.mrb[59].mxu1  ;;  %3726 = vmatpush1.bf16.msra.mxu0 %v8826_v56  ;;  %5316 = vmatprep.subr.bf16.mxu1 %v8837_v6  ;;  %v8867_v56 = vld [vmem:[%s11925_s3 + $0xce4] ss:$16 sps:$4 sm:$0xff]   ;;  %v8870_v6 = vld [vmem:[%s11925_s3 + $0x90c] ss:$16 sps:$4 sm:$0xff]  }
 0x2c9   :  { %3727 = vmatprep.subr.bf16.mxu0 %v8834_v1  ;;  %v8865_v1 = vld [vmem:[%s11925_s3 + $0xce0] ss:$16 sps:$4 sm:$0xff]  }
 0x2ca   :  { %4524 = vmatmul.mubr.bf16.gmra.mrb[68].mxu1 %v10316_v59 }
 0x2cb   :  { %3693 = vmatmul.mubr.bf16.gmra.mrb[100].mxu0 %v12062_v51  ;;  %5317 = vmatpush1.bf16.msra.mxu1 %v8835_v46  ;;  %v8868_v46 = vld [vmem:[%s11925_s3 + $0x908] ss:$16 sps:$4 sm:$0xff]  }
 0x2cc   :  { %3702 = vmatprep.mubr.bf16.mxu0 %v10325_v21  ;;  %3728 = vmatpush1.bf16.msra.mxu0 %v8832_v8  ;;  %v8873_v8 = vld [vmem:[%s11925_s3 + $0xd04] ss:$16 sps:$4 sm:$0xff]  }
 0x2cd   :  { %v11240_v40 = vpop.f32.mrb[60].mxu1  ;;  %3729 = vmatprep.subr.bf16.mxu0 %v8840_v61  ;;  %5318 = vmatprep.subr.bf16.mxu1 %v8843_v36  ;;  %v8871_v61 = vld [vmem:[%s11925_s3 + $0xd00] ss:$16 sps:$4 sm:$0xff]   ;;  %v8876_v36 = vld [vmem:[%s11925_s3 + $0x92c] ss:$16 sps:$4 sm:$0xff]  }
 0x2ce   :  { %v11248_v3 = vpop.f32.mrb[61].mxu1  ;;  %4533 = vmatprep.mubr.bf16.mxu1 %v9322_v27 }
 0x2cf   :  { %v11256_v10 = vpop.f32.mrb[62].mxu1  ;;  %5319 = vmatpush1.bf16.msra.mxu1 %v8841_v19  ;;  %v8874_v19 = vld [vmem:[%s11925_s3 + $0x928] ss:$16 sps:$4 sm:$0xff]  }
 0x2d0   :  { %v11259_v53 = vpop.f32.mrb[63].mxu1  ;;  %3730 = vmatpush1.bf16.msra.mxu0 %v8838_v35  ;;  %5320 = vmatprep.subr.bf16.mxu1 %v8849_v28  ;;  %v8879_v35 = vld [vmem:[%s11925_s3 + $0xd24] ss:$16 sps:$4 sm:$0xff]   ;;  %v8882_v28 = vld [vmem:[%s11925_s3 + $0x94c] ss:$16 sps:$4 sm:$0xff]  }
 0x2d1   :  { %3731 = vmatprep.subr.bf16.mxu0 %v8846_v58  ;;  %v8877_v58 = vld [vmem:[%s11925_s3 + $0xd20] ss:$16 sps:$4 sm:$0xff]  }
 0x2d2   :  { %4534 = vmatmul.mubr.bf16.gmra.mrb[72].mxu1 %v10372_v45 }
 0x2d3   :  { %3703 = vmatmul.mubr.bf16.gmra.mrb[104].mxu0 %v12063_v42  ;;  %5321 = vmatpush1.bf16.msra.mxu1 %v8847_v18  ;;  %v8883_v18 = vld [vmem:[%s11925_s3 + $0xd40] ss:$16 sps:$4 sm:$0xff]  }
 0x2d4   :  { %3712 = vmatprep.mubr.bf16.mxu0 %v10381_v11  ;;  %3732 = vmatpush1.bf16.msra.mxu0 %v8844_v63  ;;  %v8880_v63 = vld [vmem:[%s11925_s3 + $0x948] ss:$16 sps:$4 sm:$0xff]  }
 0x2d5   :  { %3733 = vmatprep.subr.bf16.mxu0 %v8852_v16  ;;  %5322 = vmatprep.subr.bf16.mxu1 %v8855_v25  ;;  %v8888_v16 = vld [vmem:[%s11925_s3 + $0x96c] ss:$16 sps:$4 sm:$0xff]   ;;  %v8891_v25 = vld [vmem:[%s11925_s3 + $0xd64] ss:$16 sps:$4 sm:$0xff]  }
 0x2d6   :  { %4543 = vmatprep.mubr.bf16.mxu1 %v9322_v27 }
 0x2d7   :  { %5323 = vmatpush1.bf16.msra.mxu1 %v8853_v62  ;;  %v8889_v62 = vld [vmem:[%s11925_s3 + $0xd60] ss:$16 sps:$4 sm:$0xff]  }
 0x2d8   :  { %3734 = vmatpush1.bf16.msra.mxu0 %v8850_v38  ;;  %5324 = vmatprep.subr.bf16.mxu1 %v8861_v24  ;;  %v8886_v38 = vld [vmem:[%s11925_s3 + $0x968] ss:$16 sps:$4 sm:$0xff]   ;;  %v8897_v24 = vld [vmem:[%s11925_s3 + $0xd84] ss:$16 sps:$4 sm:$0xff]  }
 0x2d9   :  { %3735 = vmatprep.subr.bf16.mxu0 %v8858_v15  ;;  %v8894_v15 = vld [vmem:[%s11925_s3 + $0x98c] ss:$16 sps:$4 sm:$0xff]  }
 0x2da   :  { %4544 = vmatmul.mubr.bf16.gmra.mrb[76].mxu1 %v10435_v31 }
 0x2db   :  { %3713 = vmatmul.mubr.bf16.gmra.mrb[108].mxu0 %v12064_v14  ;;  %5325 = vmatpush1.bf16.msra.mxu1 %v8859_v23  ;;  %v8895_v23 = vld [vmem:[%s11925_s3 + $0xd80] ss:$16 sps:$4 sm:$0xff]  }
 0x2dc   :  { %3755 = vmatprep.mubr.bf16.mxu0 %v9322_v27  ;;  %3736 = vmatpush1.bf16.msra.mxu0 %v8856_v55  ;;  %v8892_v55 = vld [vmem:[%s11925_s3 + $0x988] ss:$16 sps:$4 sm:$0xff]  }
 0x2dd   :  { %5344 = vmatprep.mubr.bf16.mxu1 %v10269_v48  ;;  %3737 = vmatprep.subr.bf16.mxu0 %v8864_v13  ;;  %v8900_v13 = vld [vmem:[%s11925_s3 + $0x9ac] ss:$16 sps:$4 sm:$0xff]  }
 0x2de   :  { %5326 = vmatprep.subr.bf16.mxu1 %v8867_v56  ;;  %v8903_v56 = vld [vmem:[%s11925_s3 + $0xda4] ss:$16 sps:$4 sm:$0xff]  }
 0x2df   :  { %5327 = vmatpush1.bf16.msra.mxu1 %v8865_v1  ;;  %v8898_v1 = vld [vmem:[%s11925_s3 + $0x9a8] ss:$16 sps:$4 sm:$0xff]  }
 0x2e0   :  { %3738 = vmatpush1.bf16.msra.mxu0 %v8862_v60  ;;  %5328 = vmatprep.subr.bf16.mxu1 %v8873_v8 }
 0x2e1   :  { %4554 = vmatprep.subr.bf16.mxu0 %v8870_v6  ;;  %v8901_v6 = vld [vmem:[%s11925_s3 + $0xda0] ss:$16 sps:$4 sm:$0xff]  }
 0x2e3   :  { %3756 = vmatmul.mubr.bf16.vlgmr.msra.gmra.mrb[96].mxu0 %v10221_v43  ;;  %5329 = vmatpush1.bf16.msra.mxu1 %v8871_v61  ;;  %v8885_v43 = vld [vmem:[%s11925_s3 + $0xd44] ss:$16 sps:$4 sm:$0xff]   ;;  %v8906_v61 = vld [vmem:[%s11925_s3 + $0x9cc] ss:$16 sps:$4 sm:$0xff]  }
 0x2e4   :  { %4555 = vmatpush1.bf16.msra.mxu0 %v8868_v46  ;;  %5330 = vmatprep.subr.bf16.mxu1 %v8879_v35 }
 0x2e5   :  { %4556 = vmatprep.subr.bf16.mxu0 %v8876_v36  ;;  %3765 = vmatprep.mubr.bf16.mxu0 %v9322_v27  ;;  %v8909_v36 = vld [vmem:[%s11925_s3 + $0xdc4] ss:$16 sps:$4 sm:$0xff]  }
 0x2e7   :  { %5331 = vmatpush1.bf16.msra.mxu1 %v8877_v58 }
 0x2e8   :  { %4557 = vmatpush1.bf16.msra.mxu0 %v8874_v19  ;;  %5332 = vmatprep.subr.bf16.mxu1 %v8885_v43  ;;  %v8904_v43 = vld [vmem:[%s11925_s3 + $0x9c8] ss:$16 sps:$4 sm:$0xff]  }
 0x2e9   :  { %4558 = vmatprep.subr.bf16.mxu0 %v8882_v28 }
 0x2eb   :  { %3766 = vmatmul.mubr.bf16.gmra.mrb[100].mxu0 %v10277_v12  ;;  %5333 = vmatpush1.bf16.msra.mxu1 %v8883_v18  ;;  %v8910_v18 = vld [vmem:[%s11925_s3 + $0x9e8] ss:$16 sps:$4 sm:$0xff]  }
 0x2ec   :  { %4559 = vmatpush1.bf16.msra.mxu0 %v8880_v63  ;;  %5334 = vmatprep.subr.bf16.mxu1 %v8891_v25  ;;  %v8915_v63 = vld [vmem:[%s11925_s3 + $0xde4] ss:$16 sps:$4 sm:$0xff]  }
 0x2ed   :  { %4560 = vmatprep.subr.bf16.mxu0 %v8888_v16  ;;  %3775 = vmatprep.mubr.bf16.mxu0 %v9322_v27 }
 0x2ef   :  { %5335 = vmatpush1.bf16.msra.mxu1 %v8889_v62  ;;  %v8918_v62 = vld [vmem:[%s11925_s3 + $0xa0c] ss:$16 sps:$4 sm:$0xff]  }
 0x2f0   :  { %4561 = vmatpush1.bf16.msra.mxu0 %v8886_v38  ;;  %5336 = vmatprep.subr.bf16.mxu1 %v8897_v24  ;;  %v8913_v38 = vld [vmem:[%s11925_s3 + $0xde0] ss:$16 sps:$4 sm:$0xff]  }
 0x2f1   :  { %4562 = vmatprep.subr.bf16.mxu0 %v8894_v15 }
 0x2f3   :  { %3776 = vmatmul.mubr.bf16.gmra.mrb[104].mxu0 %v10333_v9  ;;  %5337 = vmatpush1.bf16.msra.mxu1 %v8895_v23 }
 0x2f4   :  { %4563 = vmatpush1.bf16.msra.mxu0 %v8892_v55  ;;  %5338 = vmatprep.subr.bf16.mxu1 %v8903_v56 }
 0x2f5   :  { %4564 = vmatprep.subr.bf16.mxu0 %v8900_v13  ;;  %3785 = vmatprep.mubr.bf16.mxu0 %v9322_v27  ;;  %v8916_v13 = vld [vmem:[%s11925_s3 + $0xa08] ss:$16 sps:$4 sm:$0xff]  }
 0x2f6   :  { %v2666_v60 = vpop.f32.mrb[112].mxu0 }
 0x2f7   :  { %v11389_v8 = vadd.f32 %v2666_v60, %v11138_v0  ;;  %v2668_v46 = vpop.f32.mrb[113].mxu0  ;;  %5339 = vmatpush1.bf16.msra.mxu1 %v8901_v6  ;;  %v8922_v60 = vld [vmem:[%s11925_s3 + $0xa28] ss:$16 sps:$4 sm:$0xff]  }
 0x2f8   :  { %v11398_v35 = vadd.f32 %v2668_v46, %v11146_v2  ;;  %v2670_v19 = vpop.f32.mrb[114].mxu0  ;;  %4565 = vmatpush1.bf16.msra.mxu0 %v8898_v1  ;;  %v8907_v2 = vld [vmem:[%s11925_s3 + $0xdc0] ss:$16 sps:$4 sm:$0xff]   ;;  %5340 = vmatprep.subr.bf16.mxu1 %v8909_v36 }
 0x2f9   :  { %v11402_v0 = vadd.f32 %v2670_v19, %v11151_v52  ;;  %v2672_v58 = vpop.f32.mrb[115].mxu0  ;;  %4566 = vmatprep.subr.bf16.mxu0 %v8906_v61  ;;  %v8912_v52 = vld [vmem:[%s11925_s3 + $0x9ec] ss:$16 sps:$4 sm:$0xff]   ;;  %v8925_v46 = vld [vmem:[%s11925_s3 + $0xe20] ss:$16 sps:$4 sm:$0xff]  }
 0x2fa   :  { %v11405_v28 = vadd.f32 %v2672_v58, %v11153_v39  ;;  %v8930_v61 = vld [vmem:[%s11925_s3 + $0xa4c] ss:$16 sps:$4 sm:$0xff]  }
 0x2fb   :  { %3786 = vmatmul.mubr.bf16.gmra.mrb[108].mxu0 %v10389_v26  ;;  %5341 = vmatpush1.bf16.msra.mxu1 %v8907_v2 }
 0x2fc   :  { %4567 = vmatpush1.bf16.msra.mxu0 %v8904_v43  ;;  %4586 = vmatprep.mubr.bf16.mxu0 %v10251_v44 }
 0x2fd   :  { %4568 = vmatprep.subr.bf16.mxu0 %v8912_v52  ;;  %5342 = vmatprep.subr.bf16.mxu1 %v8915_v63  ;;  %v8931_v52 = vld [vmem:[%s11925_s3 + $0xe40] ss:$16 sps:$4 sm:$0xff]  }
 0x2fe   :  { %v2676_v39 = vpop.f32.mrb[116].mxu0 }
 0x2ff   :  { %v11425_v16 = vadd.f32 %v2676_v39, %v11171_v47  ;;  %v2678_v25 = vpop.f32.mrb[117].mxu0  ;;  %v8921_v47 = vld [vmem:[%s11925_s3 + $0xe04] ss:$16 sps:$4 sm:$0xff]   ;;  %5343 = vmatpush1.bf16.msra.mxu1 %v8913_v38  ;;  %v8934_v39 = vld [vmem:[%s11925_s3 + $0xa68] ss:$16 sps:$4 sm:$0xff]  }
 0x300   :  { %v11434_v44 = vadd.f32 %v2678_v25, %v11179_v29  ;;  %v2680_v15 = vpop.f32.mrb[118].mxu0  ;;  %4569 = vmatpush1.bf16.msra.mxu0 %v8910_v18  ;;  %v8919_v29 = vld [vmem:[%s11925_s3 + $0xe00] ss:$16 sps:$4 sm:$0xff]   ;;  %5385 = vmatprep.subr.bf16.mxu1 %v8921_v47 }
 0x301   :  { %v11440_v24 = vadd.f32 %v2680_v15, %v11185_v50  ;;  %v2682_v55 = vpop.f32.mrb[119].mxu0  ;;  %4570 = vmatprep.subr.bf16.mxu0 %v8918_v62  ;;  %v8924_v50 = vld [vmem:[%s11925_s3 + $0xa2c] ss:$16 sps:$4 sm:$0xff]   ;;  %v8937_v38 = vld [vmem:[%s11925_s3 + $0xe60] ss:$16 sps:$4 sm:$0xff]  }
 0x302   :  { %v11443_v23 = vadd.f32 %v2682_v55, %v11187_v30  ;;  %v8927_v30 = vld [vmem:[%s11925_s3 + $0xe24] ss:$16 sps:$4 sm:$0xff]   ;;  %5345 = vmatmul.mubr.bf16.vlgmr.msra.gmra.mrb[64].mxu1 %v12062_v51  ;;  %v8942_v62 = vld [vmem:[%s11925_s3 + $0xa8c] ss:$16 sps:$4 sm:$0xff]  }
 0x303   :  { %5354 = vmatprep.mubr.bf16.mxu1 %v10325_v21  ;;  %5386 = vmatpush1.bf16.msra.mxu1 %v8919_v29 }
 0x304   :  { %4571 = vmatpush1.bf16.msra.mxu0 %v8916_v13  ;;  %5387 = vmatprep.subr.bf16.mxu1 %v8927_v30  ;;  %v8946_v30 = vld [vmem:[%s11925_s3 + $0xaa8] ss:$16 sps:$4 sm:$0xff]  }
 0x305   :  { %4572 = vmatprep.subr.bf16.mxu0 %v8924_v50  ;;  %v8943_v50 = vld [vmem:[%s11925_s3 + $0xe80] ss:$16 sps:$4 sm:$0xff]  }
 0x306   :  { %v2686_v56 = vpop.f32.mrb[120].mxu0 }
 0x307   :  { %v11463_v1 = vadd.f32 %v2686_v56, %v11204_v20  ;;  %v2688_v6 = vpop.f32.mrb[121].mxu0  ;;  %v8933_v20 = vld [vmem:[%s11925_s3 + $0xe44] ss:$16 sps:$4 sm:$0xff]   ;;  %5388 = vmatpush1.bf16.msra.mxu1 %v8925_v46  ;;  %v8949_v56 = vld [vmem:[%s11925_s3 + $0xea0] ss:$16 sps:$4 sm:$0xff]  }
 0x308   :  { %v11472_v36 = vadd.f32 %v2688_v6, %v11212_v41  ;;  %v2690_v19 = vpop.f32.mrb[122].mxu0  ;;  %4573 = vmatpush1.bf16.msra.mxu0 %v8922_v60  ;;  %v8928_v41 = vld [vmem:[%s11925_s3 + $0xa48] ss:$16 sps:$4 sm:$0xff]   ;;  %5389 = vmatprep.subr.bf16.mxu1 %v8933_v20  ;;  %v8954_v60 = vld [vmem:[%s11925_s3 + $0xacc] ss:$16 sps:$4 sm:$0xff]  }
 0x309   :  { %v11478_v58 = vadd.f32 %v2690_v19, %v11220_v17  ;;  %v2692_v43 = vpop.f32.mrb[123].mxu0  ;;  %4574 = vmatprep.subr.bf16.mxu0 %v8930_v61  ;;  %v8936_v17 = vld [vmem:[%s11925_s3 + $0xa6c] ss:$16 sps:$4 sm:$0xff]   ;;  %v8957_v6 = vld [vmem:[%s11925_s3 + $0xec4] ss:$16 sps:$4 sm:$0xff]  }
 0x30a   :  { %v11481_v2 = vadd.f32 %v2692_v43, %v11223_v32  ;;  %v8939_v32 = vld [vmem:[%s11925_s3 + $0xe64] ss:$16 sps:$4 sm:$0xff]   ;;  %5355 = vmatmul.mubr.bf16.gmra.mrb[68].mxu1 %v12063_v42  ;;  %v8952_v46 = vld [vmem:[%s11925_s3 + $0xac8] ss:$16 sps:$4 sm:$0xff]   ;;  %v8955_v61 = vld [vmem:[%s11925_s3 + $0xec0] ss:$16 sps:$4 sm:$0xff]  }
 0x30b   :  { %5364 = vmatprep.mubr.bf16.mxu1 %v10381_v11  ;;  %5390 = vmatpush1.bf16.msra.mxu1 %v8931_v52  ;;  %v8960_v19 = vld [vmem:[%s11925_s3 + $0xaec] ss:$16 sps:$4 sm:$0xff]   ;;  %v8963_v20 = vld [vmem:[%s11925_s3 + $0xee4] ss:$16 sps:$4 sm:$0xff]   ;;  %v8961_v52 = vld [vmem:[%s11925_s3 + $0xee0] ss:$16 sps:$4 sm:$0xff]  }
 0x30c   :  { %4575 = vmatpush1.bf16.msra.mxu0 %v8928_v41  ;;  %5391 = vmatprep.subr.bf16.mxu1 %v8939_v32  ;;  %v12066_v43 = vld [vmem:[#allocation39_spill] sm:$0xff] }
 0x30d   :  { %4576 = vmatprep.subr.bf16.mxu0 %v8936_v17  ;;  %v8958_v41 = vld [vmem:[%s11925_s3 + $0xae8] ss:$16 sps:$4 sm:$0xff]   ;;  %v8966_v17 = vld [vmem:[%s11925_s3 + $0xb0c] ss:$16 sps:$4 sm:$0xff]  }
 0x30e   :  { %v2696_v63 = vpop.f32.mrb[124].mxu0  ;;  %v8964_v32 = vld [vmem:[%s11925_s3 + $0xb08] ss:$16 sps:$4 sm:$0xff]  }
 0x30f   :  { %v11501_v18 = vadd.f32 %v2696_v63, %v11240_v40  ;;  %v2698_v25 = vpop.f32.mrb[125].mxu0  ;;  %v8945_v40 = vld [vmem:[%s11925_s3 + $0xe84] ss:$16 sps:$4 sm:$0xff]   ;;  %5392 = vmatpush1.bf16.msra.mxu1 %v8937_v38  ;;  %v8969_v63 = vld [vmem:[%s11925_s3 + $0xb2c] ss:$16 sps:$4 sm:$0xff]  }
 0x310   :  { %v11510_v15 = vadd.f32 %v2698_v25, %v11248_v3  ;;  %v2700_v47 = vpop.f32.mrb[126].mxu0  ;;  %4577 = vmatpush1.bf16.msra.mxu0 %v8934_v39  ;;  %v8940_v3 = vld [vmem:[%s11925_s3 + $0xa88] ss:$16 sps:$4 sm:$0xff]   ;;  %5393 = vmatprep.subr.bf16.mxu1 %v8945_v40  ;;  %v8972_v25 = vld [vmem:[%s11925_s3 + $0xb4c] ss:$16 sps:$4 sm:$0xff]  }
 0x311   :  { %v11516_v55 = vadd.f32 %v2700_v47, %v11256_v10  ;;  %v2702_v13 = vpop.f32.mrb[127].mxu0  ;;  %4578 = vmatprep.subr.bf16.mxu0 %v8942_v62  ;;  %v8948_v10 = vld [vmem:[%s11925_s3 + $0xaac] ss:$16 sps:$4 sm:$0xff]   ;;  %v8967_v39 = vld [vmem:[%s11925_s3 + $0xb28] ss:$16 sps:$4 sm:$0xff]  }
 0x312   :  { %v11519_v29 = vadd.f32 %v2702_v13, %v11259_v53  ;;  %v8951_v53 = vld [vmem:[%s11925_s3 + $0xea4] ss:$16 sps:$4 sm:$0xff]   ;;  %5365 = vmatmul.mubr.bf16.gmra.mrb[72].mxu1 %v12064_v14  ;;  %v8973_v38 = vld [vmem:[%s11925_s3 + $0xb68] ss:$16 sps:$4 sm:$0xff]   ;;  %v8978_v62 = vld [vmem:[%s11925_s3 + $0xb8c] ss:$16 sps:$4 sm:$0xff]  }
 0x313   :  { %5374 = vmatprep.mubr.bf16.mxu1 %v10437_v34  ;;  %5394 = vmatpush1.bf16.msra.mxu1 %v8943_v50  ;;  %v8979_v47 = vld [vmem:[%s11925_s3 + $0xba8] ss:$16 sps:$4 sm:$0xff]   ;;  %v8984_v40 = vld [vmem:[%s11925_s3 + $0xbcc] ss:$16 sps:$4 sm:$0xff]  }
 0x314   :  { %4579 = vmatpush1.bf16.msra.mxu0 %v8940_v3  ;;  %5395 = vmatprep.subr.bf16.mxu1 %v8951_v53  ;;  %v8985_v13 = vld [vmem:[%s11925_s3 + $0xbe8] ss:$16 sps:$4 sm:$0xff]   ;;  %v8990_v3 = vld [vmem:[%s11925_s3 + $0xc0c] ss:$16 sps:$4 sm:$0xff]  }
 0x315   :  { %4580 = vmatprep.subr.bf16.mxu0 %v8948_v10  ;;  %v8988_v50 = vld [vmem:[%s11925_s3 + $0xc08] ss:$16 sps:$4 sm:$0xff]   ;;  %v8996_v53 = vld [vmem:[%s11925_s3 + $0xc4c] ss:$16 sps:$4 sm:$0xff]  }
 0x316   :  { %v8991_v10 = vld [vmem:[%s11925_s3 + $0xc28] ss:$16 sps:$4 sm:$0xff]  }
 0x317   :  { %5396 = vmatpush1.bf16.msra.mxu1 %v8949_v56  ;;  %v8997_v56 = vld [vmem:[%s11925_s3 + $0xc68] ss:$16 sps:$4 sm:$0xff]  }
 0x318   :  { %4581 = vmatpush1.bf16.msra.mxu0 %v8946_v30  ;;  %5397 = vmatprep.subr.bf16.mxu1 %v8957_v6  ;;  %v8994_v30 = vld [vmem:[%s11925_s3 + $0xc48] ss:$16 sps:$4 sm:$0xff]  }
 0x319   :  { %4582 = vmatprep.subr.bf16.mxu0 %v8954_v60  ;;  %v9002_v60 = vld [vmem:[%s11925_s3 + $0xc8c] ss:$16 sps:$4 sm:$0xff]   ;;  %v9000_v6 = vld [vmem:[%s11925_s3 + $0xc88] ss:$16 sps:$4 sm:$0xff]  }
 0x31a   :  { %5375 = vmatmul.mubr.bf16.gmra.mrb[76].mxu1 %v12066_v43 }
 0x31b   :  { %5398 = vmatpush1.bf16.msra.mxu1 %v8955_v61  ;;  %5417 = vmatprep.mubr.bf16.mxu1 %v9322_v27  ;;  %v9008_v61 = vld [vmem:[%s11925_s3 + $0xccc] ss:$16 sps:$4 sm:$0xff]  }
 0x31c   :  { %4583 = vmatpush1.bf16.msra.mxu0 %v8952_v46  ;;  %5399 = vmatprep.subr.bf16.mxu1 %v8963_v20  ;;  %v9003_v46 = vld [vmem:[%s11925_s3 + $0xca8] ss:$16 sps:$4 sm:$0xff]  }
 0x31d   :  { %4584 = vmatprep.subr.bf16.mxu0 %v8960_v19  ;;  %v9006_v19 = vld [vmem:[%s11925_s3 + $0xcc8] ss:$16 sps:$4 sm:$0xff]  }
 0x31e   :  { %v9009_v20 = vld [vmem:[%s11925_s3 + $0xce8] ss:$16 sps:$4 sm:$0xff]  }
 0x31f   :  { %5400 = vmatpush1.bf16.msra.mxu1 %v8961_v52  ;;  %v9012_v52 = vld [vmem:[%s11925_s3 + $0xd08] ss:$16 sps:$4 sm:$0xff]  }
 0x320   :  { %4585 = vmatpush1.bf16.msra.mxu0 %v8958_v41  ;;  %v9014_v41 = vld [vmem:[%s11925_s3 + $0xd0c] ss:$16 sps:$4 sm:$0xff]  }
 0x321   :  { %4627 = vmatprep.subr.bf16.mxu0 %v8966_v17  ;;  %v9020_v17 = vld [vmem:[%s11925_s3 + $0xd4c] ss:$16 sps:$4 sm:$0xff]  }
 0x322   :  { %5418 = vmatmul.mubr.bf16.vlgmr.msra.gmra.mrb[64].mxu1 %v10277_v12 }
 0x323   :  { %4587 = vmatmul.mubr.bf16.vlgmr.msra.gmra.mrb[96].mxu0 %v12026_v54  ;;  %5427 = vmatprep.mubr.bf16.mxu1 %v9322_v27  ;;  %v8970_v54 = vld [vmem:[%s11925_s3 + $0xb48] ss:$16 sps:$4 sm:$0xff]  }
 0x324   :  { %4596 = vmatprep.mubr.bf16.mxu0 %v10307_v57  ;;  %4628 = vmatpush1.bf16.msra.mxu0 %v8964_v32  ;;  %v8975_v57 = vld [vmem:[%s11925_s3 + $0xb6c] ss:$16 sps:$4 sm:$0xff]   ;;  %v9018_v32 = vld [vmem:[%s11925_s3 + $0xd48] ss:$16 sps:$4 sm:$0xff]  }
 0x325   :  { %4629 = vmatprep.subr.bf16.mxu0 %v8969_v63  ;;  %v9023_v63 = vld [vmem:[%s11925_s3 + $0xd6c] ss:$16 sps:$4 sm:$0xff]  }
 0x328   :  { %4630 = vmatpush1.bf16.msra.mxu0 %v8967_v39  ;;  %v9021_v39 = vld [vmem:[%s11925_s3 + $0xd68] ss:$16 sps:$4 sm:$0xff]  }
 0x329   :  { %4631 = vmatprep.subr.bf16.mxu0 %v8972_v25  ;;  %v9026_v25 = vld [vmem:[%s11925_s3 + $0xd8c] ss:$16 sps:$4 sm:$0xff]  }
 0x32a   :  { %5428 = vmatmul.mubr.bf16.gmra.mrb[68].mxu1 %v10333_v9 }
 0x32b   :  { %4597 = vmatmul.mubr.bf16.gmra.mrb[100].mxu0 %v12036_v5  ;;  %5437 = vmatprep.mubr.bf16.mxu1 %v9322_v27  ;;  %v8976_v5 = vld [vmem:[%s11925_s3 + $0xb88] ss:$16 sps:$4 sm:$0xff]  }
 0x32c   :  { %4606 = vmatprep.mubr.bf16.mxu0 %v10363_v22  ;;  %4632 = vmatpush1.bf16.msra.mxu0 %v8970_v54  ;;  %v8981_v22 = vld [vmem:[%s11925_s3 + $0xbac] ss:$16 sps:$4 sm:$0xff]   ;;  %v9024_v54 = vld [vmem:[%s11925_s3 + $0xd88] ss:$16 sps:$4 sm:$0xff]  }
 0x32d   :  { %4633 = vmatprep.subr.bf16.mxu0 %v8975_v57  ;;  %v9029_v57 = vld [vmem:[%s11925_s3 + $0xdac] ss:$16 sps:$4 sm:$0xff]  }
 0x330   :  { %4634 = vmatpush1.bf16.msra.mxu0 %v8973_v38  ;;  %v9027_v38 = vld [vmem:[%s11925_s3 + $0xda8] ss:$16 sps:$4 sm:$0xff]  }
 0x331   :  { %4635 = vmatprep.subr.bf16.mxu0 %v8978_v62  ;;  %v9032_v62 = vld [vmem:[%s11925_s3 + $0xdcc] ss:$16 sps:$4 sm:$0xff]  }
 0x332   :  { %5438 = vmatmul.mubr.bf16.gmra.mrb[72].mxu1 %v10389_v26 }
 0x333   :  { %4607 = vmatmul.mubr.bf16.gmra.mrb[104].mxu0 %v12053_v37  ;;  %5447 = vmatprep.mubr.bf16.mxu1 %v9322_v27  ;;  %v8982_v37 = vld [vmem:[%s11925_s3 + $0xbc8] ss:$16 sps:$4 sm:$0xff]  }
 0x334   :  { %4616 = vmatprep.mubr.bf16.mxu0 %v10427_v49  ;;  %4636 = vmatpush1.bf16.msra.mxu0 %v8976_v5  ;;  %v8987_v49 = vld [vmem:[%s11925_s3 + $0xbec] ss:$16 sps:$4 sm:$0xff]   ;;  %v9030_v5 = vld [vmem:[%s11925_s3 + $0xdc8] ss:$16 sps:$4 sm:$0xff]  }
 0x335   :  { %4637 = vmatprep.subr.bf16.mxu0 %v8981_v22  ;;  %v9035_v22 = vld [vmem:[%s11925_s3 + $0xdec] ss:$16 sps:$4 sm:$0xff]  }
 0x338   :  { %4638 = vmatpush1.bf16.msra.mxu0 %v8979_v47  ;;  %v9033_v47 = vld [vmem:[%s11925_s3 + $0xde8] ss:$16 sps:$4 sm:$0xff]  }
 0x339   :  { %4639 = vmatprep.subr.bf16.mxu0 %v8984_v40  ;;  %v9038_v40 = vld [vmem:[%s11925_s3 + $0xe0c] ss:$16 sps:$4 sm:$0xff]  }
 0x33a   :  { %5448 = vmatmul.mubr.bf16.gmra.mrb[76].mxu1 %v10441_v7 }
 0x33b   :  { %4617 = vmatmul.mubr.bf16.gmra.mrb[108].mxu0 %v12065_v33  ;;  %v8993_v33 = vld [vmem:[%s11925_s3 + $0xc2c] ss:$16 sps:$4 sm:$0xff]  }
 0x33c   :  { %4659 = vmatprep.mubr.bf16.mxu0 %v9322_v27  ;;  %4640 = vmatpush1.bf16.msra.mxu0 %v8982_v37  ;;  %v9036_v37 = vld [vmem:[%s11925_s3 + $0xe08] ss:$16 sps:$4 sm:$0xff]  }
 0x33d   :  { %4641 = vmatprep.subr.bf16.mxu0 %v8987_v49  ;;  %v9041_v49 = vld [vmem:[%s11925_s3 + $0xe2c] ss:$16 sps:$4 sm:$0xff]  }
 0x340   :  { %4642 = vmatpush1.bf16.msra.mxu0 %v8985_v13  ;;  %v9039_v13 = vld [vmem:[%s11925_s3 + $0xe28] ss:$16 sps:$4 sm:$0xff]  }
 0x341   :  { %5458 = vmatprep.subr.bf16.mxu0 %v8990_v3  ;;  %v9044_v3 = vld [vmem:[%s11925_s3 + $0xe4c] ss:$16 sps:$4 sm:$0xff]  }
 0x343   :  { %4660 = vmatmul.mubr.bf16.vlgmr.msra.gmra.mrb[96].mxu0 %v10260_v4  ;;  %v8999_v4 = vld [vmem:[%s11925_s3 + $0xc6c] ss:$16 sps:$4 sm:$0xff]  }
 0x344   :  { %5459 = vmatpush1.bf16.msra.mxu0 %v8988_v50  ;;  %4669 = vmatprep.mubr.bf16.mxu0 %v9322_v27  ;;  %v9042_v50 = vld [vmem:[%s11925_s3 + $0xe48] ss:$16 sps:$4 sm:$0xff]  }
 0x345   :  { %5460 = vmatprep.subr.bf16.mxu0 %v8993_v33  ;;  %v9050_v33 = vld [vmem:[%s11925_s3 + $0xe8c] ss:$16 sps:$4 sm:$0xff]  }
 0x348   :  { %5461 = vmatpush1.bf16.msra.mxu0 %v8991_v10  ;;  %v9048_v10 = vld [vmem:[%s11925_s3 + $0xe88] ss:$16 sps:$4 sm:$0xff]  }
 0x349   :  { %5462 = vmatprep.subr.bf16.mxu0 %v8996_v53  ;;  %v9060_v53 = vld [vmem:[#allocation4] ss:$8 sps:$4 sm:$0xff]  }
 0x34b   :  { %4670 = vmatmul.mubr.bf16.gmra.mrb[100].mxu0 %v10316_v59  ;;  %v9005_v59 = vld [vmem:[%s11925_s3 + $0xcac] ss:$16 sps:$4 sm:$0xff]  }
 0x34c   :  { %5463 = vmatpush1.bf16.msra.mxu0 %v8994_v30  ;;  %4679 = vmatprep.mubr.bf16.mxu0 %v9322_v27  ;;  %v9062_v30 = vld [vmem:[#allocation4 + $0x4] ss:$8 sps:$4 sm:$0xff]  }
 0x34d   :  { %5464 = vmatprep.subr.bf16.mxu0 %v8999_v4  ;;  %v9056_v4 = vld [vmem:[%s11925_s3 + $0xecc] ss:$16 sps:$4 sm:$0xff]   ;;  %6476 = vmatprep.subr.bf16.mxu1 %v9062_v30 }
 0x34e   :  { %6477 = vmatpush1.bf16.msra.mxu1 %v9060_v53 }
 0x350   :  { %5465 = vmatpush1.bf16.msra.mxu0 %v8997_v56  ;;  %v9065_v56 = vld [vmem:[#allocation4 + $0x14] ss:$8 sps:$4 sm:$0xff]  }
 0x351   :  { %5466 = vmatprep.subr.bf16.mxu0 %v9002_v60  ;;  %v9063_v60 = vld [vmem:[#allocation4 + $0x10] ss:$8 sps:$4 sm:$0xff]   ;;  %6478 = vmatprep.subr.bf16.mxu1 %v9065_v56 }
 0x352   :  { %6479 = vmatpush1.bf16.msra.mxu1 %v9063_v60 }
 0x353   :  { %4680 = vmatmul.mubr.bf16.gmra.mrb[104].mxu0 %v10372_v45  ;;  %v9011_v45 = vld [vmem:[%s11925_s3 + $0xcec] ss:$16 sps:$4 sm:$0xff]  }
 0x354   :  { %5467 = vmatpush1.bf16.msra.mxu0 %v9000_v6  ;;  %4689 = vmatprep.mubr.bf16.mxu0 %v9322_v27  ;;  %v9068_v6 = vld [vmem:[#allocation4 + $0x24] ss:$8 sps:$4 sm:$0xff]  }
 0x355   :  { %5468 = vmatprep.subr.bf16.mxu0 %v9005_v59  ;;  %v9066_v59 = vld [vmem:[#allocation4 + $0x20] ss:$8 sps:$4 sm:$0xff]   ;;  %6480 = vmatprep.subr.bf16.mxu1 %v9068_v6 }
 0x356   :  { %6481 = vmatpush1.bf16.msra.mxu1 %v9066_v59 }
 0x358   :  { %5469 = vmatpush1.bf16.msra.mxu0 %v9003_v46  ;;  %v9057_v46 = vld [vmem:[%s11925_s3 + $0xee8] ss:$16 sps:$4 sm:$0xff]  }
 0x359   :  { %5470 = vmatprep.subr.bf16.mxu0 %v9008_v61  ;;  %v9071_v61 = vld [vmem:[#allocation4 + $0x34] ss:$8 sps:$4 sm:$0xff]  }
 0x35a   :  { %6482 = vmatprep.subr.bf16.mxu1 %v9071_v61 }
 0x35b   :  { %4690 = vmatmul.mubr.bf16.gmra.mrb[108].mxu0 %v10435_v31  ;;  %v9017_v31 = vld [vmem:[%s11925_s3 + $0xd2c] ss:$16 sps:$4 sm:$0xff]  }
 0x35c   :  { %5471 = vmatpush1.bf16.msra.mxu0 %v9006_v19  ;;  %5490 = vmatprep.mubr.bf16.mxu0 %v10269_v48  ;;  %v9015_v48 = vld [vmem:[%s11925_s3 + $0xd28] ss:$16 sps:$4 sm:$0xff]  }
 0x35d   :  { %5472 = vmatprep.subr.bf16.mxu0 %v9011_v45  ;;  %v9069_v19 = vld [vmem:[#allocation4 + $0x30] ss:$8 sps:$4 sm:$0xff]   ;;  %v9074_v45 = vld [vmem:[#allocation4 + $0x44] ss:$8 sps:$4 sm:$0xff]  }
 0x35e   :  { %6483 = vmatpush1.bf16.msra.mxu1 %v9069_v19 }
 0x35f   :  { %6484 = vmatprep.subr.bf16.mxu1 %v9074_v45 }
 0x360   :  { %5473 = vmatpush1.bf16.msra.mxu0 %v9009_v20  ;;  %v9077_v20 = vld [vmem:[#allocation4 + $0x54] ss:$8 sps:$4 sm:$0xff]  }
 0x361   :  { %5474 = vmatprep.subr.bf16.mxu0 %v9014_v41  ;;  %v9075_v41 = vld [vmem:[#allocation4 + $0x50] ss:$8 sps:$4 sm:$0xff]  }
 0x364   :  { %5475 = vmatpush1.bf16.msra.mxu0 %v9012_v52  ;;  %v9080_v52 = vld [vmem:[#allocation4 + $0x64] ss:$8 sps:$4 sm:$0xff]  }
 0x365   :  { %5476 = vmatprep.subr.bf16.mxu0 %v9017_v31  ;;  %v9078_v31 = vld [vmem:[#allocation4 + $0x60] ss:$8 sps:$4 sm:$0xff]  }
 0x368   :  { %5477 = vmatpush1.bf16.msra.mxu0 %v9015_v48  ;;  %v9083_v48 = vld [vmem:[#allocation4 + $0x74] ss:$8 sps:$4 sm:$0xff]  }
 0x369   :  { %5478 = vmatprep.subr.bf16.mxu0 %v9020_v17  ;;  %v9086_v17 = vld [vmem:[#allocation4 + $0x84] ss:$8 sps:$4 sm:$0xff]  }
 0x36c   :  { %5479 = vmatpush1.bf16.msra.mxu0 %v9018_v32  ;;  %v9084_v32 = vld [vmem:[#allocation4 + $0x80] ss:$8 sps:$4 sm:$0xff]  }
 0x36d   :  { %5480 = vmatprep.subr.bf16.mxu0 %v9023_v63  ;;  %v9089_v63 = vld [vmem:[#allocation4 + $0x94] ss:$8 sps:$4 sm:$0xff]  }
 0x370   :  { %5481 = vmatpush1.bf16.msra.mxu0 %v9021_v39  ;;  %v9092_v39 = vld [vmem:[#allocation4 + $0xa4] ss:$8 sps:$4 sm:$0xff]  }
 0x371   :  { %5482 = vmatprep.subr.bf16.mxu0 %v9026_v25  ;;  %v9090_v25 = vld [vmem:[#allocation4 + $0xa0] ss:$8 sps:$4 sm:$0xff]  }
 0x374   :  { %5483 = vmatpush1.bf16.msra.mxu0 %v9024_v54  ;;  %v9095_v54 = vld [vmem:[#allocation4 + $0xb4] ss:$8 sps:$4 sm:$0xff]  }
 0x375   :  { %5484 = vmatprep.subr.bf16.mxu0 %v9029_v57  ;;  %v9093_v57 = vld [vmem:[#allocation4 + $0xb0] ss:$8 sps:$4 sm:$0xff]  }
 0x378   :  { %5485 = vmatpush1.bf16.msra.mxu0 %v9027_v38  ;;  %v9096_v38 = vld [vmem:[#allocation4 + $0xc0] ss:$8 sps:$4 sm:$0xff]  }
 0x379   :  { %5486 = vmatprep.subr.bf16.mxu0 %v9032_v62  ;;  %v9101_v62 = vld [vmem:[#allocation4 + $0xd4] ss:$8 sps:$4 sm:$0xff]  }
 0x37c   :  { %5487 = vmatpush1.bf16.msra.mxu0 %v9030_v5 }
 0x37d   :  { %5488 = vmatprep.subr.bf16.mxu0 %v9035_v22 }
 0x380   :  { %5489 = vmatpush1.bf16.msra.mxu0 %v9033_v47  ;;  %v9099_v47 = vld [vmem:[#allocation4 + $0xd0] ss:$8 sps:$4 sm:$0xff]  }
 0x381   :  { %5531 = vmatprep.subr.bf16.mxu0 %v9038_v40 }
 0x383   :  { %5491 = vmatmul.mubr.bf16.vlgmr.msra.gmra.mrb[96].mxu0 %v12062_v51  ;;  %v9045_v51 = vld [vmem:[%s11925_s3 + $0xe68] ss:$16 sps:$4 sm:$0xff]  }
 0x384   :  { %5500 = vmatprep.mubr.bf16.mxu0 %v10325_v21  ;;  %5532 = vmatpush1.bf16.msra.mxu0 %v9036_v37  ;;  %v9047_v21 = vld [vmem:[%s11925_s3 + $0xe6c] ss:$16 sps:$4 sm:$0xff]  }
 0x385   :  { %5533 = vmatprep.subr.bf16.mxu0 %v9041_v49 }
 0x388   :  { %5534 = vmatpush1.bf16.msra.mxu0 %v9039_v13 }
 0x389   :  { %5535 = vmatprep.subr.bf16.mxu0 %v9044_v3  ;;  %v9104_v3 = vld [vmem:[#allocation4 + $0xe4] ss:$8 sps:$4 sm:$0xff]  }
 0x38b   :  { %5501 = vmatmul.mubr.bf16.gmra.mrb[100].mxu0 %v12063_v42  ;;  %v9051_v42 = vld [vmem:[%s11925_s3 + $0xea8] ss:$16 sps:$4 sm:$0xff]  }
 0x38c   :  { %5510 = vmatprep.mubr.bf16.mxu0 %v10381_v11  ;;  %5536 = vmatpush1.bf16.msra.mxu0 %v9042_v50  ;;  %v9053_v11 = vld [vmem:[%s11925_s3 + $0xeac] ss:$16 sps:$4 sm:$0xff]  }
 0x38d   :  { %5537 = vmatprep.subr.bf16.mxu0 %v9047_v21  ;;  %v9102_v21 = vld [vmem:[#allocation4 + $0xe0] ss:$8 sps:$4 sm:$0xff]  }
 0x390   :  { %5538 = vmatpush1.bf16.msra.mxu0 %v9045_v51 }
 0x391   :  { %5539 = vmatprep.subr.bf16.mxu0 %v9050_v33 }
 0x393   :  { %5511 = vmatmul.mubr.bf16.gmra.mrb[104].mxu0 %v12064_v14  ;;  %v9059_v14 = vld [vmem:[%s11925_s3 + $0xeec] ss:$16 sps:$4 sm:$0xff]  }
 0x394   :  { %5520 = vmatprep.mubr.bf16.mxu0 %v10437_v34  ;;  %5540 = vmatpush1.bf16.msra.mxu0 %v9048_v10  ;;  %v9054_v34 = vld [vmem:[%s11925_s3 + $0xec8] ss:$16 sps:$4 sm:$0xff]  }
 0x395   :  { %5541 = vmatprep.subr.bf16.mxu0 %v9053_v11 }
 0x398   :  { %5542 = vmatpush1.bf16.msra.mxu0 %v9051_v42 }
 0x399   :  { %5543 = vmatprep.subr.bf16.mxu0 %v9056_v4  ;;  %v9110_v4 = vld [vmem:[#allocation4 + $0x104] ss:$8 sps:$4 sm:$0xff]  }
 0x39b   :  { %5521 = vmatmul.mubr.bf16.gmra.mrb[108].mxu0 %v12066_v43  ;;  %v9072_v43 = vld [vmem:[#allocation4 + $0x40] ss:$8 sps:$4 sm:$0xff]  }
 0x39c   :  { %5544 = vmatpush1.bf16.msra.mxu0 %v9054_v34  ;;  %5563 = vmatprep.mubr.bf16.mxu0 %v9322_v27 }
 0x39d   :  { %5545 = vmatprep.subr.bf16.mxu0 %v9059_v14  ;;  %6485 = vmatpush1.bf16.msra.mxu1 %v9072_v43 }
 0x39e   :  { %6486 = vmatprep.subr.bf16.mxu1 %v9077_v20 }
 0x3a0   :  { %5546 = vmatpush1.bf16.msra.mxu0 %v9057_v46 }
 0x3a1   :  { %6487 = vmatpush1.bf16.msra.mxu1 %v9075_v41 }
 0x3a2   :  { %6488 = vmatprep.subr.bf16.mxu1 %v9080_v52 }
 0x3a3   :  { %5564 = vmatmul.mubr.bf16.vlgmr.msra.gmra.mrb[96].mxu0 %v10277_v12  ;;  %v9081_v12 = vld [vmem:[#allocation4 + $0x70] ss:$8 sps:$4 sm:$0xff]  }
 0x3a4   :  { %5573 = vmatprep.mubr.bf16.mxu0 %v9322_v27 }
 0x3a5   :  { %6489 = vmatpush1.bf16.msra.mxu1 %v9078_v31 }
 0x3a6   :  { %6490 = vmatprep.subr.bf16.mxu1 %v9083_v48 }
 0x3a9   :  { %6491 = vmatpush1.bf16.msra.mxu1 %v9081_v12 }
 0x3aa   :  { %6492 = vmatprep.subr.bf16.mxu1 %v9086_v17 }
 0x3ab   :  { %5574 = vmatmul.mubr.bf16.gmra.mrb[100].mxu0 %v10333_v9  ;;  %v9087_v9 = vld [vmem:[#allocation4 + $0x90] ss:$8 sps:$4 sm:$0xff]  }
 0x3ac   :  { %5583 = vmatprep.mubr.bf16.mxu0 %v9322_v27 }
 0x3ad   :  { %6493 = vmatpush1.bf16.msra.mxu1 %v9084_v32 }
 0x3ae   :  { %6494 = vmatprep.subr.bf16.mxu1 %v9089_v63  ;;  %v12068_v63 = vld [vmem:[#allocation46_spill] sm:$0xff] }
 0x3b1   :  { %6495 = vmatpush1.bf16.msra.mxu1 %v9087_v9 }
 0x3b2   :  { %6496 = vmatprep.subr.bf16.mxu1 %v9092_v39 }
 0x3b3   :  { %5584 = vmatmul.mubr.bf16.gmra.mrb[104].mxu0 %v10389_v26  ;;  %v9098_v26 = vld [vmem:[#allocation4 + $0xc4] ss:$8 sps:$4 sm:$0xff]  }
 0x3b4   :  { %5593 = vmatprep.mubr.bf16.mxu0 %v9322_v27 }
 0x3b5   :  { %6497 = vmatpush1.bf16.msra.mxu1 %v9090_v25 }
 0x3b6   :  { %6498 = vmatprep.subr.bf16.mxu1 %v9095_v54 }
 0x3b9   :  { %6499 = vmatpush1.bf16.msra.mxu1 %v9093_v57 }
 0x3ba   :  { %6500 = vmatprep.subr.bf16.mxu1 %v9098_v26 }
 0x3bb   :  { %5594 = vmatmul.mubr.bf16.gmra.mrb[108].mxu0 %v10441_v7 }
 0x3bd   :  { %6501 = vmatpush1.bf16.msra.mxu1 %v9096_v38 }
 0x3be   :  { %6502 = vmatprep.subr.bf16.mxu1 %v9101_v62 }
 0x3c1   :  { %6503 = vmatpush1.bf16.msra.mxu1 %v9099_v47 }
 0x3c2   :  { %6504 = vmatprep.subr.bf16.mxu1 %v9104_v3  ;;  %v9113_v3 = vld [vmem:[#allocation4 + $0x114] ss:$8 sps:$4 sm:$0xff]  }
 0x3c5   :  { %6505 = vmatpush1.bf16.msra.mxu1 %v9102_v21 }
 0x3f5   :  { %v5419_v27 = vpop.f32.mrb[64].mxu1 }
 0x3f6   :  { %v7951_v5 = vadd.f32 %v11389_v8, %v5419_v27  ;;  %v5421_v22 = vpop.f32.mrb[65].mxu1  ;;  %v9107_v8 = vld [vmem:[#allocation4 + $0xf4] ss:$8 sps:$4 sm:$0xff]  }
 0x3f7   :  { %v7953_v7 = vadd.f32 %v11398_v35, %v5421_v22  ;;  %v5423_v40 = vpop.f32.mrb[66].mxu1  ;;  %v9105_v35 = vld [vmem:[#allocation4 + $0xf0] ss:$8 sps:$4 sm:$0xff]   ;;  %6506 = vmatprep.subr.bf16.mxu1 %v9107_v8 }
 0x3f8   :  { %v7955_v37 = vadd.f32 %v11402_v0, %v5423_v40  ;;  %v5425_v49 = vpop.f32.mrb[67].mxu1  ;;  %6507 = vmatpush1.bf16.msra.mxu1 %v9105_v35  ;;  %v9111_v8 = vld [vmem:[#allocation4 + $0x110] ss:$8 sps:$4 sm:$0xff]  }
 0x3f9   :  { %v7957_v13 = vadd.f32 %v11405_v28, %v5425_v49  ;;  %6517 = vmatprep.subr.bf16.mxu1 %v9110_v4 }
 0x3fa   :  { %v5636_v50 = vmax.f32 %v7951_v5, %v7955_v37  ;;  %v9108_v37 = vld [vmem:[#allocation4 + $0x100] ss:$8 sps:$4 sm:$0xff]  }
 0x3fb   :  { %v5637_v51 = vmax.f32 %v7953_v7, %v7957_v13 }
 0x3fd   :  { %v5429_v33 = vpop.f32.mrb[68].mxu1 }
 0x3fe   :  { %v7959_v10 = vadd.f32 %v11425_v16, %v5429_v33  ;;  %v5431_v11 = vpop.f32.mrb[69].mxu1 }
 0x3ff   :  { %v7961_v42 = vadd.f32 %v11434_v44, %v5431_v11  ;;  %v5433_v53 = vpop.f32.mrb[70].mxu1  ;;  %v9116_v11 = vld [vmem:[#allocation4 + $0x124] ss:$8 sps:$4 sm:$0xff]  }
 0x400   :  { %v7963_v0 = vadd.f32 %v11440_v24, %v5433_v53  ;;  %v5435_v30 = vpop.f32.mrb[71].mxu1 }
 0x401   :  { %v7965_v28 = vadd.f32 %v11443_v23, %v5435_v30 }
 0x402   :  { %v5640_v56 = vmax.f32 %v7959_v10, %v7963_v0 }
 0x403   :  { %v5641_v60 = vmax.f32 %v7961_v42, %v7965_v28  ;;  %v9114_v28 = vld [vmem:[#allocation4 + $0x120] ss:$8 sps:$4 sm:$0xff]  }
 0x405   :  { %v5439_v34 = vpop.f32.mrb[72].mxu1 }
 0x406   :  { %v11806_v14 = vadd.f32 %v11463_v1, %v5439_v34  ;;  %v5441_v16 = vpop.f32.mrb[73].mxu1 }
 0x407   :  { %v11809_v6 = vadd.f32 %v11472_v36, %v5441_v16  ;;  %v5443_v44 = vpop.f32.mrb[74].mxu1 }
 0x408   :  { %v7971_v59 = vadd.f32 %v11478_v58, %v5443_v44  ;;  %v5445_v24 = vpop.f32.mrb[75].mxu1  ;;  %v9117_v44 = vld [vmem:[#allocation4 + $0x130] ss:$8 sps:$4 sm:$0xff]  }
 0x409   :  { %v7973_v46 = vadd.f32 %v11481_v2, %v5445_v24  ;;  %v9122_v24 = vld [vmem:[#allocation4 + $0x144] ss:$8 sps:$4 sm:$0xff]  }
 0x40a   :  { %v5644_v23 = vmax.f32 %v11806_v14, %v7971_v59 }
 0x40b   :  { %v5645_v61 = vmax.f32 %v11809_v6, %v7973_v46 }
 0x40d   :  { %v5449_v19 = vpop.f32.mrb[76].mxu1 }
 0x40e   :  { %v11816_v45 = vadd.f32 %v11501_v18, %v5449_v19  ;;  %v5451_v1 = vpop.f32.mrb[77].mxu1 }
 0x40f   :  { %v11819_v43 = vadd.f32 %v11510_v15, %v5451_v1  ;;  %v5453_v36 = vpop.f32.mrb[78].mxu1  ;;  %v5660_v15 = vld [vmem:[%s11926_s4] sm:$0x3] }
 0x410   :  { %v11822_v20 = vadd.f32 %v11516_v55, %v5453_v36  ;;  %v5455_v58 = vpop.f32.mrb[79].mxu1  ;;  %v12067_v55 = vld [vmem:[#allocation17_spill] sm:$0xff]  ;;  %v5669_v9 = vrot.slane %v5660_v15, %v12068_v63 }
 0x411   :  { %v11825_v41 = vadd.f32 %v11519_v29, %v5455_v58  ;;  %v11835_v17 = vrot.slane %v5660_v15, %v12067_v55  ;;  %v9125_v58 = vld [vmem:[#allocation4 + $0x154] ss:$8 sps:$4 sm:$0xff]  }
 0x412   :  { %v5648_v2 = vmax.f32 %v11816_v45, %v11822_v20  ;;  %v9131_v45 = vld [vmem:[#allocation4 + $0x174] ss:$8 sps:$4 sm:$0xff]   ;;  %v9129_v20 = vld [vmem:[#allocation4 + $0x170] ss:$8 sps:$4 sm:$0xff]  }
 0x413   :  { %v5649_v52 = vmax.f32 %v11819_v43, %v11825_v41  ;;  %v9132_v43 = vld [vmem:[#allocation4 + $0x180] ss:$8 sps:$4 sm:$0xff]   ;;  %v9137_v41 = vld [vmem:[#allocation4 + $0x194] ss:$8 sps:$4 sm:$0xff]  }
 0x476   :  { %v5565_v18 = vpop.f32.mrb[96].mxu0 }
 0x477   :  { %v5567_v31 = vpop.f32.mrb[97].mxu0 }
 0x478   :  { %v5569_v48 = vpop.f32.mrb[98].mxu0 }
 0x479   :  { %v5638_v12 = vmax.f32 %v5565_v18, %v5569_v48  ;;  %v5571_v32 = vpop.f32.mrb[99].mxu0  ;;  %v9123_v48 = vld [vmem:[#allocation4 + $0x150] ss:$8 sps:$4 sm:$0xff]  }
 0x47a   :  { %v5639_v29 = vmax.f32 %v5567_v31, %v5571_v32  ;;  %v9126_v32 = vld [vmem:[#allocation4 + $0x160] ss:$8 sps:$4 sm:$0xff]  }
 0x47b   :  { %v5652_v39 = vmax.f32 %v5636_v50, %v5638_v12  ;;  %v9128_v12 = vld [vmem:[#allocation4 + $0x164] ss:$8 sps:$4 sm:$0xff]  }
 0x47c   :  { %v5653_v25 = vmax.f32 %v5637_v51, %v5639_v29  ;;  %v9138_v29 = vld [vmem:[#allocation4 + $0x1a0] ss:$8 sps:$4 sm:$0xff]  }
 0x47d   :  { %v5672_v54 = vadd.f32 %v11835_v17, %v5652_v39  ;;  %v9141_v39 = vld [vmem:[#allocation4 + $0x1b0] ss:$8 sps:$4 sm:$0xff]  }
 0x47e   :  { %v5673_v57 = vadd.f32 %v5669_v9, %v5653_v25  ;;  %v5575_v26 = vpop.f32.mrb[100].mxu0  ;;  %v9146_v25 = vld [vmem:[#allocation4 + $0x1c4] ss:$8 sps:$4 sm:$0xff]  }
 0x47f   :  { %v5680_v38 = vmax.f32 %v5672_v54, 0.0  ;;  %v5577_v27 = vpop.f32.mrb[101].mxu0  ;;  %v9144_v54 = vld [vmem:[#allocation4 + $0x1c0] ss:$8 sps:$4 sm:$0xff]  }
 0x480   :  { %v5579_v62 = vpop.f32.mrb[102].mxu0  ;;  %v5681_v5 = vmax.f32 %v5673_v57, 0.0  ;;  %v9149_v57 = vld [vmem:[#allocation4 + $0x1d4] ss:$8 sps:$4 sm:$0xff]  }
 0x481   :  { %v5642_v22 = vmax.f32 %v5575_v26, %v5579_v62  ;;  %v5581_v47 = vpop.f32.mrb[103].mxu0  ;;  %v5688_v49 = vpack.c.bf16 %v5680_v38, %v5680_v38  ;;  %v9147_v26 = vld [vmem:[#allocation4 + $0x1d0] ss:$8 sps:$4 sm:$0xff]   ;;  %v9152_v38 = vld [vmem:[#allocation4 + $0x1e4] ss:$8 sps:$4 sm:$0xff]  }
 0x482   :  { %v5643_v7 = vmax.f32 %v5577_v27, %v5581_v47  ;;  %v5689_v40 = vpack.c.bf16 %v5681_v5, %v5681_v5  ;;  %v9150_v27 = vld [vmem:[#allocation4 + $0x1e0] ss:$8 sps:$4 sm:$0xff]   ;;  %v9155_v62 = vld [vmem:[#allocation4 + $0x1f4] ss:$8 sps:$4 sm:$0xff]   ;;  %v9153_v5 = vld [vmem:[#allocation4 + $0x1f0] ss:$8 sps:$4 sm:$0xff]  }
 0x483   :  { %v5654_v13 = vmax.f32 %v5640_v56, %v5642_v22  ;;  %v9158_v47 = vld [vmem:[#allocation4 + $0x204] ss:$8 sps:$4 sm:$0xff]  }
 0x484   :  { %v5655_v21 = vmax.f32 %v5641_v60, %v5643_v7  ;;  %6508 = vmatprep.mubr.bf16.mxu1 %v5689_v40  ;;  %v9119_v60 = vld [vmem:[#allocation4 + $0x134] ss:$8 sps:$4 sm:$0xff]   ;;  %v9156_v40 = vld [vmem:[#allocation4 + $0x200] ss:$8 sps:$4 sm:$0xff]  }
 0x485   :  { %v11840_v50 = vadd.f32 %v11835_v17, %v5654_v13  ;;  %6509 = vmatmul.mubr.bf16.vlgmr.msra.gmra.mrb[80].mxu1 %v5688_v49  ;;  %v9161_v49 = vld [vmem:[#allocation4 + $0x214] ss:$8 sps:$4 sm:$0xff]  }
 0x486   :  { %v5675_v51 = vadd.f32 %v5669_v9, %v5655_v21  ;;  %6518 = vmatpush1.bf16.msra.mxu1 %v9108_v37  ;;  %v5585_v33 = vpop.f32.mrb[104].mxu0  ;;  %v9253_v21 = vld [vmem:[%s11929_s7] sm:$0xff]  }
 0x487   :  { %v5587_v10 = vpop.f32.mrb[105].mxu0  ;;  %6519 = vmatprep.subr.bf16.mxu1 %v9113_v3  ;;  %v5682_v22 = vmax.f32 %v11840_v50, 0.0  ;;  %v9252_v3 = vld [vmem:[%s11929_s7 + $0x40] sm:$0xff]   ;;  %v9254_v50 = vld [vmem:[%s11929_s7 + $0x48] sm:$0xff]  }
 0x488   :  { %v5589_v35 = vpop.f32.mrb[106].mxu0  ;;  %v5683_v42 = vmax.f32 %v5675_v51, 0.0  ;;  %v9159_v51 = vld [vmem:[#allocation4 + $0x210] ss:$8 sps:$4 sm:$0xff]   ;;  %7928 = vmatprep.subr.bf16.mxu0 %v9252_v3  ;;  %v9230_v3 = vld [vmem:[#allocation4 + $0x384] ss:$8 sps:$4 sm:$0xff]  }
 0x489   :  { %v5646_v53 = vmax.f32 %v5585_v33, %v5589_v35  ;;  %v5591_v0 = vpop.f32.mrb[107].mxu0  ;;  %v5690_v37 = vpack.c.bf16 %v5682_v22, %v5682_v22  ;;  %v9164_v33 = vld [vmem:[#allocation4 + $0x224] ss:$8 sps:$4 sm:$0xff]   ;;  %7929 = vmatpush3.bf16.msra.mxu0 %v9253_v21  ;;  %v9167_v35 = vld [vmem:[#allocation4 + $0x234] ss:$8 sps:$4 sm:$0xff]  }
 0x48a   :  { %v5647_v30 = vmax.f32 %v5587_v10, %v5591_v0  ;;  %6520 = vmatpush1.bf16.msra.mxu1 %v9111_v8  ;;  %v5691_v4 = vpack.c.bf16 %v5683_v42, %v5683_v42  ;;  %v9255_v8 = vld [vmem:[%s11929_s7 + $0x8] sm:$0xff]   ;;  %7930 = vmatprep.subr.bf16.mxu0 %v9254_v50  ;;  %v9256_v10 = vld [vmem:[%s11929_s7 + $0x50] sm:$0xff]  }
 0x48b   :  { %v5656_v56 = vmax.f32 %v5644_v23, %v5646_v53  ;;  %6521 = vmatprep.subr.bf16.mxu1 %v9116_v11  ;;  %v9120_v23 = vld [vmem:[#allocation4 + $0x140] ss:$8 sps:$4 sm:$0xff]   ;;  %v9165_v0 = vld [vmem:[#allocation4 + $0x230] ss:$8 sps:$4 sm:$0xff]   ;;  %v9233_v50 = vld [vmem:[#allocation4 + $0x394] ss:$8 sps:$4 sm:$0xff]  }
 0x48c   :  { %v5657_v34 = vmax.f32 %v5645_v61, %v5647_v30  ;;  %6549 = vmatprep.mubr.bf16.mxu1 %v5691_v4  ;;  %v9162_v11 = vld [vmem:[#allocation4 + $0x220] ss:$8 sps:$4 sm:$0xff]   ;;  %v9170_v30 = vld [vmem:[#allocation4 + $0x244] ss:$8 sps:$4 sm:$0xff]   ;;  %v9260_v4 = vld [vmem:[%s11929_s7 + $0x60] sm:$0xff]  }
 0x48d   :  { %v11843_v14 = vadd.f32 %v11835_v17, %v5656_v56  ;;  %7931 = vmatpush3.bf16.msra.mxu0 %v9255_v8  ;;  %v9257_v42 = vld [vmem:[%s11929_s7 + $0x10] sm:$0xff]   ;;  %v9258_v53 = vld [vmem:[%s11929_s7 + $0x58] sm:$0xff]  }
 0x48e   :  { %v11845_v16 = vadd.f32 %v5669_v9, %v5657_v34  ;;  %6522 = vmatpush1.bf16.msra.mxu1 %v9114_v28  ;;  %v5595_v6 = vpop.f32.mrb[108].mxu0  ;;  %7932 = vmatprep.subr.bf16.mxu0 %v9256_v10  ;;  %v9259_v28 = vld [vmem:[%s11929_s7 + $0x18] sm:$0xff]   ;;  %v9261_v34 = vld [vmem:[%s11929_s7 + $0x20] sm:$0xff]  }
 0x48f   :  { %v5597_v59 = vpop.f32.mrb[109].mxu0  ;;  %6523 = vmatprep.subr.bf16.mxu1 %v9119_v60  ;;  %v9168_v56 = vld [vmem:[#allocation4 + $0x240] ss:$8 sps:$4 sm:$0xff]   ;;  %v9173_v60 = vld [vmem:[#allocation4 + $0x254] ss:$8 sps:$4 sm:$0xff]  }
 0x490   :  { %v5599_v46 = vpop.f32.mrb[110].mxu0  ;;  %v5685_v7 = vmax.f32 %v11845_v16, 0.0  ;;  %v9262_v16 = vld [vmem:[%s11929_s7 + $0x68] sm:$0xff]   ;;  %v9216_v22 = vld [vmem:[#allocation4 + $0x340] ss:$8 sps:$4 sm:$0xff]  }
 0x491   :  { %v5650_v19 = vmax.f32 %v5595_v6, %v5599_v46  ;;  %v5601_v1 = vpop.f32.mrb[111].mxu0  ;;  %7933 = vmatpush3.bf16.msra.mxu0 %v9257_v42  ;;  %v9171_v6 = vld [vmem:[#allocation4 + $0x250] ss:$8 sps:$4 sm:$0xff]   ;;  %v9179_v46 = vld [vmem:[#allocation4 + $0x274] ss:$8 sps:$4 sm:$0xff]  }
 0x492   :  { %v5651_v36 = vmax.f32 %v5597_v59, %v5601_v1  ;;  %6524 = vmatpush1.bf16.msra.mxu1 %v9117_v44  ;;  %v5693_v13 = vpack.c.bf16 %v5685_v7, %v5685_v7  ;;  %7934 = vmatprep.subr.bf16.mxu0 %v9258_v53  ;;  %v9176_v44 = vld [vmem:[#allocation4 + $0x264] ss:$8 sps:$4 sm:$0xff]   ;;  %v9263_v59 = vld [vmem:[%s11929_s7 + $0x28] sm:$0xff]   ;;  %v9228_v21 = vld [vmem:[#allocation4 + $0x380] ss:$8 sps:$4 sm:$0xff]  }
 0x493   :  { %v5658_v61 = vmax.f32 %v5648_v2, %v5650_v19  ;;  %6525 = vmatprep.subr.bf16.mxu1 %v9122_v24  ;;  %v9134_v2 = vld [vmem:[#allocation4 + $0x184] ss:$8 sps:$4 sm:$0xff]   ;;  %v9174_v24 = vld [vmem:[#allocation4 + $0x260] ss:$8 sps:$4 sm:$0xff]   ;;  %v9177_v19 = vld [vmem:[#allocation4 + $0x270] ss:$8 sps:$4 sm:$0xff]  }
 0x494   :  { %v5659_v18 = vmax.f32 %v5649_v52, %v5651_v36  ;;  %v9135_v52 = vld [vmem:[#allocation4 + $0x190] ss:$8 sps:$4 sm:$0xff]   ;;  %v9182_v1 = vld [vmem:[#allocation4 + $0x284] ss:$8 sps:$4 sm:$0xff]   ;;  %v9180_v36 = vld [vmem:[#allocation4 + $0x280] ss:$8 sps:$4 sm:$0xff]  }
 0x495   :  { %v11854_v15 = vadd.f32 %v11835_v17, %v5658_v61  ;;  %v9140_v17 = vld [vmem:[#allocation4 + $0x1a4] ss:$8 sps:$4 sm:$0xff]   ;;  %7935 = vmatpush3.bf16.msra.mxu0 %v9259_v28  ;;  %v9183_v61 = vld [vmem:[#allocation4 + $0x290] ss:$8 sps:$4 sm:$0xff]   ;;  %v9234_v8 = vld [vmem:[#allocation4 + $0x3a0] ss:$8 sps:$4 sm:$0xff]  }
 0x496   :  { %v11856_v31 = vadd.f32 %v5669_v9, %v5659_v18  ;;  %6526 = vmatpush1.bf16.msra.mxu1 %v9120_v23  ;;  %v9143_v9 = vld [vmem:[#allocation4 + $0x1b4] ss:$8 sps:$4 sm:$0xff]   ;;  %7936 = vmatprep.subr.bf16.mxu0 %v9260_v4  ;;  %v9186_v18 = vld [vmem:[#allocation4 + $0x2a0] ss:$8 sps:$4 sm:$0xff]   ;;  %v9219_v7 = vld [vmem:[#allocation4 + $0x350] ss:$8 sps:$4 sm:$0xff]  }
 0x497   :  { %6527 = vmatprep.subr.bf16.mxu1 %v9125_v58  ;;  %v9185_v23 = vld [vmem:[#allocation4 + $0x294] ss:$8 sps:$4 sm:$0xff]   ;;  %v9188_v58 = vld [vmem:[#allocation4 + $0x2a4] ss:$8 sps:$4 sm:$0xff]   ;;  %v9240_v42 = vld [vmem:[#allocation4 + $0x3c0] ss:$8 sps:$4 sm:$0xff]  }
 0x498   :  { %v9239_v10 = vld [vmem:[#allocation4 + $0x3b4] ss:$8 sps:$4 sm:$0xff]   ;;  %v9246_v28 = vld [vmem:[#allocation4 + $0x3e0] ss:$8 sps:$4 sm:$0xff]  }
 0x499   :  { %7937 = vmatpush3.bf16.msra.mxu0 %v9261_v34  ;;  %v9245_v53 = vld [vmem:[#allocation4 + $0x3d4] ss:$8 sps:$4 sm:$0xff]  }
 0x49a   :  { %6528 = vmatpush1.bf16.msra.mxu1 %v9123_v48  ;;  %7938 = vmatprep.subr.bf16.mxu0 %v9262_v16  ;;  %v9191_v48 = vld [vmem:[#allocation4 + $0x2b4] ss:$8 sps:$4 sm:$0xff]   ;;  %v9264_v16 = vld [vmem:[%s11929_s7 + $0x70] sm:$0xff]  }
 0x49b   :  { %6529 = vmatprep.subr.bf16.mxu1 %v9128_v12  ;;  %v9189_v12 = vld [vmem:[#allocation4 + $0x2b0] ss:$8 sps:$4 sm:$0xff]   ;;  %v9251_v4 = vld [vmem:[#allocation4 + $0x3f4] ss:$8 sps:$4 sm:$0xff]  }
 0x49d   :  { %7939 = vmatpush3.bf16.msra.mxu0 %v9263_v59  ;;  %v5824_v59 = vld [vmem:[%s11928_s6] sm:$0x3] }
 0x49e   :  { %6530 = vmatpush1.bf16.msra.mxu1 %v9126_v32  ;;  %v9194_v32 = vld [vmem:[#allocation4 + $0x2c4] ss:$8 sps:$4 sm:$0xff]   ;;  %7940 = vmatprep.subr.bf16.mxu0 %v9264_v16 }
 0x49f   :  { %6531 = vmatprep.subr.bf16.mxu1 %v9131_v45  ;;  %v9192_v45 = vld [vmem:[#allocation4 + $0x2c0] ss:$8 sps:$4 sm:$0xff]  }
 0x4a2   :  { %6532 = vmatpush1.bf16.msra.mxu1 %v9129_v20  ;;  %v9197_v20 = vld [vmem:[#allocation4 + $0x2d4] ss:$8 sps:$4 sm:$0xff]  }
 0x4a3   :  { %6533 = vmatprep.subr.bf16.mxu1 %v9134_v2  ;;  %v9195_v2 = vld [vmem:[#allocation4 + $0x2d0] ss:$8 sps:$4 sm:$0xff]  }
 0x4a6   :  { %6534 = vmatpush1.bf16.msra.mxu1 %v9132_v43  ;;  %v9200_v43 = vld [vmem:[#allocation4 + $0x2e4] ss:$8 sps:$4 sm:$0xff]  }
 0x4a7   :  { %6535 = vmatprep.subr.bf16.mxu1 %v9137_v41  ;;  %v9198_v41 = vld [vmem:[#allocation4 + $0x2e0] ss:$8 sps:$4 sm:$0xff]  }
 0x4aa   :  { %6536 = vmatpush1.bf16.msra.mxu1 %v9135_v52  ;;  %v9203_v52 = vld [vmem:[#allocation4 + $0x2f4] ss:$8 sps:$4 sm:$0xff]  }
 0x4ab   :  { %6537 = vmatprep.subr.bf16.mxu1 %v9140_v17  ;;  %v9201_v17 = vld [vmem:[#allocation4 + $0x2f0] ss:$8 sps:$4 sm:$0xff]  }
 0x4ae   :  { %6538 = vmatpush1.bf16.msra.mxu1 %v9138_v29  ;;  %v5684_v29 = vmax.f32 %v11843_v14, 0.0  ;;  %v9215_v14 = vld [vmem:[#allocation4 + $0x334] ss:$8 sps:$4 sm:$0xff]  }
 0x4af   :  { %6539 = vmatprep.subr.bf16.mxu1 %v9143_v9  ;;  %v9206_v9 = vld [vmem:[#allocation4 + $0x304] ss:$8 sps:$4 sm:$0xff]  }
 0x4b2   :  { %6540 = vmatpush1.bf16.msra.mxu1 %v9141_v39  ;;  %v5687_v39 = vmax.f32 %v11856_v31, 0.0  ;;  %v9218_v31 = vld [vmem:[#allocation4 + $0x344] ss:$8 sps:$4 sm:$0xff]  }
 0x4b3   :  { %6541 = vmatprep.subr.bf16.mxu1 %v9146_v25  ;;  %v9204_v25 = vld [vmem:[#allocation4 + $0x300] ss:$8 sps:$4 sm:$0xff]  }
 0x4b6   :  { %6542 = vmatpush1.bf16.msra.mxu1 %v9144_v54  ;;  %v5692_v54 = vpack.c.bf16 %v5684_v29, %v5684_v29 }
 0x4b7   :  { %6543 = vmatprep.subr.bf16.mxu1 %v9149_v57  ;;  %v9209_v57 = vld [vmem:[#allocation4 + $0x314] ss:$8 sps:$4 sm:$0xff]  }
 0x4ba   :  { %6544 = vmatpush1.bf16.msra.mxu1 %v9147_v26  ;;  %v5695_v26 = vpack.c.bf16 %v5687_v39, %v5687_v39 }
 0x4bb   :  { %6545 = vmatprep.subr.bf16.mxu1 %v9152_v38  ;;  %v9207_v38 = vld [vmem:[#allocation4 + $0x310] ss:$8 sps:$4 sm:$0xff]  }
 0x4be   :  { %6546 = vmatpush1.bf16.msra.mxu1 %v9150_v27  ;;  %v9212_v27 = vld [vmem:[#allocation4 + $0x324] ss:$8 sps:$4 sm:$0xff]  }
 0x4bf   :  { %6547 = vmatprep.subr.bf16.mxu1 %v9155_v62  ;;  %v9210_v62 = vld [vmem:[#allocation4 + $0x320] ss:$8 sps:$4 sm:$0xff]  }
 0x4c2   :  { %6548 = vmatpush1.bf16.msra.mxu1 %v9153_v5  ;;  %v9213_v5 = vld [vmem:[#allocation4 + $0x330] ss:$8 sps:$4 sm:$0xff]  }
 0x4c3   :  { %6558 = vmatprep.subr.bf16.mxu1 %v9158_v47  ;;  %v9221_v47 = vld [vmem:[#allocation4 + $0x354] ss:$8 sps:$4 sm:$0xff]  }
 0x4c5   :  { %6550 = vmatmul.mubr.bf16.vlgmr.msra.gmra.mrb[80].mxu1 %v5690_v37  ;;  %v9222_v37 = vld [vmem:[#allocation4 + $0x360] ss:$8 sps:$4 sm:$0xff]  }
 0x4c6   :  { %6559 = vmatpush1.bf16.msra.mxu1 %v9156_v40  ;;  %6590 = vmatprep.mubr.bf16.mxu1 %v5693_v13  ;;  %v9224_v40 = vld [vmem:[#allocation4 + $0x364] ss:$8 sps:$4 sm:$0xff]   ;;  %v9225_v13 = vld [vmem:[#allocation4 + $0x370] ss:$8 sps:$4 sm:$0xff]  }
 0x4c7   :  { %6560 = vmatprep.subr.bf16.mxu1 %v9161_v49  ;;  %v9227_v49 = vld [vmem:[#allocation4 + $0x374] ss:$8 sps:$4 sm:$0xff]  }
 0x4ca   :  { %6561 = vmatpush1.bf16.msra.mxu1 %v9159_v51  ;;  %v9231_v51 = vld [vmem:[#allocation4 + $0x390] ss:$8 sps:$4 sm:$0xff]  }
 0x4cb   :  { %6562 = vmatprep.subr.bf16.mxu1 %v9164_v33  ;;  %v9236_v33 = vld [vmem:[#allocation4 + $0x3a4] ss:$8 sps:$4 sm:$0xff]  }
 0x4ce   :  { %6563 = vmatpush1.bf16.msra.mxu1 %v9162_v11  ;;  %v9237_v11 = vld [vmem:[#allocation4 + $0x3b0] ss:$8 sps:$4 sm:$0xff]  }
 0x4cf   :  { %6564 = vmatprep.subr.bf16.mxu1 %v9167_v35  ;;  %v9242_v35 = vld [vmem:[#allocation4 + $0x3c4] ss:$8 sps:$4 sm:$0xff]  }
 0x4d2   :  { %6565 = vmatpush1.bf16.msra.mxu1 %v9165_v0  ;;  %v9243_v0 = vld [vmem:[#allocation4 + $0x3d0] ss:$8 sps:$4 sm:$0xff]  }
 0x4d3   :  { %6566 = vmatprep.subr.bf16.mxu1 %v9170_v30  ;;  %v9248_v30 = vld [vmem:[#allocation4 + $0x3e4] ss:$8 sps:$4 sm:$0xff]  }
 0x4d6   :  { %6567 = vmatpush1.bf16.msra.mxu1 %v9168_v56  ;;  %v9249_v56 = vld [vmem:[#allocation4 + $0x3f0] ss:$8 sps:$4 sm:$0xff]  }
 0x4d7   :  { %6568 = vmatprep.subr.bf16.mxu1 %v9173_v60  ;;  %v5686_v60 = vmax.f32 %v11854_v15, 0.0  ;;  %v9267_v15 = vld [vmem:[%s11929_s7 + $0x38] sm:$0xff]  }
 0x4d9   :  { %v5694_v34 = vpack.c.bf16 %v5686_v60, %v5686_v60 }
 0x4da   :  { %6569 = vmatpush1.bf16.msra.mxu1 %v9171_v6  ;;  %v9265_v6 = vld [vmem:[%s11929_s7 + $0x30] sm:$0xff]  }
 0x4db   :  { %6570 = vmatprep.subr.bf16.mxu1 %v9176_v44  ;;  %7941 = vmatpush3.bf16.msra.mxu0 %v9265_v6  ;;  %v9266_v44 = vld [vmem:[%s11929_s7 + $0x78] sm:$0xff]  }
 0x4dc   :  { %7942 = vmatprep.subr.bf16.mxu0 %v9266_v44 }
 0x4de   :  { %6571 = vmatpush1.bf16.msra.mxu1 %v9174_v24  ;;  %v5829_v24 = vrot.slane %v5824_v59, %v12067_v55 }
 0x4df   :  { %6572 = vmatprep.subr.bf16.mxu1 %v9179_v46  ;;  %7943 = vmatpush3.bf16.msra.mxu0 %v9267_v15  ;;  %v5833_v46 = vrot.slane %v5824_v59, %v12068_v63 }
 0x4e2   :  { %6573 = vmatpush1.bf16.msra.mxu1 %v9177_v19 }
 0x4e3   :  { %6574 = vmatprep.subr.bf16.mxu1 %v9182_v1 }
 0x4e6   :  { %6575 = vmatpush1.bf16.msra.mxu1 %v9180_v36 }
 0x4e7   :  { %6576 = vmatprep.subr.bf16.mxu1 %v9185_v23 }
 0x4ea   :  { %6577 = vmatpush1.bf16.msra.mxu1 %v9183_v61 }
 0x4eb   :  { %6578 = vmatprep.subr.bf16.mxu1 %v9188_v58 }
 0x4ee   :  { %6579 = vmatpush1.bf16.msra.mxu1 %v9186_v18 }
 0x4ef   :  { %6580 = vmatprep.subr.bf16.mxu1 %v9191_v48 }
 0x4f2   :  { %6581 = vmatpush1.bf16.msra.mxu1 %v9189_v12 }
 0x4f3   :  { %6582 = vmatprep.subr.bf16.mxu1 %v9194_v32 }
 0x4f6   :  { %6583 = vmatpush1.bf16.msra.mxu1 %v9192_v45 }
 0x4f7   :  { %6584 = vmatprep.subr.bf16.mxu1 %v9197_v20  ;;  %v7911_v20 = vld [vmem:[%s11930_s8] ss:$0 sm:$0xff] }
 0x4fa   :  { %6585 = vmatpush1.bf16.msra.mxu1 %v9195_v2 }
 0x4fb   :  { %6586 = vmatprep.subr.bf16.mxu1 %v9200_v43 }
 0x4fe   :  { %6587 = vmatpush1.bf16.msra.mxu1 %v9198_v41 }
 0x4ff   :  { %6588 = vmatprep.subr.bf16.mxu1 %v9203_v52 }
 0x502   :  { %6589 = vmatpush1.bf16.msra.mxu1 %v9201_v17 }
 0x503   :  { %6599 = vmatprep.subr.bf16.mxu1 %v9206_v9 }
 0x505   :  { %6591 = vmatmul.mubr.bf16.vlgmr.msra.gmra.mrb[80].mxu1 %v5692_v54 }
 0x506   :  { %6600 = vmatpush1.bf16.msra.mxu1 %v9204_v25  ;;  %6631 = vmatprep.mubr.bf16.mxu1 %v5695_v26 }
 0x507   :  { %6601 = vmatprep.subr.bf16.mxu1 %v9209_v57 }
 0x50a   :  { %6602 = vmatpush1.bf16.msra.mxu1 %v9207_v38 }
 0x50b   :  { %6603 = vmatprep.subr.bf16.mxu1 %v9212_v27 }
 0x50e   :  { %6604 = vmatpush1.bf16.msra.mxu1 %v9210_v62 }
 0x50f   :  { %6605 = vmatprep.subr.bf16.mxu1 %v9215_v14 }
 0x512   :  { %6606 = vmatpush1.bf16.msra.mxu1 %v9213_v5 }
 0x513   :  { %6607 = vmatprep.subr.bf16.mxu1 %v9218_v31 }
 0x516   :  { %6608 = vmatpush1.bf16.msra.mxu1 %v9216_v22 }
 0x517   :  { %6609 = vmatprep.subr.bf16.mxu1 %v9221_v47 }
 0x51a   :  { %6610 = vmatpush1.bf16.msra.mxu1 %v9219_v7 }
 0x51b   :  { %6611 = vmatprep.subr.bf16.mxu1 %v9224_v40 }
 0x51e   :  { %6612 = vmatpush1.bf16.msra.mxu1 %v9222_v37 }
 0x51f   :  { %6613 = vmatprep.subr.bf16.mxu1 %v9227_v49 }
 0x522   :  { %6614 = vmatpush1.bf16.msra.mxu1 %v9225_v13 }
 0x523   :  { %6615 = vmatprep.subr.bf16.mxu1 %v9230_v3 }
 0x526   :  { %6616 = vmatpush1.bf16.msra.mxu1 %v9228_v21 }
 0x527   :  { %6617 = vmatprep.subr.bf16.mxu1 %v9233_v50 }
 0x52a   :  { %6618 = vmatpush1.bf16.msra.mxu1 %v9231_v51 }
 0x52b   :  { %6619 = vmatprep.subr.bf16.mxu1 %v9236_v33 }
 0x52e   :  { %6620 = vmatpush1.bf16.msra.mxu1 %v9234_v8 }
 0x52f   :  { %6621 = vmatprep.subr.bf16.mxu1 %v9239_v10 }
 0x532   :  { %6622 = vmatpush1.bf16.msra.mxu1 %v9237_v11 }
 0x533   :  { %6623 = vmatprep.subr.bf16.mxu1 %v9242_v35 }
 0x536   :  { %6624 = vmatpush1.bf16.msra.mxu1 %v9240_v42 }
 0x537   :  { %6625 = vmatprep.subr.bf16.mxu1 %v9245_v53 }
 0x53a   :  { %6626 = vmatpush1.bf16.msra.mxu1 %v9243_v0 }
 0x53b   :  { %6627 = vmatprep.subr.bf16.mxu1 %v9248_v30 }
 0x53e   :  { %6628 = vmatpush1.bf16.msra.mxu1 %v9246_v28 }
 0x53f   :  { %6629 = vmatprep.subr.bf16.mxu1 %v9251_v4 }
 0x542   :  { %6630 = vmatpush1.bf16.msra.mxu1 %v9249_v56 }
 0x545   :  { %6632 = vmatmul.mubr.bf16.vlgmr.msra.gmra.mrb[80].mxu1 %v5694_v34 }
 0x618   :  { %v6633_v19 = vpop.f32.mrb[80].mxu1 }
 0x619   :  { %v7982_v1 = vadd.f32 %v6633_v19, %v5829_v24  ;;  %v6635_v36 = vpop.f32.mrb[81].mxu1 }
 0x61a   :  { %v7983_v23 = vadd.f32 %v6635_v36, %v5833_v46  ;;  %v6637_v61 = vpop.f32.mrb[82].mxu1 }
 0x61b   :  { %v6640_v58 = vmax.f32 %v7982_v1, 0.0  ;;  %v6638_v18 = vpop.f32.mrb[83].mxu1 }
 0x61c   :  { %v6641_v48 = vmax.f32 %v7983_v23, 0.0 }
 0x61d   :  { %v6642_v32 = vpack.c.bf16 %v6640_v58, %v6640_v58 }
 0x61e   :  { %v6643_v12 = vpack.c.bf16 %v6641_v48, %v6641_v48 }
 0x620   :  { %6811 = vmatprep.mubr.bf16.mxu0 %v6643_v12 }
 0x621   :  { %6812 = vmatmul.mubr.bf16.vlgmr.msra.gmra.mrb[128].mxu0 %v6642_v32 }
 0x6f4   :  { %v7944_v45 = vpop.f32.mrb[128].mxu0 }
 0x6f5   :  { %v7945_v55 = vpop.f32.mrb[129].mxu0 }
 0x6f6   :  { %v7946_v2 = vadd.f32 %v7945_v55, %v7944_v45  ;;  %v7947_v63 = vpop.f32.mrb[130].mxu0 }
 0x6f7   :  { %v7948_v43 = vpop.f32.mrb[131].mxu0 }
 0x6f8   :  { %v6814_v41 = vadd.f32 %v7946_v2, %v7911_v20 }
 0x6fa   :  { %6819 = vst [vmem:[%s11931_s9] sm:$0xff] %v6814_v41 }
 0x6fb   :  { %6824 = vsyncpa [#allocation3], 1 }
 0x6fc   :  { %6825 = vsyncpa [#allocation5], 1 }

</bundles_post_ra>
